<compile_context>
chip_gen: v7x
topology: tpu7x:2x2x1
jax: 0.10.0
libtpu: 0.0.40
codegen_flags: <defaults>
</compile_context>

<pallas_src>
import jax
import jax.numpy as jnp
from jax.experimental import pallas as pl
from jax.experimental.pallas import tpu as pltpu

LANE = 128
CONV_COUT = (32, 64, 128)  # fixed by the module definition


def _round_up(x, m):
    return (x + m - 1) // m * m


# ---------------------------------------------------------------------------
# Pallas kernels (hot path: MXU matmuls, pooling max, bias, ReLU)
# ---------------------------------------------------------------------------
def conv_pool_relu_kernel(p_ref, w_ref, b_ref, o_ref):
    """p_ref: (4, TM, Kp) bf16 parity im2col patches; w_ref: (Kp, Cp) bf16;
    b_ref: (1, Cp) f32; o_ref: (TM, Cp) f32 = relu(maxpool(conv) + bias)."""
    four, tm, kp = p_ref.shape
    # One MXU pass: concatenate the 4 pooling parities along M (4x longer LHS,
    # weights streamed once).  Accumulate in f32.
    lhs = p_ref[...].reshape(four * tm, kp)
    acc = jnp.dot(lhs, w_ref[...], preferred_element_type=jnp.float32)
    a0 = acc[0 * tm:1 * tm]
    a1 = acc[1 * tm:2 * tm]
    a2 = acc[2 * tm:3 * tm]
    a3 = acc[3 * tm:4 * tm]
    pooled = jnp.maximum(jnp.maximum(a0, a1), jnp.maximum(a2, a3))
    o_ref[...] = jnp.maximum(pooled + b_ref[...], 0.0)


def classifier_kernel(x_ref, w1_ref, b1_ref, w2_ref, b2_ref, o_ref):
    """Fused Linear(2048->64) + ReLU + Linear(64->num_classes), all padded to
    128 lanes.  bf16 MXU operands, f32 accumulation and epilogue."""
    h = jnp.dot(x_ref[...], w1_ref[...], preferred_element_type=jnp.float32)
    h = jnp.maximum(h + b1_ref[...], 0.0)
    y = jnp.dot(h.astype(jnp.bfloat16), w2_ref[...],
                preferred_element_type=jnp.float32)
    o_ref[...] = y + b2_ref[...]


# ---------------------------------------------------------------------------
# Wrappers (glue: padding, im2col patch extraction, pallas_call plumbing)
# ---------------------------------------------------------------------------
def _build_parity_patches(x_nhwc, K, P, kdim_pad):
    """(B,H,W,Cin) f32 -> (4, B*Ho*Wo, kdim_pad) bf16 im2col patches, one slab
    per 2x2 pooling-window position; column order is (kh, kw, cin)."""
    B, H, W, Cin = x_nhwc.shape
    Ho, Wo = H // 2, W // 2
    xp = jnp.pad(x_nhwc.astype(jnp.bfloat16), ((0, 0), (P, P), (P, P), (0, 0)))
    slabs = []
    for ph in range(2):          # pooling parity in H
        for pw in range(2):      # pooling parity in W
            cols = []
            for kh in range(K):
                for kw in range(K):
                    sl = xp[:, ph + kh::2, pw + kw::2, :][:, :Ho, :Wo, :]
                    cols.append(sl)
            pat = jnp.concatenate(cols, axis=-1)          # (B,Ho,Wo,K*K*Cin)
            slabs.append(pat.reshape(B * Ho * Wo, K * K * Cin))
    patches = jnp.stack(slabs, axis=0)                    # (4, M, K*K*Cin)
    return jnp.pad(patches, ((0, 0), (0, 0), (0, kdim_pad - K * K * Cin)))


def conv_pool_relu(x_nhwc, w_pad, b_pad, cout, K=5, P=2):
    """w_pad: (Kp, Cp) bf16, already (kh,kw,cin)-ordered / zero-padded;
    b_pad: (1, Cp) f32.  Returns (B, H/2, W/2, cout) f32."""
    B, H, W, _ = x_nhwc.shape
    Ho, Wo = H // 2, W // 2
    M = B * Ho * Wo
    Kp, Cp = w_pad.shape
    patches = _build_parity_patches(x_nhwc, K, P, Kp)

    tile_m = 256 if M % 256 == 0 else M                   # multiple of 8 here
    grid = (M // tile_m,)
    flops = 2 * 4 * M * Kp * Cp
    bytes_accessed = (patches.size * 2 + w_pad.size * 2 + b_pad.size * 4
                      + M * Cp * 4)

    out = pl.pallas_call(
        conv_pool_relu_kernel,
        grid=grid,
        out_shape=jax.ShapeDtypeStruct((M, Cp), jnp.float32),
        in_specs=[
            pl.BlockSpec((4, tile_m, Kp), lambda i: (0, i, 0)),
            pl.BlockSpec((Kp, Cp), lambda i: (0, 0)),
            pl.BlockSpec((1, Cp), lambda i: (0, 0)),
        ],
        out_specs=pl.BlockSpec((tile_m, Cp), lambda i: (i, 0)),
        compiler_params=pltpu.CompilerParams(
            dimension_semantics=("parallel",),
            vmem_limit_bytes=32 * 1024 * 1024),
        cost_estimate=pl.CostEstimate(flops=flops, transcendentals=0,
                                      bytes_accessed=bytes_accessed),
    )(patches, w_pad, b_pad)
    return out[:, :cout].reshape(B, Ho, Wo, cout)


def classifier(x_flat, w1, b1, w2, b2, num_classes):
    """x_flat: (B, 2048) bf16 (NHWC flatten; fc1 weight is pre-permuted)."""
    B = x_flat.shape[0]
    Cp = w2.shape[1]
    out = pl.pallas_call(
        classifier_kernel,
        grid=(1,),
        out_shape=jax.ShapeDtypeStruct((B, Cp), jnp.float32),
        in_specs=[
            pl.BlockSpec(x_flat.shape, lambda i: (0, 0)),
            pl.BlockSpec(w1.shape, lambda i: (0, 0)),
            pl.BlockSpec(b1.shape, lambda i: (0, 0)),
            pl.BlockSpec(w2.shape, lambda i: (0, 0)),
            pl.BlockSpec(b2.shape, lambda i: (0, 0)),
        ],
        out_specs=pl.BlockSpec((B, Cp), lambda i: (0, 0)),
        compiler_params=pltpu.CompilerParams(
            dimension_semantics=("arbitrary",),
            vmem_limit_bytes=32 * 1024 * 1024),
        cost_estimate=pl.CostEstimate(
            flops=2 * B * (w1.shape[0] * w1.shape[1] + w2.shape[0] * w2.shape[1]),
            transcendentals=0,
            bytes_accessed=(x_flat.size * 2 + w1.size * 2 + w2.size * 2
                            + b1.size * 4 + b2.size * 4 + B * Cp * 4)),
    )(x_flat, w1, b1, w2, b2)
    return out[:, :num_classes]


# ---------------------------------------------------------------------------
# Parameters (PyTorch shapes) and one-time layout preparation (outside jit)
# ---------------------------------------------------------------------------
def init_params(key, image_channels=3, num_classes=10):
    ks = jax.random.split(key, 10)
    p = {}
    p["c1w"] = 0.05 * jax.random.normal(ks[0], (32, image_channels, 5, 5), jnp.float32)
    p["c1b"] = 0.01 * jax.random.normal(ks[1], (32,), jnp.float32)
    p["c2w"] = 0.05 * jax.random.normal(ks[2], (64, 32, 5, 5), jnp.float32)
    p["c2b"] = 0.01 * jax.random.normal(ks[3], (64,), jnp.float32)
    p["c3w"] = 0.05 * jax.random.normal(ks[4], (128, 64, 5, 5), jnp.float32)
    p["c3b"] = 0.01 * jax.random.normal(ks[5], (128,), jnp.float32)
    p["f1w"] = 0.05 * jax.random.normal(ks[6], (64, 128 * 4 * 4), jnp.float32)
    p["f1b"] = 0.01 * jax.random.normal(ks[7], (64,), jnp.float32)
    p["f2w"] = 0.05 * jax.random.normal(ks[8], (num_classes, 64), jnp.float32)
    p["f2b"] = 0.01 * jax.random.normal(ks[9], (num_classes,), jnp.float32)
    return p


def prepare_params(p):
    """One-time layout prep: transpose to matmul order, fold the NCHW flatten
    permutation into fc1, zero-pad to 128-lane sizes, cast operands to bf16."""
    def prep_conv(w_oihw, b):
        cout, cin, K, _ = w_oihw.shape
        kdim = K * K * cin
        kp, cp = _round_up(kdim, LANE), _round_up(cout, LANE)
        w = jnp.transpose(w_oihw, (2, 3, 1, 0)).reshape(kdim, cout)   # (kh,kw,cin) rows
        w = jnp.pad(w, ((0, kp - kdim), (0, cp - cout))).astype(jnp.bfloat16)
        b2 = jnp.pad(b, (0, cp - cout)).reshape(1, cp).astype(jnp.float32)
        return w, b2

    q = {}
    q["c1w"], q["c1b"] = prep_conv(p["c1w"], p["c1b"])
    q["c2w"], q["c2b"] = prep_conv(p["c2w"], p["c2b"])
    q["c3w"], q["c3b"] = prep_conv(p["c3w"], p["c3b"])

    # fc1: PyTorch flattens NCHW (c,h,w); permute the weight columns once so the
    # kernel can consume the NHWC (h,w,c) flatten directly (no runtime transpose).
    f1w = p["f1w"]                                     # (64, 128*4*4), c-major cols
    out1, feat = f1w.shape
    f1w_hwc = f1w.reshape(out1, 128, 4, 4).transpose(0, 2, 3, 1).reshape(out1, feat)
    h1p = _round_up(out1, LANE)
    q["f1w"] = jnp.pad(f1w_hwc.T, ((0, 0), (0, h1p - out1))).astype(jnp.bfloat16)
    q["f1b"] = jnp.pad(p["f1b"], (0, h1p - out1)).reshape(1, h1p).astype(jnp.float32)

    f2w = p["f2w"]                                     # (num_classes, 64)
    out2 = f2w.shape[0]
    c2p = _round_up(out2, LANE)
    q["f2w"] = jnp.pad(f2w.T, ((0, h1p - out1), (0, c2p - out2))).astype(jnp.bfloat16)
    q["f2b"] = jnp.pad(p["f2b"], (0, c2p - out2)).reshape(1, c2p).astype(jnp.float32)
    return q


# ---------------------------------------------------------------------------
# Forward passes
# ---------------------------------------------------------------------------
def example_model_forward(params, x_nchw, num_classes=10):
    x = jnp.transpose(x_nchw, (0, 2, 3, 1))                         # NCHW -> NHWC once
    x = conv_pool_relu(x, params["c1w"], params["c1b"], CONV_COUT[0])  # (B,16,16,32)
    x = conv_pool_relu(x, params["c2w"], params["c2b"], CONV_COUT[1])  # (B, 8, 8,64)
    x = conv_pool_relu(x, params["c3w"], params["c3b"], CONV_COUT[2])  # (B, 4, 4,128)
    # NHWC flatten; the (c,h,w) PyTorch ordering is folded into f1w already.
    x = x.reshape(x.shape[0], -1).astype(jnp.bfloat16)               # (B, 2048)
    return classifier(x, params["f1w"], params["f1b"],
                      params["f2w"], params["f2b"], num_classes)     # (B, num_classes)


def reference_forward(params, x_nchw):
    """Pure-JAX f32 reference mirroring the PyTorch module, for a sanity check."""
    x = x_nchw
    for wk, bk in (("c1w", "c1b"), ("c2w", "c2b"), ("c3w", "c3b")):
        x = jax.lax.conv_general_dilated(
            x, params[wk], window_strides=(1, 1), padding=[(2, 2), (2, 2)],
            dimension_numbers=("NCHW", "OIHW", "NCHW"))
        x = x + params[bk][None, :, None, None]
        x = jax.lax.reduce_window(x, -jnp.inf, jax.lax.max,
                                  (1, 1, 2, 2), (1, 1, 2, 2), "VALID")
        x = jnp.maximum(x, 0.0)
    x = x.reshape(x.shape[0], -1)
    x = jnp.maximum(x @ params["f1w"].T + params["f1b"], 0.0)
    x = x @ params["f2w"].T + params["f2b"]
    return x


if __name__ == "__main__":
    key = jax.random.PRNGKey(0)
    pkey, xkey = jax.random.split(key)
    params = init_params(pkey, image_channels=3, num_classes=10)
    prepped = prepare_params(params)          # layout prep done once, outside jit
    # Module hard-codes 128*4*4 output features -> input must be (B, 3, 32, 32).
    x = jax.random.normal(xkey, (2, 3, 32, 32), jnp.float32)

    fwd = jax.jit(example_model_forward)
    out = jax.block_until_ready(fwd(prepped, x))

    ref = jax.block_until_ready(jax.jit(reference_forward)(params, x))
    assert out.shape == (2, 10), out.shape
    # bf16 MXU operands (f32 accumulation) -> slightly looser tolerance than pure f32.
    assert jnp.allclose(out, ref, rtol=2e-2, atol=2e-2), (
        float(jnp.max(jnp.abs(out - ref))))
    print("KERNEL_OK")
</pallas_src>

<mosaic_0001>
module attributes {stable_mosaic.version = 11 : i64} {
  func.func @conv_pool_relu_kernel(%arg0: i32, %arg1: memref<4x256x128xbf16, #tpu.memory_space<vmem>>, %arg2: memref<128x128xbf16, #tpu.memory_space<vmem>>, %arg3: memref<1x128xf32, #tpu.memory_space<vmem>>, %arg4: memref<256x128xf32, #tpu.memory_space<vmem>>) attributes {dimension_semantics = [#tpu.dimension_semantics<parallel>], iteration_bounds = array<i64: 2>, scalar_prefetch = 0 : i64, scratch_operands = 0 : i64, tpu.core_type = #tpu.core_type<tc>, window_params = [{transform_indices = @transform_0, window_bounds = array<i64: 4, 256, 128>}, {pipeline_mode = #tpu.pipeline_mode<synchronous>, transform_indices = @transform_1, window_bounds = array<i64: 128, 128>}, {pipeline_mode = #tpu.pipeline_mode<synchronous>, transform_indices = @transform_2, window_bounds = array<i64: 1, 128>}, {transform_indices = @transform_3, window_bounds = array<i64: 256, 128>}]} {
    %c0 = arith.constant 0 : index
    %c0_0 = arith.constant 0 : index
    %c0_1 = arith.constant 0 : index
    %0 = vector.load %arg1[%c0, %c0_0, %c0_1] : memref<4x256x128xbf16, #tpu.memory_space<vmem>>, vector<4x256x128xbf16>
    %1 = vector.shape_cast %0 : vector<4x256x128xbf16> to vector<1024x128xbf16>
    %c0_2 = arith.constant 0 : index
    %c0_3 = arith.constant 0 : index
    %2 = vector.load %arg2[%c0_2, %c0_3] : memref<128x128xbf16, #tpu.memory_space<vmem>>, vector<128x128xbf16>
    %cst = arith.constant dense<0.000000e+00> : vector<1024x128xf32>
    %3 = tpu.matmul %1, %2, %cst {dimension_numbers = #tpu.dot_dimension_numbers<[1], [0], [0], [1], [0, 0, 1, 1], [], []>} : vector<1024x128xbf16>, vector<128x128xbf16>, vector<1024x128xf32> -> vector<1024x128xf32>
    %4 = vector.extract_strided_slice %3 {offsets = [0, 0], sizes = [256, 128], strides = [1, 1]} : vector<1024x128xf32> to vector<256x128xf32>
    %5 = vector.extract_strided_slice %3 {offsets = [256, 0], sizes = [256, 128], strides = [1, 1]} : vector<1024x128xf32> to vector<256x128xf32>
    %6 = vector.extract_strided_slice %3 {offsets = [512, 0], sizes = [256, 128], strides = [1, 1]} : vector<1024x128xf32> to vector<256x128xf32>
    %7 = vector.extract_strided_slice %3 {offsets = [768, 0], sizes = [256, 128], strides = [1, 1]} : vector<1024x128xf32> to vector<256x128xf32>
    %8 = arith.maximumf %4, %5 : vector<256x128xf32>
    %9 = arith.maximumf %6, %7 : vector<256x128xf32>
    %10 = arith.maximumf %8, %9 : vector<256x128xf32>
    %c0_4 = arith.constant 0 : index
    %c0_5 = arith.constant 0 : index
    %11 = vector.load %arg3[%c0_4, %c0_5] : memref<1x128xf32, #tpu.memory_space<vmem>>, vector<1x128xf32>
    %12 = vector.broadcast %11 : vector<1x128xf32> to vector<256x128xf32>
    %13 = arith.addf %10, %12 : vector<256x128xf32>
    %cst_6 = arith.constant 0.000000e+00 : f32
    %14 = vector.broadcast %cst_6 : f32 to vector<256x128xf32>
    %15 = arith.maximumf %13, %14 : vector<256x128xf32>
    %c0_7 = arith.constant 0 : index
    %c0_8 = arith.constant 0 : index
    %16 = vector.load %arg4[%c0_7, %c0_8] : memref<256x128xf32, #tpu.memory_space<vmem>>, vector<256x128xf32>
    tpu.vector_store %arg4[%c0_7, %c0_8], %15 {strides = array<i32>} : memref<256x128xf32, #tpu.memory_space<vmem>>, vector<256x128xf32>,
    return
  }
  func.func @transform_0(%arg0: i32) -> (i32, i32, i32) {
    %c0_i32 = arith.constant 0 : i32
    %c0_i32_0 = arith.constant 0 : i32
    %c0_i32_1 = arith.constant 0 : i32
    return %c0_i32, %arg0, %c0_i32_0 : i32, i32, i32
  }
  func.func @transform_1(%arg0: i32) -> (i32, i32) {
    %c0_i32 = arith.constant 0 : i32
    %c0_i32_0 = arith.constant 0 : i32
    %c0_i32_1 = arith.constant 0 : i32
    return %c0_i32, %c0_i32_0 : i32, i32
  }
  func.func @transform_2(%arg0: i32) -> (i32, i32) {
    %c0_i32 = arith.constant 0 : i32
    %c0_i32_0 = arith.constant 0 : i32
    %c0_i32_1 = arith.constant 0 : i32
    return %c0_i32, %c0_i32_0 : i32, i32
  }
  func.func @transform_3(%arg0: i32) -> (i32, i32) {
    %c0_i32 = arith.constant 0 : i32
    %c0_i32_0 = arith.constant 0 : i32
    return %arg0, %c0_i32 : i32, i32
  }
}

module attributes {stable_mosaic.version = 11 : i64} {
  func.func @conv_pool_relu_kernel(%arg0: i32, %arg1: memref<4x128x896xbf16, #tpu.memory_space<vmem>>, %arg2: memref<896x128xbf16, #tpu.memory_space<vmem>>, %arg3: memref<1x128xf32, #tpu.memory_space<vmem>>, %arg4: memref<128x128xf32, #tpu.memory_space<vmem>>) attributes {dimension_semantics = [#tpu.dimension_semantics<parallel>], iteration_bounds = array<i64: 1>, scalar_prefetch = 0 : i64, scratch_operands = 0 : i64, tpu.core_type = #tpu.core_type<tc>, window_params = [{transform_indices = @transform_0, window_bounds = array<i64: 4, 128, 896>}, {pipeline_mode = #tpu.pipeline_mode<synchronous>, transform_indices = @transform_1, window_bounds = array<i64: 896, 128>}, {pipeline_mode = #tpu.pipeline_mode<synchronous>, transform_indices = @transform_2, window_bounds = array<i64: 1, 128>}, {transform_indices = @transform_3, window_bounds = array<i64: 128, 128>}]} {
    %c0 = arith.constant 0 : index
    %c0_0 = arith.constant 0 : index
    %c0_1 = arith.constant 0 : index
    %0 = vector.load %arg1[%c0, %c0_0, %c0_1] : memref<4x128x896xbf16, #tpu.memory_space<vmem>>, vector<4x128x896xbf16>
    %1 = vector.shape_cast %0 : vector<4x128x896xbf16> to vector<512x896xbf16>
    %c0_2 = arith.constant 0 : index
    %c0_3 = arith.constant 0 : index
    %2 = vector.load %arg2[%c0_2, %c0_3] : memref<896x128xbf16, #tpu.memory_space<vmem>>, vector<896x128xbf16>
    %cst = arith.constant dense<0.000000e+00> : vector<512x128xf32>
    %3 = tpu.matmul %1, %2, %cst {dimension_numbers = #tpu.dot_dimension_numbers<[1], [0], [0], [1], [0, 0, 1, 1], [], []>} : vector<512x896xbf16>, vector<896x128xbf16>, vector<512x128xf32> -> vector<512x128xf32>
    %4 = vector.extract_strided_slice %3 {offsets = [0, 0], sizes = [128, 128], strides = [1, 1]} : vector<512x128xf32> to vector<128x128xf32>
    %5 = vector.extract_strided_slice %3 {offsets = [128, 0], sizes = [128, 128], strides = [1, 1]} : vector<512x128xf32> to vector<128x128xf32>
    %6 = vector.extract_strided_slice %3 {offsets = [256, 0], sizes = [128, 128], strides = [1, 1]} : vector<512x128xf32> to vector<128x128xf32>
    %7 = vector.extract_strided_slice %3 {offsets = [384, 0], sizes = [128, 128], strides = [1, 1]} : vector<512x128xf32> to vector<128x128xf32>
    %8 = arith.maximumf %4, %5 : vector<128x128xf32>
    %9 = arith.maximumf %6, %7 : vector<128x128xf32>
    %10 = arith.maximumf %8, %9 : vector<128x128xf32>
    %c0_4 = arith.constant 0 : index
    %c0_5 = arith.constant 0 : index
    %11 = vector.load %arg3[%c0_4, %c0_5] : memref<1x128xf32, #tpu.memory_space<vmem>>, vector<1x128xf32>
    %12 = vector.broadcast %11 : vector<1x128xf32> to vector<128x128xf32>
    %13 = arith.addf %10, %12 : vector<128x128xf32>
    %cst_6 = arith.constant 0.000000e+00 : f32
    %14 = vector.broadcast %cst_6 : f32 to vector<128x128xf32>
    %15 = arith.maximumf %13, %14 : vector<128x128xf32>
    %c0_7 = arith.constant 0 : index
    %c0_8 = arith.constant 0 : index
    %16 = vector.load %arg4[%c0_7, %c0_8] : memref<128x128xf32, #tpu.memory_space<vmem>>, vector<128x128xf32>
    tpu.vector_store %arg4[%c0_7, %c0_8], %15 {strides = array<i32>} : memref<128x128xf32, #tpu.memory_space<vmem>>, vector<128x128xf32>,
    return
  }
  func.func @transform_0(%arg0: i32) -> (i32, i32, i32) {
    %c0_i32 = arith.constant 0 : i32
    %c0_i32_0 = arith.constant 0 : i32
    %c0_i32_1 = arith.constant 0 : i32
    return %c0_i32, %arg0, %c0_i32_0 : i32, i32, i32
  }
  func.func @transform_1(%arg0: i32) -> (i32, i32) {
    %c0_i32 = arith.constant 0 : i32
    %c0_i32_0 = arith.constant 0 : i32
    %c0_i32_1 = arith.constant 0 : i32
    return %c0_i32, %c0_i32_0 : i32, i32
  }
  func.func @transform_2(%arg0: i32) -> (i32, i32) {
    %c0_i32 = arith.constant 0 : i32
    %c0_i32_0 = arith.constant 0 : i32
    %c0_i32_1 = arith.constant 0 : i32
    return %c0_i32, %c0_i32_0 : i32, i32
  }
  func.func @transform_3(%arg0: i32) -> (i32, i32) {
    %c0_i32 = arith.constant 0 : i32
    %c0_i32_0 = arith.constant 0 : i32
    return %arg0, %c0_i32 : i32, i32
  }
}

module attributes {stable_mosaic.version = 11 : i64} {
  func.func @conv_pool_relu_kernel(%arg0: i32, %arg1: memref<4x32x1664xbf16, #tpu.memory_space<vmem>>, %arg2: memref<1664x128xbf16, #tpu.memory_space<vmem>>, %arg3: memref<1x128xf32, #tpu.memory_space<vmem>>, %arg4: memref<32x128xf32, #tpu.memory_space<vmem>>) attributes {dimension_semantics = [#tpu.dimension_semantics<parallel>], iteration_bounds = array<i64: 1>, scalar_prefetch = 0 : i64, scratch_operands = 0 : i64, tpu.core_type = #tpu.core_type<tc>, window_params = [{transform_indices = @transform_0, window_bounds = array<i64: 4, 32, 1664>}, {pipeline_mode = #tpu.pipeline_mode<synchronous>, transform_indices = @transform_1, window_bounds = array<i64: 1664, 128>}, {pipeline_mode = #tpu.pipeline_mode<synchronous>, transform_indices = @transform_2, window_bounds = array<i64: 1, 128>}, {transform_indices = @transform_3, window_bounds = array<i64: 32, 128>}]} {
    %c0 = arith.constant 0 : index
    %c0_0 = arith.constant 0 : index
    %c0_1 = arith.constant 0 : index
    %0 = vector.load %arg1[%c0, %c0_0, %c0_1] : memref<4x32x1664xbf16, #tpu.memory_space<vmem>>, vector<4x32x1664xbf16>
    %1 = vector.shape_cast %0 : vector<4x32x1664xbf16> to vector<128x1664xbf16>
    %c0_2 = arith.constant 0 : index
    %c0_3 = arith.constant 0 : index
    %2 = vector.load %arg2[%c0_2, %c0_3] : memref<1664x128xbf16, #tpu.memory_space<vmem>>, vector<1664x128xbf16>
    %cst = arith.constant dense<0.000000e+00> : vector<128x128xf32>
    %3 = tpu.matmul %1, %2, %cst {dimension_numbers = #tpu.dot_dimension_numbers<[1], [0], [0], [1], [0, 0, 1, 1], [], []>} : vector<128x1664xbf16>, vector<1664x128xbf16>, vector<128x128xf32> -> vector<128x128xf32>
    %4 = vector.extract_strided_slice %3 {offsets = [0, 0], sizes = [32, 128], strides = [1, 1]} : vector<128x128xf32> to vector<32x128xf32>
    %5 = vector.extract_strided_slice %3 {offsets = [32, 0], sizes = [32, 128], strides = [1, 1]} : vector<128x128xf32> to vector<32x128xf32>
    %6 = vector.extract_strided_slice %3 {offsets = [64, 0], sizes = [32, 128], strides = [1, 1]} : vector<128x128xf32> to vector<32x128xf32>
    %7 = vector.extract_strided_slice %3 {offsets = [96, 0], sizes = [32, 128], strides = [1, 1]} : vector<128x128xf32> to vector<32x128xf32>
    %8 = arith.maximumf %4, %5 : vector<32x128xf32>
    %9 = arith.maximumf %6, %7 : vector<32x128xf32>
    %10 = arith.maximumf %8, %9 : vector<32x128xf32>
    %c0_4 = arith.constant 0 : index
    %c0_5 = arith.constant 0 : index
    %11 = vector.load %arg3[%c0_4, %c0_5] : memref<1x128xf32, #tpu.memory_space<vmem>>, vector<1x128xf32>
    %12 = vector.broadcast %11 : vector<1x128xf32> to vector<32x128xf32>
    %13 = arith.addf %10, %12 : vector<32x128xf32>
    %cst_6 = arith.constant 0.000000e+00 : f32
    %14 = vector.broadcast %cst_6 : f32 to vector<32x128xf32>
    %15 = arith.maximumf %13, %14 : vector<32x128xf32>
    %c0_7 = arith.constant 0 : index
    %c0_8 = arith.constant 0 : index
    %16 = vector.load %arg4[%c0_7, %c0_8] : memref<32x128xf32, #tpu.memory_space<vmem>>, vector<32x128xf32>
    tpu.vector_store %arg4[%c0_7, %c0_8], %15 {strides = array<i32>} : memref<32x128xf32, #tpu.memory_space<vmem>>, vector<32x128xf32>,
    return
  }
  func.func @transform_0(%arg0: i32) -> (i32, i32, i32) {
    %c0_i32 = arith.constant 0 : i32
    %c0_i32_0 = arith.constant 0 : i32
    %c0_i32_1 = arith.constant 0 : i32
    return %c0_i32, %arg0, %c0_i32_0 : i32, i32, i32
  }
  func.func @transform_1(%arg0: i32) -> (i32, i32) {
    %c0_i32 = arith.constant 0 : i32
    %c0_i32_0 = arith.constant 0 : i32
    %c0_i32_1 = arith.constant 0 : i32
    return %c0_i32, %c0_i32_0 : i32, i32
  }
  func.func @transform_2(%arg0: i32) -> (i32, i32) {
    %c0_i32 = arith.constant 0 : i32
    %c0_i32_0 = arith.constant 0 : i32
    %c0_i32_1 = arith.constant 0 : i32
    return %c0_i32, %c0_i32_0 : i32, i32
  }
  func.func @transform_3(%arg0: i32) -> (i32, i32) {
    %c0_i32 = arith.constant 0 : i32
    %c0_i32_0 = arith.constant 0 : i32
    return %arg0, %c0_i32 : i32, i32
  }
}

module attributes {stable_mosaic.version = 11 : i64} {
  func.func @classifier_kernel(%arg0: i32, %arg1: memref<2x2048xbf16, #tpu.memory_space<vmem>>, %arg2: memref<2048x128xbf16, #tpu.memory_space<vmem>>, %arg3: memref<1x128xf32, #tpu.memory_space<vmem>>, %arg4: memref<128x128xbf16, #tpu.memory_space<vmem>>, %arg5: memref<1x128xf32, #tpu.memory_space<vmem>>, %arg6: memref<2x128xf32, #tpu.memory_space<vmem>>) attributes {dimension_semantics = [#tpu.dimension_semantics<arbitrary>], iteration_bounds = array<i64: 1>, scalar_prefetch = 0 : i64, scratch_operands = 0 : i64, tpu.core_type = #tpu.core_type<tc>, window_params = [{pipeline_mode = #tpu.pipeline_mode<synchronous>, transform_indices = @transform_0, window_bounds = array<i64: 2, 2048>}, {pipeline_mode = #tpu.pipeline_mode<synchronous>, transform_indices = @transform_1, window_bounds = array<i64: 2048, 128>}, {pipeline_mode = #tpu.pipeline_mode<synchronous>, transform_indices = @transform_2, window_bounds = array<i64: 1, 128>}, {pipeline_mode = #tpu.pipeline_mode<synchronous>, transform_indices = @transform_3, window_bounds = array<i64: 128, 128>}, {pipeline_mode = #tpu.pipeline_mode<synchronous>, transform_indices = @transform_4, window_bounds = array<i64: 1, 128>}, {pipeline_mode = #tpu.pipeline_mode<synchronous>, transform_indices = @transform_5, window_bounds = array<i64: 2, 128>}]} {
    %c0 = arith.constant 0 : index
    %c0_0 = arith.constant 0 : index
    %0 = vector.load %arg1[%c0, %c0_0] : memref<2x2048xbf16, #tpu.memory_space<vmem>>, vector<2x2048xbf16>
    %c0_1 = arith.constant 0 : index
    %c0_2 = arith.constant 0 : index
    %1 = vector.load %arg2[%c0_1, %c0_2] : memref<2048x128xbf16, #tpu.memory_space<vmem>>, vector<2048x128xbf16>
    %cst = arith.constant dense<0.000000e+00> : vector<2x128xf32>
    %2 = tpu.matmul %0, %1, %cst {dimension_numbers = #tpu.dot_dimension_numbers<[1], [0], [0], [1], [0, 0, 1, 1], [], []>} : vector<2x2048xbf16>, vector<2048x128xbf16>, vector<2x128xf32> -> vector<2x128xf32>
    %c0_3 = arith.constant 0 : index
    %c0_4 = arith.constant 0 : index
    %3 = vector.load %arg3[%c0_3, %c0_4] : memref<1x128xf32, #tpu.memory_space<vmem>>, vector<1x128xf32>
    %4 = vector.broadcast %3 : vector<1x128xf32> to vector<2x128xf32>
    %5 = arith.addf %2, %4 : vector<2x128xf32>
    %cst_5 = arith.constant 0.000000e+00 : f32
    %6 = vector.broadcast %cst_5 : f32 to vector<2x128xf32>
    %7 = arith.maximumf %5, %6 : vector<2x128xf32>
    %8 = arith.truncf %7 : vector<2x128xf32> to vector<2x128xbf16>
    %c0_6 = arith.constant 0 : index
    %c0_7 = arith.constant 0 : index
    %9 = vector.load %arg4[%c0_6, %c0_7] : memref<128x128xbf16, #tpu.memory_space<vmem>>, vector<128x128xbf16>
    %cst_8 = arith.constant dense<0.000000e+00> : vector<2x128xf32>
    %10 = tpu.matmul %8, %9, %cst_8 {dimension_numbers = #tpu.dot_dimension_numbers<[1], [0], [0], [1], [0, 0, 1, 1], [], []>} : vector<2x128xbf16>, vector<128x128xbf16>, vector<2x128xf32> -> vector<2x128xf32>
    %c0_9 = arith.constant 0 : index
    %c0_10 = arith.constant 0 : index
    %11 = vector.load %arg5[%c0_9, %c0_10] : memref<1x128xf32, #tpu.memory_space<vmem>>, vector<1x128xf32>
    %12 = vector.broadcast %11 : vector<1x128xf32> to vector<2x128xf32>
    %13 = arith.addf %10, %12 : vector<2x128xf32>
    %c0_11 = arith.constant 0 : index
    %c0_12 = arith.constant 0 : index
    %14 = vector.load %arg6[%c0_11, %c0_12] : memref<2x128xf32, #tpu.memory_space<vmem>>, vector<2x128xf32>
    tpu.vector_store %arg6[%c0_11, %c0_12], %13 {strides = array<i32>} : memref<2x128xf32, #tpu.memory_space<vmem>>, vector<2x128xf32>,
    return
  }
  func.func @transform_0(%arg0: i32) -> (i32, i32) {
    %c0_i32 = arith.constant 0 : i32
    %c0_i32_0 = arith.constant 0 : i32
    %c0_i32_1 = arith.constant 0 : i32
    return %c0_i32, %c0_i32_0 : i32, i32
  }
  func.func @transform_1(%arg0: i32) -> (i32, i32) {
    %c0_i32 = arith.constant 0 : i32
    %c0_i32_0 = arith.constant 0 : i32
    %c0_i32_1 = arith.constant 0 : i32
    return %c0_i32, %c0_i32_0 : i32, i32
  }
  func.func @transform_2(%arg0: i32) -> (i32, i32) {
    %c0_i32 = arith.constant 0 : i32
    %c0_i32_0 = arith.constant 0 : i32
    %c0_i32_1 = arith.constant 0 : i32
    return %c0_i32, %c0_i32_0 : i32, i32
  }
  func.func @transform_3(%arg0: i32) -> (i32, i32) {
    %c0_i32 = arith.constant 0 : i32
    %c0_i32_0 = arith.constant 0 : i32
    %c0_i32_1 = arith.constant 0 : i32
    return %c0_i32, %c0_i32_0 : i32, i32
  }
  func.func @transform_4(%arg0: i32) -> (i32, i32) {
    %c0_i32 = arith.constant 0 : i32
    %c0_i32_0 = arith.constant 0 : i32
    %c0_i32_1 = arith.constant 0 : i32
    return %c0_i32, %c0_i32_0 : i32, i32
  }
  func.func @transform_5(%arg0: i32) -> (i32, i32) {
    %c0_i32 = arith.constant 0 : i32
    %c0_i32_0 = arith.constant 0 : i32
    %c0_i32_1 = arith.constant 0 : i32
    return %c0_i32, %c0_i32_0 : i32, i32
  }
}

</mosaic_0001>

<bundles_post_ra>
// kernel: example_model_forward.4
= control target key start
LH: loop header
LB: loop body
LE: loop exit
PB: predicated region body
PF: predicated region fallthrough
CT: control target
= control target key end

     0   :  { %s2565_s12 = smov 0   ;;  %s2567_s13 = smov 0   ;;  %s3102_s0 = inlined_call_operand.vmem [shape: bf16[4,512,128], index: 0, kind: input, shape index: {}]   ;;  %s3103_s1 = inlined_call_operand.vmem [shape: bf16[128,128], index: 1, kind: input, shape index: {}]   ;;  %s3104_s2 = inlined_call_operand.vmem [shape: f32[1,128], index: 2, kind: input, shape index: {}]   ;;  %s3105_s3 = inlined_call_operand.vmem [shape: f32[512,128], index: 3, kind: output, shape index: {}]  }
   0x1   :  { %s2569_s14 = smov 0  }
   0x2 LB: > { %s2106_s15 = sadd.s32 4294967295, %s2543_s14   ;;  %s2582_s16 = sadd.s32 1, %s2543_s14   ;;  %s2543_s14 = sphi %s2569_s14, %s3140_s14   ;;  %s2539_s13 = sphi %s2567_s13, %s3139_s13   ;;  %s2535_s12 = sphi %s2565_s12, %s3138_s12  }
   0x3   : > { %s17_s17 = ssub.s32 %s2543_s14, %s2582_s16  ;;  %s20_s18 = sadd.s32 1, %s2539_s13 }
   0x4   : > { %p18_p0 = scmp.eq.s32.totalorder %s17_s17, 0  ;;  %p27_p1 = scmp.ne.s32.totalorder %s2539_s13, %s2535_s12 }
   0x5   : > { %p28_p2 = scmp.eq.s32.totalorder %s2543_s14, 0  ;;  %p2109_p4 = scmp.ge.s32.totalorder %s2543_s14, 2 }
   0x6   : > { %s2591_s19 = scalar_select %p18_p0, %s2539_s13, %s20_s18  }
   0x7   : > { %p29_p3 = por %p28_p2, %p27_p1  ;;  %127 = sbr.rel (%p2109_p4) target bundleno = 50 (0x32), region = 24 }
   0xe   : > { %130 = sbr.rel (!%p29_p3) target bundleno = 50 (0x32), region = 28  ;;  %s132_s20 = sand.u32 (%p29_p3), 1, %s2539_s13  }
   0xf   : > { %s2192_s21 = sshll.u32 (%p29_p3), %s2543_s14, 7  ;;  %s2110_s22 = sshll.u32 (%p29_p3), %s132_s20, 9 }
  0x10   : > { %s2599_s25 = scalar_lea.vmem (%p29_p3), %s3102_s0, %s2192_s21  ;;  %s2604_s26 = scalar_lea.vmem (%p29_p3), [#allocation2], %s2110_s22 }
  0x11   : > { %v153_v0 = vld [vmem:[%s2599_s25] sm:$0xff] (%p29_p3)   ;;  %v157_v1 = vld [vmem:[%s2599_s25 + $0x8] sm:$0xff] (%p29_p3)   ;;  %v161_v2 = vld [vmem:[%s2599_s25 + $0x10] sm:$0xff] (%p29_p3)  }
  0x12   : > { %154 = vst [vmem:[%s2604_s26] sm:$0xff] (%p29_p3), %v153_v0   ;;  %158 = vst [vmem:[%s2604_s26 + $0x8] sm:$0xff] (%p29_p3), %v157_v1   ;;  %v165_v3 = vld [vmem:[%s2599_s25 + $0x18] sm:$0xff] (%p29_p3)   ;;  %v169_v4 = vld [vmem:[%s2599_s25 + $0x20] sm:$0xff] (%p29_p3)  }
  0x13   : > { %162 = vst [vmem:[%s2604_s26 + $0x10] sm:$0xff] (%p29_p3), %v161_v2   ;;  %v173_v5 = vld [vmem:[%s2599_s25 + $0x28] sm:$0xff] (%p29_p3)   ;;  %166 = vst [vmem:[%s2604_s26 + $0x18] sm:$0xff] (%p29_p3), %v165_v3   ;;  %v177_v6 = vld [vmem:[%s2599_s25 + $0x30] sm:$0xff] (%p29_p3)  }
  0x14   : > { %170 = vst [vmem:[%s2604_s26 + $0x20] sm:$0xff] (%p29_p3), %v169_v4   ;;  %174 = vst [vmem:[%s2604_s26 + $0x28] sm:$0xff] (%p29_p3), %v173_v5   ;;  %v181_v7 = vld [vmem:[%s2599_s25 + $0x38] sm:$0xff] (%p29_p3)   ;;  %v185_v8 = vld [vmem:[%s2599_s25 + $0x40] sm:$0xff] (%p29_p3)  }
  0x15   : > { %178 = vst [vmem:[%s2604_s26 + $0x30] sm:$0xff] %v177_v6   ;;  %182 = vst [vmem:[%s2604_s26 + $0x38] sm:$0xff] %v181_v7   ;;  %v189_v9 = vld [vmem:[%s2599_s25 + $0x48] sm:$0xff]   ;;  %v193_v10 = vld [vmem:[%s2599_s25 + $0x50] sm:$0xff]  }
  0x16   : > { %186 = vst [vmem:[%s2604_s26 + $0x40] sm:$0xff] %v185_v8   ;;  %v197_v11 = vld [vmem:[%s2599_s25 + $0x58] sm:$0xff]   ;;  %190 = vst [vmem:[%s2604_s26 + $0x48] sm:$0xff] %v189_v9   ;;  %v201_v12 = vld [vmem:[%s2599_s25 + $0x60] sm:$0xff]  }
  0x17   : > { %194 = vst [vmem:[%s2604_s26 + $0x50] sm:$0xff] %v193_v10   ;;  %198 = vst [vmem:[%s2604_s26 + $0x58] sm:$0xff] %v197_v11   ;;  %v205_v13 = vld [vmem:[%s2599_s25 + $0x68] sm:$0xff]   ;;  %v209_v14 = vld [vmem:[%s2599_s25 + $0x70] sm:$0xff]  }
  0x18   : > { %202 = vst [vmem:[%s2604_s26 + $0x60] sm:$0xff] %v201_v12   ;;  %206 = vst [vmem:[%s2604_s26 + $0x68] sm:$0xff] %v205_v13   ;;  %v213_v15 = vld [vmem:[%s2599_s25 + $0x78] sm:$0xff]   ;;  %v217_v16 = vld [vmem:[%s2599_s25 + $0x100] sm:$0xff]  }
  0x19   : > { %210 = vst [vmem:[%s2604_s26 + $0x70] sm:$0xff] %v209_v14   ;;  %v221_v17 = vld [vmem:[%s2599_s25 + $0x108] sm:$0xff]   ;;  %214 = vst [vmem:[%s2604_s26 + $0x78] sm:$0xff] %v213_v15   ;;  %v225_v18 = vld [vmem:[%s2599_s25 + $0x110] sm:$0xff]  }
  0x1a   : > { %218 = vst [vmem:[%s2604_s26 + $0x80] sm:$0xff] %v217_v16   ;;  %222 = vst [vmem:[%s2604_s26 + $0x88] sm:$0xff] %v221_v17   ;;  %v229_v19 = vld [vmem:[%s2599_s25 + $0x118] sm:$0xff]   ;;  %v233_v20 = vld [vmem:[%s2599_s25 + $0x120] sm:$0xff]  }
  0x1b   : > { %226 = vst [vmem:[%s2604_s26 + $0x90] sm:$0xff] %v225_v18   ;;  %230 = vst [vmem:[%s2604_s26 + $0x98] sm:$0xff] %v229_v19   ;;  %v237_v21 = vld [vmem:[%s2599_s25 + $0x128] sm:$0xff]   ;;  %v241_v22 = vld [vmem:[%s2599_s25 + $0x130] sm:$0xff]  }
  0x1c   : > { %234 = vst [vmem:[%s2604_s26 + $0xa0] sm:$0xff] %v233_v20   ;;  %v245_v23 = vld [vmem:[%s2599_s25 + $0x138] sm:$0xff]   ;;  %238 = vst [vmem:[%s2604_s26 + $0xa8] sm:$0xff] %v237_v21   ;;  %v249_v24 = vld [vmem:[%s2599_s25 + $0x140] sm:$0xff]  }
  0x1d   : > { %242 = vst [vmem:[%s2604_s26 + $0xb0] sm:$0xff] %v241_v22   ;;  %246 = vst [vmem:[%s2604_s26 + $0xb8] sm:$0xff] %v245_v23   ;;  %v253_v25 = vld [vmem:[%s2599_s25 + $0x148] sm:$0xff]   ;;  %v257_v26 = vld [vmem:[%s2599_s25 + $0x150] sm:$0xff]  }
  0x1e   : > { %250 = vst [vmem:[%s2604_s26 + $0xc0] sm:$0xff] %v249_v24   ;;  %254 = vst [vmem:[%s2604_s26 + $0xc8] sm:$0xff] %v253_v25   ;;  %v261_v27 = vld [vmem:[%s2599_s25 + $0x158] sm:$0xff]   ;;  %v265_v28 = vld [vmem:[%s2599_s25 + $0x160] sm:$0xff]  }
  0x1f   : > { %258 = vst [vmem:[%s2604_s26 + $0xd0] sm:$0xff] %v257_v26   ;;  %v269_v29 = vld [vmem:[%s2599_s25 + $0x168] sm:$0xff]   ;;  %262 = vst [vmem:[%s2604_s26 + $0xd8] sm:$0xff] %v261_v27   ;;  %v273_v30 = vld [vmem:[%s2599_s25 + $0x170] sm:$0xff]  }
  0x20   : > { %266 = vst [vmem:[%s2604_s26 + $0xe0] sm:$0xff] %v265_v28   ;;  %270 = vst [vmem:[%s2604_s26 + $0xe8] sm:$0xff] %v269_v29   ;;  %v277_v31 = vld [vmem:[%s2599_s25 + $0x178] sm:$0xff]   ;;  %v281_v32 = vld [vmem:[%s2599_s25 + $0x200] sm:$0xff]  }
  0x21   : > { %274 = vst [vmem:[%s2604_s26 + $0xf0] sm:$0xff] %v273_v30   ;;  %278 = vst [vmem:[%s2604_s26 + $0xf8] sm:$0xff] %v277_v31   ;;  %v285_v33 = vld [vmem:[%s2599_s25 + $0x208] sm:$0xff]   ;;  %v289_v34 = vld [vmem:[%s2599_s25 + $0x210] sm:$0xff]  }
  0x22   : > { %282 = vst [vmem:[%s2604_s26 + $0x100] sm:$0xff] %v281_v32   ;;  %v293_v35 = vld [vmem:[%s2599_s25 + $0x218] sm:$0xff]   ;;  %286 = vst [vmem:[%s2604_s26 + $0x108] sm:$0xff] %v285_v33   ;;  %v297_v36 = vld [vmem:[%s2599_s25 + $0x220] sm:$0xff]  }
  0x23   : > { %290 = vst [vmem:[%s2604_s26 + $0x110] sm:$0xff] %v289_v34   ;;  %294 = vst [vmem:[%s2604_s26 + $0x118] sm:$0xff] %v293_v35   ;;  %v301_v37 = vld [vmem:[%s2599_s25 + $0x228] sm:$0xff]   ;;  %v305_v38 = vld [vmem:[%s2599_s25 + $0x230] sm:$0xff]  }
  0x24   : > { %298 = vst [vmem:[%s2604_s26 + $0x120] sm:$0xff] %v297_v36   ;;  %302 = vst [vmem:[%s2604_s26 + $0x128] sm:$0xff] %v301_v37   ;;  %v309_v39 = vld [vmem:[%s2599_s25 + $0x238] sm:$0xff]   ;;  %v313_v40 = vld [vmem:[%s2599_s25 + $0x240] sm:$0xff]  }
  0x25   : > { %306 = vst [vmem:[%s2604_s26 + $0x130] sm:$0xff] %v305_v38   ;;  %v317_v41 = vld [vmem:[%s2599_s25 + $0x248] sm:$0xff]   ;;  %310 = vst [vmem:[%s2604_s26 + $0x138] sm:$0xff] %v309_v39   ;;  %v321_v42 = vld [vmem:[%s2599_s25 + $0x250] sm:$0xff]  }
  0x26   : > { %314 = vst [vmem:[%s2604_s26 + $0x140] sm:$0xff] %v313_v40   ;;  %318 = vst [vmem:[%s2604_s26 + $0x148] sm:$0xff] %v317_v41   ;;  %v325_v43 = vld [vmem:[%s2599_s25 + $0x258] sm:$0xff]   ;;  %v329_v44 = vld [vmem:[%s2599_s25 + $0x260] sm:$0xff]  }
  0x27   : > { %322 = vst [vmem:[%s2604_s26 + $0x150] sm:$0xff] %v321_v42   ;;  %326 = vst [vmem:[%s2604_s26 + $0x158] sm:$0xff] %v325_v43   ;;  %v333_v45 = vld [vmem:[%s2599_s25 + $0x268] sm:$0xff]   ;;  %v337_v46 = vld [vmem:[%s2599_s25 + $0x270] sm:$0xff]  }
  0x28   : > { %330 = vst [vmem:[%s2604_s26 + $0x160] sm:$0xff] %v329_v44   ;;  %v341_v47 = vld [vmem:[%s2599_s25 + $0x278] sm:$0xff]   ;;  %334 = vst [vmem:[%s2604_s26 + $0x168] sm:$0xff] %v333_v45   ;;  %v345_v48 = vld [vmem:[%s2599_s25 + $0x300] sm:$0xff]  }
  0x29   : > { %338 = vst [vmem:[%s2604_s26 + $0x170] sm:$0xff] %v337_v46   ;;  %342 = vst [vmem:[%s2604_s26 + $0x178] sm:$0xff] %v341_v47   ;;  %v349_v49 = vld [vmem:[%s2599_s25 + $0x308] sm:$0xff]   ;;  %v353_v50 = vld [vmem:[%s2599_s25 + $0x310] sm:$0xff]  }
  0x2a   : > { %346 = vst [vmem:[%s2604_s26 + $0x180] sm:$0xff] %v345_v48   ;;  %350 = vst [vmem:[%s2604_s26 + $0x188] sm:$0xff] %v349_v49   ;;  %v357_v51 = vld [vmem:[%s2599_s25 + $0x318] sm:$0xff]   ;;  %v361_v52 = vld [vmem:[%s2599_s25 + $0x320] sm:$0xff]  }
  0x2b   : > { %354 = vst [vmem:[%s2604_s26 + $0x190] sm:$0xff] %v353_v50   ;;  %v365_v53 = vld [vmem:[%s2599_s25 + $0x328] sm:$0xff]   ;;  %358 = vst [vmem:[%s2604_s26 + $0x198] sm:$0xff] %v357_v51   ;;  %v369_v54 = vld [vmem:[%s2599_s25 + $0x330] sm:$0xff]  }
  0x2c   : > { %362 = vst [vmem:[%s2604_s26 + $0x1a0] sm:$0xff] %v361_v52   ;;  %366 = vst [vmem:[%s2604_s26 + $0x1a8] sm:$0xff] %v365_v53   ;;  %v373_v55 = vld [vmem:[%s2599_s25 + $0x338] sm:$0xff]   ;;  %v377_v56 = vld [vmem:[%s2599_s25 + $0x340] sm:$0xff]  }
  0x2d   : > { %370 = vst [vmem:[%s2604_s26 + $0x1b0] sm:$0xff] %v369_v54   ;;  %374 = vst [vmem:[%s2604_s26 + $0x1b8] sm:$0xff] %v373_v55   ;;  %v381_v57 = vld [vmem:[%s2599_s25 + $0x348] sm:$0xff]   ;;  %v385_v58 = vld [vmem:[%s2599_s25 + $0x350] sm:$0xff]  }
  0x2e   : > { %378 = vst [vmem:[%s2604_s26 + $0x1c0] sm:$0xff] %v377_v56   ;;  %v389_v59 = vld [vmem:[%s2599_s25 + $0x358] sm:$0xff]   ;;  %382 = vst [vmem:[%s2604_s26 + $0x1c8] sm:$0xff] %v381_v57   ;;  %v393_v60 = vld [vmem:[%s2599_s25 + $0x360] sm:$0xff]  }
  0x2f   : > { %386 = vst [vmem:[%s2604_s26 + $0x1d0] sm:$0xff] %v385_v58   ;;  %390 = vst [vmem:[%s2604_s26 + $0x1d8] sm:$0xff] %v389_v59   ;;  %v397_v61 = vld [vmem:[%s2599_s25 + $0x368] sm:$0xff]   ;;  %v401_v62 = vld [vmem:[%s2599_s25 + $0x370] sm:$0xff]  }
  0x30   : > { %394 = vst [vmem:[%s2604_s26 + $0x1e0] sm:$0xff] %v393_v60   ;;  %398 = vst [vmem:[%s2604_s26 + $0x1e8] sm:$0xff] %v397_v61   ;;  %v405_v63 = vld [vmem:[%s2599_s25 + $0x378] sm:$0xff]  }
  0x31   : > { %402 = vst [vmem:[%s2604_s26 + $0x1f0] sm:$0xff] %v401_v62   ;;  %406 = vst [vmem:[%s2604_s26 + $0x1f8] sm:$0xff] %v405_v63  }
  0x32 PF: > { %p2113_p5 = scmp.ge.s32.totalorder %s2543_s14, 1  ;;  %p686_p6 = scmp.lt.s32.totalorder %s2543_s14, 3 }
  0x34   : > { %p687_p7 = pnand %p2113_p5, %p686_p6 }
  0x36   : > { %690 = sbr.rel (%p687_p7) target bundleno = 438 (0x1b6), region = 69 }
  0x3d   : > { %v2449_v0 = vld [vmem:[%s3103_s1] sm:$0xff]   ;;  %s693_s29 = sand.u32 1, %s2535_s12   ;;  %v2450_v1 = vld [vmem:[%s3103_s1 + $0x8] sm:$0xff]   ;;  %v2451_v2 = vld [vmem:[%s3103_s1 + $0x10] sm:$0xff]   ;;  %s2115_s24 = sshll.u32 %s2106_s15, 5 }
  0x3e   : > { %2265 = vmatprep.subr.bf16.mxu0 %v2449_v0  ;;  %2409 = vmatprep.subr.bf16.mxu1 %v2449_v0  ;;  %s2114_s5 = sshll.u32 %s693_s29, 9  ;;  %v2452_v3 = vld [vmem:[%s3103_s1 + $0x18] sm:$0xff]   ;;  %v2453_v6 = vld [vmem:[%s3103_s1 + $0x20] sm:$0xff]   ;;  %v2454_v7 = vld [vmem:[%s3103_s1 + $0x28] sm:$0xff]   ;;  %p718_p8 = scmp.lt.s32.totalorder %s2115_s24, 63 }
  0x3f   : > { %2266 = vmatpush3.bf16.msra.mxu0 %v2449_v0  ;;  %2417 = vmatpush3.bf16.msra.mxu1 %v2449_v0  ;;  %s2746_s10 = scalar_lea.vmem [#allocation2], %s2114_s5  ;;  %v2455_v8 = vld [vmem:[%s3103_s1 + $0x30] sm:$0xff]   ;;  %v2456_v9 = vld [vmem:[%s3103_s1 + $0x38] sm:$0xff]  }
  0x40   : > { %2267 = vmatprep.subr.bf16.mxu0 %v2450_v1  ;;  %2410 = vmatprep.subr.bf16.mxu1 %v2450_v1  ;;  %v2457_v4 = vld [vmem:[%s2746_s10] sm:$0xff]   ;;  %v2459_v10 = vld [vmem:[%s2746_s10 + $0x8] sm:$0xff]   ;;  %v2461_v12 = vld [vmem:[%s2746_s10 + $0x10] sm:$0xff]   ;;  %s3142_s24 = smov (!%p718_p8, %s2115_s24), 63 }
  0x41   : > { %v2458_v5 = vld [vmem:[%s2746_s10 + $0x100] sm:$0xff]   ;;  %2281 = vmatprep.mubr.bf16.mxu0 %v2457_v4  ;;  %v2460_v11 = vld [vmem:[%s2746_s10 + $0x108] sm:$0xff]   ;;  %v2462_v13 = vld [vmem:[%s2746_s10 + $0x110] sm:$0xff]   ;;  %s2116_s25 = sshll.u32 %s3142_s24, 3 }
  0x42   : > { %2345 = vmatprep.mubr.bf16.mxu1 %v2458_v5  ;;  %v2463_v14 = vld [vmem:[%s2746_s10 + $0x18] sm:$0xff]   ;;  %v2465_v16 = vld [vmem:[%s2746_s10 + $0x20] sm:$0xff]   ;;  %v2467_v18 = vld [vmem:[%s2746_s10 + $0x28] sm:$0xff]   ;;  %s2971_s28 = scalar_lea.vmem %s3105_s3, %s2116_s25 }
  0x43   : > { %2268 = vmatpush3.bf16.msra.mxu0 %v2450_v1  ;;  %2418 = vmatpush3.bf16.msra.mxu1 %v2450_v1  ;;  %v2464_v15 = vld [vmem:[%s2746_s10 + $0x118] sm:$0xff]   ;;  %v2466_v17 = vld [vmem:[%s2746_s10 + $0x120] sm:$0xff]   ;;  %v2468_v19 = vld [vmem:[%s2746_s10 + $0x128] sm:$0xff]  }
  0x44   : > { %2269 = vmatprep.subr.bf16.mxu0 %v2451_v2  ;;  %2411 = vmatprep.subr.bf16.mxu1 %v2451_v2  ;;  %v2469_v20 = vld [vmem:[%s2746_s10 + $0x30] sm:$0xff]   ;;  %v2471_v22 = vld [vmem:[%s2746_s10 + $0x38] sm:$0xff]   ;;  %v2473_v24 = vld [vmem:[%s2746_s10 + $0x40] sm:$0xff]  }
  0x45   : > { %v2470_v21 = vld [vmem:[%s2746_s10 + $0x130] sm:$0xff]   ;;  %v2472_v23 = vld [vmem:[%s2746_s10 + $0x138] sm:$0xff]   ;;  %v2474_v25 = vld [vmem:[%s2746_s10 + $0x140] sm:$0xff]  }
  0x46   : > { %v2475_v26 = vld [vmem:[%s2746_s10 + $0x48] sm:$0xff]   ;;  %v2477_v28 = vld [vmem:[%s2746_s10 + $0x50] sm:$0xff]   ;;  %v2479_v30 = vld [vmem:[%s2746_s10 + $0x58] sm:$0xff]  }
  0x47   : > { %2270 = vmatpush3.bf16.msra.mxu0 %v2451_v2  ;;  %2419 = vmatpush3.bf16.msra.mxu1 %v2451_v2  ;;  %v2476_v27 = vld [vmem:[%s2746_s10 + $0x148] sm:$0xff]   ;;  %v2478_v29 = vld [vmem:[%s2746_s10 + $0x150] sm:$0xff]   ;;  %v2480_v31 = vld [vmem:[%s2746_s10 + $0x158] sm:$0xff]  }
  0x48   : > { %2271 = vmatprep.subr.bf16.mxu0 %v2452_v3  ;;  %2412 = vmatprep.subr.bf16.mxu1 %v2452_v3  ;;  %v2481_v32 = vld [vmem:[%s2746_s10 + $0x60] sm:$0xff]   ;;  %v2483_v34 = vld [vmem:[%s2746_s10 + $0x68] sm:$0xff]   ;;  %v2485_v36 = vld [vmem:[%s2746_s10 + $0x70] sm:$0xff]  }
  0x49   : > { %v2482_v33 = vld [vmem:[%s2746_s10 + $0x160] sm:$0xff]   ;;  %v2484_v35 = vld [vmem:[%s2746_s10 + $0x168] sm:$0xff]   ;;  %v2486_v37 = vld [vmem:[%s2746_s10 + $0x170] sm:$0xff]  }
  0x4a   : > { %v2487_v38 = vld [vmem:[%s2746_s10 + $0x78] sm:$0xff]   ;;  %v2489_v40 = vld [vmem:[%s2746_s10 + $0x80] sm:$0xff]   ;;  %v2491_v42 = vld [vmem:[%s2746_s10 + $0x88] sm:$0xff]  }
  0x4b   : > { %2272 = vmatpush3.bf16.msra.mxu0 %v2452_v3  ;;  %2420 = vmatpush3.bf16.msra.mxu1 %v2452_v3  ;;  %v2488_v39 = vld [vmem:[%s2746_s10 + $0x178] sm:$0xff]   ;;  %v2490_v41 = vld [vmem:[%s2746_s10 + $0x180] sm:$0xff]   ;;  %v2492_v43 = vld [vmem:[%s2746_s10 + $0x188] sm:$0xff]  }
  0x4c   : > { %2273 = vmatprep.subr.bf16.mxu0 %v2453_v6  ;;  %2413 = vmatprep.subr.bf16.mxu1 %v2453_v6  ;;  %v2493_v44 = vld [vmem:[%s2746_s10 + $0x90] sm:$0xff]   ;;  %v2495_v46 = vld [vmem:[%s2746_s10 + $0x98] sm:$0xff]   ;;  %v2497_v48 = vld [vmem:[%s2746_s10 + $0xa0] sm:$0xff]  }
  0x4d   : > { %v2494_v45 = vld [vmem:[%s2746_s10 + $0x190] sm:$0xff]   ;;  %v2496_v47 = vld [vmem:[%s2746_s10 + $0x198] sm:$0xff]   ;;  %v2498_v49 = vld [vmem:[%s2746_s10 + $0x1a0] sm:$0xff]  }
  0x4e   : > { %v2499_v50 = vld [vmem:[%s2746_s10 + $0xa8] sm:$0xff]   ;;  %v2501_v52 = vld [vmem:[%s2746_s10 + $0xb0] sm:$0xff]   ;;  %v2503_v54 = vld [vmem:[%s2746_s10 + $0xb8] sm:$0xff]  }
  0x4f   : > { %2274 = vmatpush3.bf16.msra.mxu0 %v2453_v6  ;;  %2421 = vmatpush3.bf16.msra.mxu1 %v2453_v6  ;;  %v2500_v51 = vld [vmem:[%s2746_s10 + $0x1a8] sm:$0xff]   ;;  %v2502_v53 = vld [vmem:[%s2746_s10 + $0x1b0] sm:$0xff]   ;;  %v2504_v55 = vld [vmem:[%s2746_s10 + $0x1b8] sm:$0xff]  }
  0x50   : > { %2275 = vmatprep.subr.bf16.mxu0 %v2454_v7  ;;  %2414 = vmatprep.subr.bf16.mxu1 %v2454_v7  ;;  %v2505_v56 = vld [vmem:[%s2746_s10 + $0xc0] sm:$0xff]   ;;  %v2507_v58 = vld [vmem:[%s2746_s10 + $0xc8] sm:$0xff]   ;;  %v2509_v60 = vld [vmem:[%s2746_s10 + $0xd0] sm:$0xff]  }
  0x51   : > { %v2506_v57 = vld [vmem:[%s2746_s10 + $0x1c0] sm:$0xff]   ;;  %v2508_v59 = vld [vmem:[%s2746_s10 + $0x1c8] sm:$0xff]   ;;  %v2510_v61 = vld [vmem:[%s2746_s10 + $0x1d0] sm:$0xff]  }
  0x52   : > { %v2511_v62 = vld [vmem:[%s2746_s10 + $0xd8] sm:$0xff]   ;;  %v2513_v0 = vld [vmem:[%s2746_s10 + $0xe0] sm:$0xff]   ;;  %v2515_v2 = vld [vmem:[%s2746_s10 + $0xe8] sm:$0xff]  }
  0x53   : > { %2276 = vmatpush3.bf16.msra.mxu0 %v2454_v7  ;;  %2422 = vmatpush3.bf16.msra.mxu1 %v2454_v7  ;;  %v2512_v63 = vld [vmem:[%s2746_s10 + $0x1d8] sm:$0xff]   ;;  %v2514_v1 = vld [vmem:[%s2746_s10 + $0x1e0] sm:$0xff]   ;;  %v2516_v3 = vld [vmem:[%s2746_s10 + $0x1e8] sm:$0xff]  }
  0x54   : > { %2277 = vmatprep.subr.bf16.mxu0 %v2455_v8  ;;  %2415 = vmatprep.subr.bf16.mxu1 %v2455_v8  ;;  %v2517_v4 = vld [vmem:[%s2746_s10 + $0xf0] sm:$0xff]   ;;  %v2519_v6 = vld [vmem:[%s2746_s10 + $0xf8] sm:$0xff]  }
  0x55   : > { %v2518_v5 = vld [vmem:[%s2746_s10 + $0x1f0] sm:$0xff]   ;;  %v2520_v7 = vld [vmem:[%s2746_s10 + $0x1f8] sm:$0xff]  }
  0x57   : > { %2278 = vmatpush3.bf16.msra.mxu0 %v2455_v8  ;;  %2423 = vmatpush3.bf16.msra.mxu1 %v2455_v8 }
  0x58   : > { %2279 = vmatprep.subr.bf16.mxu0 %v2456_v9  ;;  %2416 = vmatprep.subr.bf16.mxu1 %v2456_v9 }
  0x5b   : > { %2280 = vmatpush3.bf16.msra.mxu0 %v2456_v9  ;;  %2424 = vmatpush3.bf16.msra.mxu1 %v2456_v9 }
  0x5e   : > { %2282 = vmatmul.mubr.bf16.vlgmr.msra.gmra.mrb[0].mxu0 %v2459_v10  ;;  %2346 = vmatmul.mubr.bf16.vlgmr.msra.gmra.mrb[0].mxu1 %v2460_v11 }
  0x5f   : > { %2285 = vmatprep.mubr.bf16.mxu0 %v2461_v12  ;;  %2349 = vmatprep.mubr.bf16.mxu1 %v2462_v13 }
  0x66   : > { %2286 = vmatmul.mubr.bf16.gmra.mrb[4].mxu0 %v2463_v14  ;;  %2350 = vmatmul.mubr.bf16.gmra.mrb[4].mxu1 %v2464_v15 }
  0x67   : > { %2289 = vmatprep.mubr.bf16.mxu0 %v2465_v16  ;;  %2353 = vmatprep.mubr.bf16.mxu1 %v2466_v17 }
  0x6e   : > { %2290 = vmatmul.mubr.bf16.gmra.mrb[8].mxu0 %v2467_v18  ;;  %2354 = vmatmul.mubr.bf16.gmra.mrb[8].mxu1 %v2468_v19 }
  0x6f   : > { %2293 = vmatprep.mubr.bf16.mxu0 %v2469_v20  ;;  %2357 = vmatprep.mubr.bf16.mxu1 %v2470_v21 }
  0x76   : > { %2294 = vmatmul.mubr.bf16.gmra.mrb[12].mxu0 %v2471_v22  ;;  %2358 = vmatmul.mubr.bf16.gmra.mrb[12].mxu1 %v2472_v23 }
  0x77   : > { %2297 = vmatprep.mubr.bf16.mxu0 %v2473_v24  ;;  %2361 = vmatprep.mubr.bf16.mxu1 %v2474_v25 }
  0x7e   : > { %2298 = vmatmul.mubr.bf16.gmra.mrb[16].mxu0 %v2475_v26  ;;  %2362 = vmatmul.mubr.bf16.gmra.mrb[16].mxu1 %v2476_v27 }
  0x7f   : > { %2301 = vmatprep.mubr.bf16.mxu0 %v2477_v28  ;;  %2365 = vmatprep.mubr.bf16.mxu1 %v2478_v29 }
  0x86   : > { %2302 = vmatmul.mubr.bf16.gmra.mrb[20].mxu0 %v2479_v30  ;;  %2366 = vmatmul.mubr.bf16.gmra.mrb[20].mxu1 %v2480_v31 }
  0x87   : > { %2305 = vmatprep.mubr.bf16.mxu0 %v2481_v32  ;;  %2369 = vmatprep.mubr.bf16.mxu1 %v2482_v33 }
  0x8e   : > { %2306 = vmatmul.mubr.bf16.gmra.mrb[24].mxu0 %v2483_v34  ;;  %2370 = vmatmul.mubr.bf16.gmra.mrb[24].mxu1 %v2484_v35 }
  0x8f   : > { %2309 = vmatprep.mubr.bf16.mxu0 %v2485_v36  ;;  %2373 = vmatprep.mubr.bf16.mxu1 %v2486_v37 }
  0x96   : > { %2310 = vmatmul.mubr.bf16.gmra.mrb[28].mxu0 %v2487_v38  ;;  %2374 = vmatmul.mubr.bf16.gmra.mrb[28].mxu1 %v2488_v39 }
  0x97   : > { %2313 = vmatprep.mubr.bf16.mxu0 %v2489_v40  ;;  %2377 = vmatprep.mubr.bf16.mxu1 %v2490_v41 }
  0x9e   : > { %2314 = vmatmul.mubr.bf16.gmra.mrb[32].mxu0 %v2491_v42  ;;  %2378 = vmatmul.mubr.bf16.gmra.mrb[32].mxu1 %v2492_v43 }
  0x9f   : > { %2317 = vmatprep.mubr.bf16.mxu0 %v2493_v44  ;;  %2381 = vmatprep.mubr.bf16.mxu1 %v2494_v45 }
  0xa6   : > { %2318 = vmatmul.mubr.bf16.gmra.mrb[36].mxu0 %v2495_v46  ;;  %2382 = vmatmul.mubr.bf16.gmra.mrb[36].mxu1 %v2496_v47 }
  0xa7   : > { %2321 = vmatprep.mubr.bf16.mxu0 %v2497_v48  ;;  %2385 = vmatprep.mubr.bf16.mxu1 %v2498_v49 }
  0xae   : > { %2322 = vmatmul.mubr.bf16.gmra.mrb[40].mxu0 %v2499_v50  ;;  %2386 = vmatmul.mubr.bf16.gmra.mrb[40].mxu1 %v2500_v51 }
  0xaf   : > { %2325 = vmatprep.mubr.bf16.mxu0 %v2501_v52  ;;  %2389 = vmatprep.mubr.bf16.mxu1 %v2502_v53 }
  0xb6   : > { %2326 = vmatmul.mubr.bf16.gmra.mrb[44].mxu0 %v2503_v54  ;;  %2390 = vmatmul.mubr.bf16.gmra.mrb[44].mxu1 %v2504_v55 }
  0xb7   : > { %2329 = vmatprep.mubr.bf16.mxu0 %v2505_v56  ;;  %2393 = vmatprep.mubr.bf16.mxu1 %v2506_v57 }
  0xbe   : > { %2330 = vmatmul.mubr.bf16.gmra.mrb[48].mxu0 %v2507_v58  ;;  %2394 = vmatmul.mubr.bf16.gmra.mrb[48].mxu1 %v2508_v59 }
  0xbf   : > { %2333 = vmatprep.mubr.bf16.mxu0 %v2509_v60  ;;  %2397 = vmatprep.mubr.bf16.mxu1 %v2510_v61 }
  0xc6   : > { %2334 = vmatmul.mubr.bf16.gmra.mrb[52].mxu0 %v2511_v62  ;;  %2398 = vmatmul.mubr.bf16.gmra.mrb[52].mxu1 %v2512_v63 }
  0xc7   : > { %2337 = vmatprep.mubr.bf16.mxu0 %v2513_v0  ;;  %2401 = vmatprep.mubr.bf16.mxu1 %v2514_v1 }
  0xce   : > { %2338 = vmatmul.mubr.bf16.gmra.mrb[56].mxu0 %v2515_v2  ;;  %2402 = vmatmul.mubr.bf16.gmra.mrb[56].mxu1 %v2516_v3 }
  0xcf   : > { %2341 = vmatprep.mubr.bf16.mxu0 %v2517_v4  ;;  %2405 = vmatprep.mubr.bf16.mxu1 %v2518_v5 }
  0xd6   : > { %2342 = vmatmul.mubr.bf16.gmra.mrb[60].mxu0 %v2519_v6  ;;  %2406 = vmatmul.mubr.bf16.gmra.mrb[60].mxu1 %v2520_v7 }
 0x131   : > { %v2824_v8 = vpop.f32.mrb[0].mxu0  ;;  %v2826_v9 = vpop.f32.mrb[0].mxu1 }
 0x132   : > { %v2828_v10 = vpop.f32.mrb[1].mxu0  ;;  %v2830_v11 = vpop.f32.mrb[1].mxu1 }
 0x133   : > { %v2832_v12 = vpop.f32.mrb[2].mxu0  ;;  %v2834_v13 = vpop.f32.mrb[2].mxu1 }
 0x134   : > { %v2836_v14 = vpop.f32.mrb[3].mxu0  ;;  %v2838_v15 = vpop.f32.mrb[3].mxu1 }
 0x139   : > { %v2840_v16 = vpop.f32.mrb[4].mxu0  ;;  %v2842_v17 = vpop.f32.mrb[4].mxu1 }
 0x13a   : > { %v2844_v18 = vpop.f32.mrb[5].mxu0  ;;  %v2846_v19 = vpop.f32.mrb[5].mxu1 }
 0x13b   : > { %v2848_v20 = vpop.f32.mrb[6].mxu0  ;;  %v2850_v21 = vpop.f32.mrb[6].mxu1 }
 0x13c   : > { %v2852_v22 = vpop.f32.mrb[7].mxu0  ;;  %v2854_v23 = vpop.f32.mrb[7].mxu1 }
 0x141   : > { %v2856_v24 = vpop.f32.mrb[8].mxu0  ;;  %v2858_v25 = vpop.f32.mrb[8].mxu1 }
 0x142   : > { %v2860_v26 = vpop.f32.mrb[9].mxu0  ;;  %v2862_v27 = vpop.f32.mrb[9].mxu1 }
 0x143   : > { %v2864_v28 = vpop.f32.mrb[10].mxu0  ;;  %v2866_v29 = vpop.f32.mrb[10].mxu1 }
 0x144   : > { %v2868_v30 = vpop.f32.mrb[11].mxu0  ;;  %v2870_v31 = vpop.f32.mrb[11].mxu1 }
 0x149   : > { %v2872_v32 = vpop.f32.mrb[12].mxu0  ;;  %v2874_v33 = vpop.f32.mrb[12].mxu1 }
 0x14a   : > { %v2876_v34 = vpop.f32.mrb[13].mxu0  ;;  %v2878_v35 = vpop.f32.mrb[13].mxu1 }
 0x14b   : > { %v2880_v36 = vpop.f32.mrb[14].mxu0  ;;  %v2882_v37 = vpop.f32.mrb[14].mxu1 }
 0x14c   : > { %v2884_v38 = vpop.f32.mrb[15].mxu0  ;;  %v2886_v39 = vpop.f32.mrb[15].mxu1 }
 0x151   : > { %v2888_v40 = vpop.f32.mrb[16].mxu0  ;;  %v2890_v41 = vpop.f32.mrb[16].mxu1 }
 0x152   : > { %v2892_v42 = vpop.f32.mrb[17].mxu0  ;;  %v2894_v43 = vpop.f32.mrb[17].mxu1 }
 0x153   : > { %v2896_v44 = vpop.f32.mrb[18].mxu0  ;;  %v2898_v45 = vpop.f32.mrb[18].mxu1 }
 0x154   : > { %v2900_v46 = vpop.f32.mrb[19].mxu0  ;;  %v2902_v47 = vpop.f32.mrb[19].mxu1 }
 0x159   : > { %v2904_v48 = vpop.f32.mrb[20].mxu0  ;;  %v2906_v49 = vpop.f32.mrb[20].mxu1 }
 0x15a   : > { %v2908_v50 = vpop.f32.mrb[21].mxu0  ;;  %v2910_v51 = vpop.f32.mrb[21].mxu1 }
 0x15b   : > { %v2912_v52 = vpop.f32.mrb[22].mxu0  ;;  %v2914_v53 = vpop.f32.mrb[22].mxu1 }
 0x15c   : > { %v2916_v54 = vpop.f32.mrb[23].mxu0  ;;  %v2918_v55 = vpop.f32.mrb[23].mxu1 }
 0x161   : > { %v2920_v56 = vpop.f32.mrb[24].mxu0  ;;  %v2922_v57 = vpop.f32.mrb[24].mxu1 }
 0x162   : > { %3106 = vst [vmem:[#allocation3_spill] sm:$0xff] %v2920_v56  ;;  %3107 = vst [vmem:[#allocation4_spill] sm:$0xff] %v2922_v57  ;;  %v2924_v58 = vpop.f32.mrb[25].mxu0  ;;  %v2926_v59 = vpop.f32.mrb[25].mxu1 }
 0x163   : > { %3108 = vst [vmem:[#allocation5_spill] sm:$0xff] %v2924_v58  ;;  %3109 = vst [vmem:[#allocation6_spill] sm:$0xff] %v2926_v59  ;;  %v2928_v60 = vpop.f32.mrb[26].mxu0  ;;  %v2930_v61 = vpop.f32.mrb[26].mxu1 }
 0x164   : > { %3110 = vst [vmem:[#allocation7_spill] sm:$0xff] %v2928_v60  ;;  %3111 = vst [vmem:[#allocation8_spill] sm:$0xff] %v2930_v61  ;;  %v2932_v62 = vpop.f32.mrb[27].mxu0  ;;  %v2934_v63 = vpop.f32.mrb[27].mxu1 }
 0x165   : > { %3112 = vst [vmem:[#allocation9_spill] sm:$0xff] %v2932_v62  ;;  %3113 = vst [vmem:[#allocation10_spill] sm:$0xff] %v2934_v63 }
 0x169   : > { %v2936_v0 = vpop.f32.mrb[28].mxu0  ;;  %v2938_v1 = vpop.f32.mrb[28].mxu1 }
 0x16a   : > { %3114 = vst [vmem:[#allocation11_spill] sm:$0xff] %v2936_v0  ;;  %3115 = vst [vmem:[#allocation12_spill] sm:$0xff] %v2938_v1  ;;  %v2942_v2 = vpop.f32.mrb[29].mxu0  ;;  %v2944_v3 = vpop.f32.mrb[29].mxu1 }
 0x16b   : > { %3116 = vst [vmem:[#allocation13_spill] sm:$0xff] %v2942_v2  ;;  %3117 = vst [vmem:[#allocation14_spill] sm:$0xff] %v2944_v3  ;;  %v2946_v4 = vpop.f32.mrb[30].mxu0  ;;  %v2948_v5 = vpop.f32.mrb[30].mxu1 }
 0x16c   : > { %3118 = vst [vmem:[#allocation15_spill] sm:$0xff] %v2946_v4  ;;  %3119 = vst [vmem:[#allocation16_spill] sm:$0xff] %v2948_v5  ;;  %v2950_v6 = vpop.f32.mrb[31].mxu0  ;;  %v2952_v7 = vpop.f32.mrb[31].mxu1  ;;  %v2959_v4 = vld [vmem:[%s3104_s2] ss:$0 sm:$0xff] }
 0x16d   : > { %3120 = vst [vmem:[#allocation17_spill] sm:$0xff] %v2950_v6  ;;  %3121 = vst [vmem:[#allocation18_spill] sm:$0xff] %v2952_v7 }
 0x171   : > { %v2315_v63 = vpop.f32.mrb[32].mxu0  ;;  %v2379_v0 = vpop.f32.mrb[32].mxu1 }
 0x172   : > { %v1847_v1 = vmax.f32 %v2824_v8, %v2315_v63  ;;  %v1879_v62 = vmax.f32 %v2826_v9, %v2379_v0  ;;  %v1462_v61 = vpop.f32.mrb[33].mxu0  ;;  %v1718_v2 = vpop.f32.mrb[33].mxu1 }
 0x173   : > { %v1845_v5 = vmax.f32 %v2828_v10, %v1462_v61  ;;  %v1877_v6 = vmax.f32 %v2830_v11, %v1718_v2  ;;  %v2316_v7 = vpop.f32.mrb[34].mxu0  ;;  %v2380_v3 = vpop.f32.mrb[34].mxu1 }
 0x174   : > { %v1911_v60 = vmax.f32 %v1847_v1, %v1879_v62  ;;  %v1848_v59 = vmax.f32 %v2832_v12, %v2316_v7  ;;  %v1880_v8 = vmax.f32 %v2834_v13, %v2380_v3  ;;  %v1465_v9 = vpop.f32.mrb[35].mxu0  ;;  %v1721_v63 = vpop.f32.mrb[35].mxu1 }
 0x175   : > { %v1909_v0 = vmax.f32 %v1845_v5, %v1877_v6  ;;  %v1846_v58 = vmax.f32 %v2836_v14, %v1465_v9  ;;  %v1878_v57 = vmax.f32 %v2838_v15, %v1721_v63 }
 0x176   : > { %v1950_v56 = vadd.f32 %v2959_v4, %v1911_v60  ;;  %v1912_v10 = vmax.f32 %v1848_v59, %v1880_v8 }
 0x177   : > { %v1948_v11 = vadd.f32 %v2959_v4, %v1909_v0  ;;  %v1910_v12 = vmax.f32 %v1846_v58, %v1878_v57 }
 0x178   : > { %v1982_v13 = vmax.f32 %v1950_v56, 0.0  ;;  %v1951_v61 = vadd.f32 %v2959_v4, %v1912_v10 }
 0x179   : > { %v1980_v62 = vmax.f32 %v1948_v11, 0.0  ;;  %v1949_v14 = vadd.f32 %v2959_v4, %v1910_v12  ;;  %v2319_v15 = vpop.f32.mrb[36].mxu0  ;;  %v2383_v60 = vpop.f32.mrb[36].mxu1 }
 0x17a   : > { %2014 = vst [vmem:[%s2971_s28 + $0x10] sm:$0xff] %v1982_v13  ;;  %v1983_v59 = vmax.f32 %v1951_v61, 0.0  ;;  %v1851_v1 = vmax.f32 %v2840_v16, %v2319_v15  ;;  %v1883_v2 = vmax.f32 %v2842_v17, %v2383_v60  ;;  %v1478_v3 = vpop.f32.mrb[37].mxu0  ;;  %v1734_v5 = vpop.f32.mrb[37].mxu1 }
 0x17b   : > { %2012 = vst [vmem:[%s2971_s28] sm:$0xff] %v1980_v62  ;;  %v1981_v57 = vmax.f32 %v1949_v14, 0.0  ;;  %v1849_v56 = vmax.f32 %v2844_v18, %v1478_v3  ;;  %v1881_v58 = vmax.f32 %v2846_v19, %v1734_v5  ;;  %v2320_v6 = vpop.f32.mrb[38].mxu0  ;;  %v2384_v7 = vpop.f32.mrb[38].mxu1 }
 0x17c   : > { %2015 = vst [vmem:[%s2971_s28 + $0x18] sm:$0xff] %v1983_v59  ;;  %v1915_v8 = vmax.f32 %v1851_v1, %v1883_v2  ;;  %v1852_v9 = vmax.f32 %v2848_v20, %v2320_v6  ;;  %v1884_v63 = vmax.f32 %v2850_v21, %v2384_v7  ;;  %v1481_v16 = vpop.f32.mrb[39].mxu0  ;;  %v1737_v0 = vpop.f32.mrb[39].mxu1 }
 0x17d   : > { %2013 = vst [vmem:[%s2971_s28 + $0x8] sm:$0xff] %v1981_v57  ;;  %v1913_v17 = vmax.f32 %v1849_v56, %v1881_v58  ;;  %v1850_v10 = vmax.f32 %v2852_v22, %v1481_v16  ;;  %v1882_v11 = vmax.f32 %v2854_v23, %v1737_v0 }
 0x17e   : > { %v1954_v18 = vadd.f32 %v2959_v4, %v1915_v8  ;;  %v1916_v19 = vmax.f32 %v1852_v9, %v1884_v63 }
 0x17f   : > { %v1952_v12 = vadd.f32 %v2959_v4, %v1913_v17  ;;  %v1914_v13 = vmax.f32 %v1850_v10, %v1882_v11 }
 0x180   : > { %v1986_v61 = vmax.f32 %v1954_v18, 0.0  ;;  %v1955_v20 = vadd.f32 %v2959_v4, %v1916_v19 }
 0x181   : > { %v1984_v21 = vmax.f32 %v1952_v12, 0.0  ;;  %v1953_v62 = vadd.f32 %v2959_v4, %v1914_v13  ;;  %v2323_v14 = vpop.f32.mrb[40].mxu0  ;;  %v2387_v15 = vpop.f32.mrb[40].mxu1 }
 0x182   : > { %2018 = vst [vmem:[%s2971_s28 + $0x30] sm:$0xff] %v1986_v61  ;;  %v1987_v22 = vmax.f32 %v1955_v20, 0.0  ;;  %v1855_v23 = vmax.f32 %v2856_v24, %v2323_v14  ;;  %v1887_v60 = vmax.f32 %v2858_v25, %v2387_v15  ;;  %v1494_v59 = vpop.f32.mrb[41].mxu0  ;;  %v1750_v1 = vpop.f32.mrb[41].mxu1 }
 0x183   : > { %2016 = vst [vmem:[%s2971_s28 + $0x20] sm:$0xff] %v1984_v21  ;;  %v1985_v2 = vmax.f32 %v1953_v62, 0.0  ;;  %v1853_v3 = vmax.f32 %v2860_v26, %v1494_v59  ;;  %v1885_v5 = vmax.f32 %v2862_v27, %v1750_v1  ;;  %v2324_v57 = vpop.f32.mrb[42].mxu0  ;;  %v2388_v56 = vpop.f32.mrb[42].mxu1 }
 0x184   : > { %2019 = vst [vmem:[%s2971_s28 + $0x38] sm:$0xff] %v1987_v22  ;;  %v1919_v58 = vmax.f32 %v1855_v23, %v1887_v60  ;;  %v1856_v6 = vmax.f32 %v2864_v28, %v2324_v57  ;;  %v1888_v7 = vmax.f32 %v2866_v29, %v2388_v56  ;;  %v1497_v24 = vpop.f32.mrb[43].mxu0  ;;  %v1753_v8 = vpop.f32.mrb[43].mxu1 }
 0x185   : > { %2017 = vst [vmem:[%s2971_s28 + $0x28] sm:$0xff] %v1985_v2  ;;  %v1917_v25 = vmax.f32 %v1853_v3, %v1885_v5  ;;  %v1854_v9 = vmax.f32 %v2868_v30, %v1497_v24  ;;  %v1886_v63 = vmax.f32 %v2870_v31, %v1753_v8 }
 0x186   : > { %v1958_v26 = vadd.f32 %v2959_v4, %v1919_v58  ;;  %v1920_v27 = vmax.f32 %v1856_v6, %v1888_v7 }
 0x187   : > { %v1956_v16 = vadd.f32 %v2959_v4, %v1917_v25  ;;  %v1918_v0 = vmax.f32 %v1854_v9, %v1886_v63 }
 0x188   : > { %v1990_v17 = vmax.f32 %v1958_v26, 0.0  ;;  %v1959_v28 = vadd.f32 %v2959_v4, %v1920_v27 }
 0x189   : > { %v1988_v29 = vmax.f32 %v1956_v16, 0.0  ;;  %v1957_v10 = vadd.f32 %v2959_v4, %v1918_v0  ;;  %v2327_v11 = vpop.f32.mrb[44].mxu0  ;;  %v2391_v18 = vpop.f32.mrb[44].mxu1 }
 0x18a   : > { %2022 = vst [vmem:[%s2971_s28 + $0x50] sm:$0xff] %v1990_v17  ;;  %v1991_v30 = vmax.f32 %v1959_v28, 0.0  ;;  %v1859_v31 = vmax.f32 %v2872_v32, %v2327_v11  ;;  %v1891_v19 = vmax.f32 %v2874_v33, %v2391_v18  ;;  %v1510_v12 = vpop.f32.mrb[45].mxu0  ;;  %v1766_v13 = vpop.f32.mrb[45].mxu1 }
 0x18b   : > { %2020 = vst [vmem:[%s2971_s28 + $0x40] sm:$0xff] %v1988_v29  ;;  %v1989_v61 = vmax.f32 %v1957_v10, 0.0  ;;  %v1857_v20 = vmax.f32 %v2876_v34, %v1510_v12  ;;  %v1889_v21 = vmax.f32 %v2878_v35, %v1766_v13  ;;  %v2328_v62 = vpop.f32.mrb[46].mxu0  ;;  %v2392_v14 = vpop.f32.mrb[46].mxu1 }
 0x18c   : > { %2023 = vst [vmem:[%s2971_s28 + $0x58] sm:$0xff] %v1991_v30  ;;  %v1923_v15 = vmax.f32 %v1859_v31, %v1891_v19  ;;  %v1860_v22 = vmax.f32 %v2880_v36, %v2328_v62  ;;  %v1892_v23 = vmax.f32 %v2882_v37, %v2392_v14  ;;  %v1513_v32 = vpop.f32.mrb[47].mxu0  ;;  %v1769_v60 = vpop.f32.mrb[47].mxu1 }
 0x18d   : > { %2021 = vst [vmem:[%s2971_s28 + $0x48] sm:$0xff] %v1989_v61  ;;  %v1921_v33 = vmax.f32 %v1857_v20, %v1889_v21  ;;  %v1858_v59 = vmax.f32 %v2884_v38, %v1513_v32  ;;  %v1890_v1 = vmax.f32 %v2886_v39, %v1769_v60 }
 0x18e   : > { %v1962_v34 = vadd.f32 %v2959_v4, %v1923_v15  ;;  %v1924_v35 = vmax.f32 %v1860_v22, %v1892_v23 }
 0x18f   : > { %v1960_v2 = vadd.f32 %v2959_v4, %v1921_v33  ;;  %v1922_v3 = vmax.f32 %v1858_v59, %v1890_v1 }
 0x190   : > { %v1994_v5 = vmax.f32 %v1962_v34, 0.0  ;;  %v1963_v36 = vadd.f32 %v2959_v4, %v1924_v35 }
 0x191   : > { %v1992_v37 = vmax.f32 %v1960_v2, 0.0  ;;  %v1961_v57 = vadd.f32 %v2959_v4, %v1922_v3  ;;  %v2331_v56 = vpop.f32.mrb[48].mxu0  ;;  %v2395_v58 = vpop.f32.mrb[48].mxu1 }
 0x192   : > { %2026 = vst [vmem:[%s2971_s28 + $0x70] sm:$0xff] %v1994_v5  ;;  %v1995_v38 = vmax.f32 %v1963_v36, 0.0  ;;  %v1863_v39 = vmax.f32 %v2888_v40, %v2331_v56  ;;  %v1895_v6 = vmax.f32 %v2890_v41, %v2395_v58  ;;  %v1526_v7 = vpop.f32.mrb[49].mxu0  ;;  %v1782_v24 = vpop.f32.mrb[49].mxu1  ;;  %v3122_v36 = vld [vmem:[#allocation3_spill] sm:$0xff] }
 0x193   : > { %2024 = vst [vmem:[%s2971_s28 + $0x60] sm:$0xff] %v1992_v37  ;;  %v1993_v8 = vmax.f32 %v1961_v57, 0.0  ;;  %v1861_v25 = vmax.f32 %v2892_v42, %v1526_v7  ;;  %v1893_v9 = vmax.f32 %v2894_v43, %v1782_v24  ;;  %v2332_v63 = vpop.f32.mrb[50].mxu0  ;;  %v2396_v26 = vpop.f32.mrb[50].mxu1  ;;  %v3123_v37 = vld [vmem:[#allocation4_spill] sm:$0xff]  ;;  %v3125_v7 = vld [vmem:[#allocation6_spill] sm:$0xff] }
 0x194   : > { %2027 = vst [vmem:[%s2971_s28 + $0x78] sm:$0xff] %v1995_v38  ;;  %v1927_v27 = vmax.f32 %v1863_v39, %v1895_v6  ;;  %v1864_v16 = vmax.f32 %v2896_v44, %v2332_v63  ;;  %v1896_v0 = vmax.f32 %v2898_v45, %v2396_v26  ;;  %v1529_v40 = vpop.f32.mrb[51].mxu0  ;;  %v1785_v17 = vpop.f32.mrb[51].mxu1  ;;  %v3124_v39 = vld [vmem:[#allocation5_spill] sm:$0xff]  ;;  %v3126_v63 = vld [vmem:[#allocation7_spill] sm:$0xff] }
 0x195   : > { %2025 = vst [vmem:[%s2971_s28 + $0x68] sm:$0xff] %v1993_v8  ;;  %v1925_v41 = vmax.f32 %v1861_v25, %v1893_v9  ;;  %v1862_v28 = vmax.f32 %v2900_v46, %v1529_v40  ;;  %v1894_v29 = vmax.f32 %v2902_v47, %v1785_v17 }
 0x196   : > { %v1966_v42 = vadd.f32 %v2959_v4, %v1927_v27  ;;  %v1928_v43 = vmax.f32 %v1864_v16, %v1896_v0  ;;  %v3127_v27 = vld [vmem:[#allocation8_spill] sm:$0xff] }
 0x197   : > { %v1964_v10 = vadd.f32 %v2959_v4, %v1925_v41  ;;  %v1926_v11 = vmax.f32 %v1862_v28, %v1894_v29  ;;  %v3128_v41 = vld [vmem:[#allocation9_spill] sm:$0xff]  ;;  %v3129_v29 = vld [vmem:[#allocation10_spill] sm:$0xff] }
 0x198   : > { %v1998_v18 = vmax.f32 %v1966_v42, 0.0  ;;  %v1967_v44 = vadd.f32 %v2959_v4, %v1928_v43 }
 0x199   : > { %v1996_v45 = vmax.f32 %v1964_v10, 0.0  ;;  %v1965_v30 = vadd.f32 %v2959_v4, %v1926_v11  ;;  %v2335_v31 = vpop.f32.mrb[52].mxu0  ;;  %v2399_v19 = vpop.f32.mrb[52].mxu1 }
 0x19a   : > { %2030 = vst [vmem:[%s2971_s28 + $0x90] sm:$0xff] %v1998_v18  ;;  %v1999_v46 = vmax.f32 %v1967_v44, 0.0  ;;  %v1867_v47 = vmax.f32 %v2904_v48, %v2335_v31  ;;  %v1899_v12 = vmax.f32 %v2906_v49, %v2399_v19  ;;  %v1542_v13 = vpop.f32.mrb[53].mxu0  ;;  %v1798_v61 = vpop.f32.mrb[53].mxu1 }
 0x19b   : > { %2028 = vst [vmem:[%s2971_s28 + $0x80] sm:$0xff] %v1996_v45  ;;  %v1997_v20 = vmax.f32 %v1965_v30, 0.0  ;;  %v1865_v21 = vmax.f32 %v2908_v50, %v1542_v13  ;;  %v1897_v62 = vmax.f32 %v2910_v51, %v1798_v61  ;;  %v2336_v14 = vpop.f32.mrb[54].mxu0  ;;  %v2400_v15 = vpop.f32.mrb[54].mxu1  ;;  %v3131_v61 = vld [vmem:[#allocation12_spill] sm:$0xff] }
 0x19c   : > { %2031 = vst [vmem:[%s2971_s28 + $0x98] sm:$0xff] %v1999_v46  ;;  %v1931_v22 = vmax.f32 %v1867_v47, %v1899_v12  ;;  %v1868_v23 = vmax.f32 %v2912_v52, %v2336_v14  ;;  %v1900_v32 = vmax.f32 %v2914_v53, %v2400_v15  ;;  %v1545_v48 = vpop.f32.mrb[55].mxu0  ;;  %v1801_v60 = vpop.f32.mrb[55].mxu1  ;;  %v3130_v12 = vld [vmem:[#allocation11_spill] sm:$0xff]  ;;  %v3132_v15 = vld [vmem:[#allocation13_spill] sm:$0xff] }
 0x19d   : > { %2029 = vst [vmem:[%s2971_s28 + $0x88] sm:$0xff] %v1997_v20  ;;  %v1929_v49 = vmax.f32 %v1865_v21, %v1897_v62  ;;  %v1866_v33 = vmax.f32 %v2916_v54, %v1545_v48  ;;  %v1898_v59 = vmax.f32 %v2918_v55, %v1801_v60 }
 0x19e   : > { %v1970_v50 = vadd.f32 %v2959_v4, %v1931_v22  ;;  %v1932_v51 = vmax.f32 %v1868_v23, %v1900_v32  ;;  %v3133_v23 = vld [vmem:[#allocation14_spill] sm:$0xff] }
 0x19f   : > { %v1968_v1 = vadd.f32 %v2959_v4, %v1929_v49  ;;  %v1930_v34 = vmax.f32 %v1866_v33, %v1898_v59  ;;  %v3134_v33 = vld [vmem:[#allocation15_spill] sm:$0xff] }
 0x1a0   : > { %v2002_v35 = vmax.f32 %v1970_v50, 0.0  ;;  %v1971_v52 = vadd.f32 %v2959_v4, %v1932_v51  ;;  %v3135_v50 = vld [vmem:[#allocation16_spill] sm:$0xff] }
 0x1a1   : > { %v2000_v53 = vmax.f32 %v1968_v1, 0.0  ;;  %v1969_v2 = vadd.f32 %v2959_v4, %v1930_v34  ;;  %v2339_v3 = vpop.f32.mrb[56].mxu0  ;;  %v2403_v5 = vpop.f32.mrb[56].mxu1 }
 0x1a2   : > { %2034 = vst [vmem:[%s2971_s28 + $0xb0] sm:$0xff] %v2002_v35  ;;  %v2003_v54 = vmax.f32 %v1971_v52, 0.0  ;;  %v1871_v55 = vmax.f32 %v3122_v36, %v2339_v3  ;;  %v1903_v57 = vmax.f32 %v3123_v37, %v2403_v5  ;;  %v1558_v56 = vpop.f32.mrb[57].mxu0  ;;  %v1814_v58 = vpop.f32.mrb[57].mxu1  ;;  %v3136_v52 = vld [vmem:[#allocation17_spill] sm:$0xff] }
 0x1a3   : > { %2032 = vst [vmem:[%s2971_s28 + $0xa0] sm:$0xff] %v2000_v53  ;;  %v2001_v38 = vmax.f32 %v1969_v2, 0.0  ;;  %v1869_v6 = vmax.f32 %v3124_v39, %v1558_v56  ;;  %v1901_v24 = vmax.f32 %v3125_v7, %v1814_v58  ;;  %v2340_v8 = vpop.f32.mrb[58].mxu0  ;;  %v2404_v25 = vpop.f32.mrb[58].mxu1  ;;  %v3137_v2 = vld [vmem:[#allocation18_spill] sm:$0xff] }
 0x1a4   : > { %2035 = vst [vmem:[%s2971_s28 + $0xb8] sm:$0xff] %v2003_v54  ;;  %v1935_v9 = vmax.f32 %v1871_v55, %v1903_v57  ;;  %v1872_v26 = vmax.f32 %v3126_v63, %v2340_v8  ;;  %v1904_v16 = vmax.f32 %v3127_v27, %v2404_v25  ;;  %v1561_v0 = vpop.f32.mrb[59].mxu0  ;;  %v1817_v40 = vpop.f32.mrb[59].mxu1 }
 0x1a5   : > { %2033 = vst [vmem:[%s2971_s28 + $0xa8] sm:$0xff] %v2001_v38  ;;  %v1933_v17 = vmax.f32 %v1869_v6, %v1901_v24  ;;  %v1870_v28 = vmax.f32 %v3128_v41, %v1561_v0  ;;  %v1902_v42 = vmax.f32 %v3129_v29, %v1817_v40 }
 0x1a6   : > { %v1974_v43 = vadd.f32 %v2959_v4, %v1935_v9  ;;  %v1936_v10 = vmax.f32 %v1872_v26, %v1904_v16 }
 0x1a7   : > { %v1972_v11 = vadd.f32 %v2959_v4, %v1933_v17  ;;  %v1934_v18 = vmax.f32 %v1870_v28, %v1902_v42 }
 0x1a8   : > { %v2006_v44 = vmax.f32 %v1974_v43, 0.0  ;;  %v1975_v45 = vadd.f32 %v2959_v4, %v1936_v10 }
 0x1a9   : > { %v2004_v30 = vmax.f32 %v1972_v11, 0.0  ;;  %v1973_v31 = vadd.f32 %v2959_v4, %v1934_v18  ;;  %v2343_v19 = vpop.f32.mrb[60].mxu0  ;;  %v2407_v46 = vpop.f32.mrb[60].mxu1 }
 0x1aa   : > { %2038 = vst [vmem:[%s2971_s28 + $0xd0] sm:$0xff] %v2006_v44  ;;  %v2007_v47 = vmax.f32 %v1975_v45, 0.0  ;;  %v1875_v13 = vmax.f32 %v3130_v12, %v2343_v19  ;;  %v1907_v20 = vmax.f32 %v3131_v61, %v2407_v46  ;;  %v1574_v21 = vpop.f32.mrb[61].mxu0  ;;  %v1830_v62 = vpop.f32.mrb[61].mxu1 }
 0x1ab   : > { %2036 = vst [vmem:[%s2971_s28 + $0xc0] sm:$0xff] %v2004_v30  ;;  %v2005_v14 = vmax.f32 %v1973_v31, 0.0  ;;  %v1873_v22 = vmax.f32 %v3132_v15, %v1574_v21  ;;  %v1905_v32 = vmax.f32 %v3133_v23, %v1830_v62  ;;  %v2344_v48 = vpop.f32.mrb[62].mxu0  ;;  %v2408_v60 = vpop.f32.mrb[62].mxu1 }
 0x1ac   : > { %2039 = vst [vmem:[%s2971_s28 + $0xd8] sm:$0xff] %v2007_v47  ;;  %v1939_v49 = vmax.f32 %v1875_v13, %v1907_v20  ;;  %v1876_v59 = vmax.f32 %v3134_v33, %v2344_v48  ;;  %v1908_v51 = vmax.f32 %v3135_v50, %v2408_v60  ;;  %v1577_v1 = vpop.f32.mrb[63].mxu0  ;;  %v1833_v34 = vpop.f32.mrb[63].mxu1 }
 0x1ad   : > { %2037 = vst [vmem:[%s2971_s28 + $0xc8] sm:$0xff] %v2005_v14  ;;  %v1937_v35 = vmax.f32 %v1873_v22, %v1905_v32  ;;  %v1874_v53 = vmax.f32 %v3136_v52, %v1577_v1  ;;  %v1906_v3 = vmax.f32 %v3137_v2, %v1833_v34 }
 0x1ae   : > { %v1978_v5 = vadd.f32 %v2959_v4, %v1939_v49  ;;  %v1940_v54 = vmax.f32 %v1876_v59, %v1908_v51 }
 0x1af   : > { %v1976_v36 = vadd.f32 %v2959_v4, %v1937_v35  ;;  %v1938_v55 = vmax.f32 %v1874_v53, %v1906_v3 }
 0x1b0   : > { %v2010_v37 = vmax.f32 %v1978_v5, 0.0  ;;  %v1979_v57 = vadd.f32 %v2959_v4, %v1940_v54 }
 0x1b1   : > { %v2008_v56 = vmax.f32 %v1976_v36, 0.0  ;;  %v1977_v58 = vadd.f32 %v2959_v4, %v1938_v55 }
 0x1b2   : > { %2042 = vst [vmem:[%s2971_s28 + $0xf0] sm:$0xff] %v2010_v37  ;;  %v2011_v38 = vmax.f32 %v1979_v57, 0.0 }
 0x1b3   : > { %2040 = vst [vmem:[%s2971_s28 + $0xe0] sm:$0xff] %v2008_v56  ;;  %v2009_v39 = vmax.f32 %v1977_v58, 0.0 }
 0x1b4   : > { %2043 = vst [vmem:[%s2971_s28 + $0xf8] sm:$0xff] %v2011_v38 }
 0x1b5   : > { %2041 = vst [vmem:[%s2971_s28 + $0xe8] sm:$0xff] %v2009_v39 }
 0x1b6 PF: > { %p10_p9 = scmp.ge.s32.totalorder %s2582_s16, 4   ;;  %s3138_s12 = smov %s2539_s13 }
 0x1b7   : > { %s3139_s13 = smov %s2591_s19  ;;  %s3140_s14 = smov %s2582_s16 }
 0x1b8   :  { %12 = sbr.rel (!%p10_p9) target bundleno = 2 (0x2), region = 108 }

// kernel: example_model_forward.5
= control target key start
LH: loop header
LB: loop body
LE: loop exit
PB: predicated region body
PF: predicated region fallthrough
CT: control target
= control target key end

     0   :  { %v4136_v0 = vmov 0   ;;  %s5729_s1 = inlined_call_operand.vmem [shape: bf16[896,128], index: 1, kind: input, shape index: {}]   ;;  %s5730_s0 = inlined_call_operand.vmem [shape: bf16[4,128,896], index: 0, kind: input, shape index: {}]   ;;  %s5731_s2 = inlined_call_operand.vmem [shape: f32[1,128], index: 2, kind: input, shape index: {}]   ;;  %s5732_s3 = inlined_call_operand.vmem [shape: f32[128,128], index: 3, kind: output, shape index: {}]  }
   0x1   :  { %1871 = vmatprep.subr.bf16.mxu1 %v4136_v0  ;;  %2160 = vmatprep.subr.bf16.mxu0 %v4136_v0  ;;  %v3760_v1 = vld [vmem:[%s5729_s1] sm:$0xff]   ;;  %v3762_v3 = vld [vmem:[%s5729_s1 + $0x8] sm:$0xff]   ;;  %v3764_v5 = vld [vmem:[%s5729_s1 + $0x10] sm:$0xff]  }
   0x2   :  { %v4165_v2 = vld [vmem:[%s5729_s1 + $0x80] sm:$0xff]   ;;  %1872 = vmatpush1.bf16.msra.mxu1 %v3760_v1  ;;  %v4175_v4 = vld [vmem:[%s5729_s1 + $0x88] sm:$0xff]   ;;  %v4186_v6 = vld [vmem:[%s5729_s1 + $0x90] sm:$0xff]  }
   0x3   :  { %2161 = vmatpush1.bf16.msra.mxu0 %v4165_v2  ;;  %1873 = vmatprep.subr.bf16.mxu1 %v4136_v0  ;;  %v3766_v7 = vld [vmem:[%s5729_s1 + $0x18] sm:$0xff]   ;;  %v3768_v9 = vld [vmem:[%s5729_s1 + $0x20] sm:$0xff]   ;;  %v3770_v11 = vld [vmem:[%s5729_s1 + $0x28] sm:$0xff]  }
   0x4   :  { %2162 = vmatprep.subr.bf16.mxu0 %v4136_v0  ;;  %v4197_v8 = vld [vmem:[%s5729_s1 + $0x98] sm:$0xff]   ;;  %v4208_v10 = vld [vmem:[%s5729_s1 + $0xa0] sm:$0xff]   ;;  %v4219_v12 = vld [vmem:[%s5729_s1 + $0xa8] sm:$0xff]  }
   0x5   :  { %v3772_v13 = vld [vmem:[%s5729_s1 + $0x30] sm:$0xff]   ;;  %v3774_v15 = vld [vmem:[%s5729_s1 + $0x38] sm:$0xff]   ;;  %v3776_v17 = vld [vmem:[%s5729_s1 + $0x40] sm:$0xff]  }
   0x6   :  { %1874 = vmatpush1.bf16.msra.mxu1 %v3762_v3  ;;  %v4230_v14 = vld [vmem:[%s5729_s1 + $0xb0] sm:$0xff]   ;;  %v4241_v16 = vld [vmem:[%s5729_s1 + $0xb8] sm:$0xff]   ;;  %v4252_v18 = vld [vmem:[%s5729_s1 + $0xc0] sm:$0xff]  }
   0x7   :  { %2163 = vmatpush1.bf16.msra.mxu0 %v4175_v4  ;;  %1875 = vmatprep.subr.bf16.mxu1 %v4136_v0  ;;  %v3794_v19 = vld [vmem:[%s5730_s0 + $0x4] ss:$28 sps:$4 sm:$0xff]   ;;  %v3778_v20 = vld [vmem:[%s5729_s1 + $0x48] sm:$0xff]   ;;  %v3780_v23 = vld [vmem:[%s5729_s1 + $0x50] sm:$0xff]  }
   0x8   :  { %2164 = vmatprep.subr.bf16.mxu0 %v4136_v0  ;;  %v3797_v21 = vld [vmem:[%s5730_s0 + $0xc] ss:$28 sps:$4 sm:$0xff]   ;;  %1903 = vmatprep.mubr.bf16.mxu1 %v3794_v19  ;;  %v4280_v24 = vld [vmem:[%s5729_s1 + $0xd0] sm:$0xff]   ;;  %v3782_v25 = vld [vmem:[%s5729_s1 + $0x58] sm:$0xff]  }
   0x9   :  { %v4269_v22 = vld [vmem:[%s5729_s1 + $0xc8] sm:$0xff]   ;;  %2192 = vmatprep.mubr.bf16.mxu0 %v3797_v21  ;;  %v4291_v26 = vld [vmem:[%s5729_s1 + $0xd8] sm:$0xff]   ;;  %v3784_v27 = vld [vmem:[%s5729_s1 + $0x60] sm:$0xff]  }
   0xa   :  { %1876 = vmatpush1.bf16.msra.mxu1 %v3764_v5  ;;  %v4302_v28 = vld [vmem:[%s5729_s1 + $0xe0] sm:$0xff]   ;;  %v3786_v29 = vld [vmem:[%s5729_s1 + $0x68] sm:$0xff]   ;;  %v3788_v31 = vld [vmem:[%s5729_s1 + $0x70] sm:$0xff]  }
   0xb   :  { %2165 = vmatpush1.bf16.msra.mxu0 %v4186_v6  ;;  %1877 = vmatprep.subr.bf16.mxu1 %v4136_v0  ;;  %v4313_v30 = vld [vmem:[%s5729_s1 + $0xe8] sm:$0xff]   ;;  %v4324_v32 = vld [vmem:[%s5729_s1 + $0xf0] sm:$0xff]   ;;  %v3790_v33 = vld [vmem:[%s5729_s1 + $0x78] sm:$0xff]  }
   0xc   :  { %2166 = vmatprep.subr.bf16.mxu0 %v4136_v0  ;;  %v4335_v34 = vld [vmem:[%s5729_s1 + $0xf8] sm:$0xff]   ;;  %v3795_v36 = vld [vmem:[%s5730_s0 + $0x8] ss:$28 sps:$4 sm:$0xff]   ;;  %v3806_v43 = vld [vmem:[%s5730_s0 + $0x74] ss:$28 sps:$4 sm:$0xff]  }
   0xd   :  { %v3792_v35 = vld [vmem:[%s5730_s0] ss:$28 sps:$4 sm:$0xff]   ;;  %v3805_v40 = vld [vmem:[%s5729_s1 + $0x108] sm:$0xff]   ;;  %v3803_v41 = vld [vmem:[%s5730_s0 + $0x38] ss:$28 sps:$4 sm:$0xff]  }
   0xe   :  { %1878 = vmatpush1.bf16.msra.mxu1 %v3766_v7  ;;  %v3798_v37 = vld [vmem:[%s5729_s1 + $0x100] sm:$0xff]   ;;  %v3799_v38 = vld [vmem:[%s5730_s0 + $0x3c] ss:$28 sps:$4 sm:$0xff]   ;;  %v3818_v45 = vld [vmem:[%s5729_s1 + $0x110] sm:$0xff]  }
   0xf   :  { %2167 = vmatpush1.bf16.msra.mxu0 %v4197_v8  ;;  %1879 = vmatprep.subr.bf16.mxu1 %v4136_v0  ;;  %v3801_v39 = vld [vmem:[%s5730_s0 + $0x44] ss:$28 sps:$4 sm:$0xff]   ;;  %v3808_v44 = vld [vmem:[%s5730_s0 + $0x7c] ss:$28 sps:$4 sm:$0xff]   ;;  %v3810_v47 = vld [vmem:[%s5730_s0 + $0x70] ss:$28 sps:$4 sm:$0xff]  }
  0x10   :  { %2168 = vmatprep.subr.bf16.mxu0 %v4136_v0  ;;  %v3804_v42 = vld [vmem:[%s5730_s0 + $0x40] ss:$28 sps:$4 sm:$0xff]   ;;  %v3811_v48 = vld [vmem:[%s5730_s0 + $0x78] ss:$28 sps:$4 sm:$0xff]   ;;  %v3812_v49 = vld [vmem:[%s5730_s0 + $0xac] ss:$28 sps:$4 sm:$0xff]  }
  0x11   :  { %v3825_v46 = vld [vmem:[%s5729_s1 + $0x118] sm:$0xff]   ;;  %v3814_v50 = vld [vmem:[%s5730_s0 + $0xb4] ss:$28 sps:$4 sm:$0xff]   ;;  %v3838_v51 = vld [vmem:[%s5729_s1 + $0x120] sm:$0xff]  }
  0x12   :  { %1880 = vmatpush1.bf16.msra.mxu1 %v3768_v9  ;;  %v3845_v52 = vld [vmem:[%s5729_s1 + $0x128] sm:$0xff]   ;;  %v3819_v55 = vld [vmem:[%s5730_s0 + $0xe4] ss:$28 sps:$4 sm:$0xff]   ;;  %v3858_v57 = vld [vmem:[%s5729_s1 + $0x130] sm:$0xff]  }
  0x13   :  { %2169 = vmatpush1.bf16.msra.mxu0 %v4208_v10  ;;  %1881 = vmatprep.subr.bf16.mxu1 %v4136_v0  ;;  %v3816_v53 = vld [vmem:[%s5730_s0 + $0xa8] ss:$28 sps:$4 sm:$0xff]   ;;  %v3817_v54 = vld [vmem:[%s5730_s0 + $0xb0] ss:$28 sps:$4 sm:$0xff]   ;;  %v3865_v58 = vld [vmem:[%s5729_s1 + $0x138] sm:$0xff]  }
  0x14   :  { %2170 = vmatprep.subr.bf16.mxu0 %v4136_v0  ;;  %v3821_v56 = vld [vmem:[%s5730_s0 + $0xec] ss:$28 sps:$4 sm:$0xff]   ;;  %v3823_v59 = vld [vmem:[%s5730_s0 + $0xe0] ss:$28 sps:$4 sm:$0xff]   ;;  %v3837_v9 = vld [vmem:[%s5730_s0 + $0x158] ss:$28 sps:$4 sm:$0xff]  }
  0x15   :  { %v3824_v60 = vld [vmem:[%s5730_s0 + $0xe8] ss:$28 sps:$4 sm:$0xff]   ;;  %v3826_v61 = vld [vmem:[%s5730_s0 + $0x11c] ss:$28 sps:$4 sm:$0xff]   ;;  %v3836_v7 = vld [vmem:[%s5730_s0 + $0x150] ss:$28 sps:$4 sm:$0xff]  }
  0x16   :  { %1882 = vmatpush1.bf16.msra.mxu1 %v3770_v11  ;;  %v3828_v62 = vld [vmem:[%s5730_s0 + $0x124] ss:$28 sps:$4 sm:$0xff]   ;;  %v3885_v1 = vld [vmem:[%s5729_s1 + $0x148] sm:$0xff]   ;;  %v3834_v5 = vld [vmem:[%s5730_s0 + $0x15c] ss:$28 sps:$4 sm:$0xff]  }
  0x17   :  { %2171 = vmatpush1.bf16.msra.mxu0 %v4219_v12  ;;  %1883 = vmatprep.subr.bf16.mxu1 %v4136_v0  ;;  %v3878_v63 = vld [vmem:[%s5729_s1 + $0x140] sm:$0xff]   ;;  %v3841_v11 = vld [vmem:[%s5730_s0 + $0x194] ss:$28 sps:$4 sm:$0xff]  }
  0x18   :  { %2172 = vmatprep.subr.bf16.mxu0 %v4136_v0  ;;  %v3831_v3 = vld [vmem:[%s5730_s0 + $0x120] ss:$28 sps:$4 sm:$0xff]   ;;  %v3851_v21 = vld [vmem:[%s5730_s0 + $0x1c8] ss:$28 sps:$4 sm:$0xff]  }
  0x19   :  { %v3850_v19 = vld [vmem:[%s5730_s0 + $0x1c0] ss:$28 sps:$4 sm:$0xff]  }
  0x1a   :  { %1884 = vmatpush1.bf16.msra.mxu1 %v3772_v13  ;;  %v3843_v13 = vld [vmem:[%s5730_s0 + $0x188] ss:$28 sps:$4 sm:$0xff]  }
  0x1b   :  { %2173 = vmatpush1.bf16.msra.mxu0 %v4230_v14  ;;  %1885 = vmatprep.subr.bf16.mxu1 %v4136_v0 }
  0x1c   :  { %2174 = vmatprep.subr.bf16.mxu0 %v4136_v0 }
  0x1e   :  { %1886 = vmatpush1.bf16.msra.mxu1 %v3774_v15  ;;  %v3844_v15 = vld [vmem:[%s5730_s0 + $0x190] ss:$28 sps:$4 sm:$0xff]  }
  0x1f   :  { %2175 = vmatpush1.bf16.msra.mxu0 %v4241_v16  ;;  %1887 = vmatprep.subr.bf16.mxu1 %v4136_v0 }
  0x20   :  { %2176 = vmatprep.subr.bf16.mxu0 %v4136_v0 }
  0x22   :  { %1888 = vmatpush1.bf16.msra.mxu1 %v3776_v17  ;;  %v3848_v17 = vld [vmem:[%s5730_s0 + $0x1cc] ss:$28 sps:$4 sm:$0xff]  }
  0x23   :  { %2177 = vmatpush1.bf16.msra.mxu0 %v4252_v18  ;;  %1889 = vmatprep.subr.bf16.mxu1 %v4136_v0 }
  0x24   :  { %2178 = vmatprep.subr.bf16.mxu0 %v4136_v0 }
  0x26   :  { %1890 = vmatpush1.bf16.msra.mxu1 %v3778_v20  ;;  %v3945_v20 = vld [vmem:[%s5729_s1 + $0x178] sm:$0xff]  }
  0x27   :  { %2179 = vmatpush1.bf16.msra.mxu0 %v4269_v22  ;;  %1891 = vmatprep.subr.bf16.mxu1 %v4136_v0 }
  0x28   :  { %2180 = vmatprep.subr.bf16.mxu0 %v4136_v0 }
  0x2a   :  { %1892 = vmatpush1.bf16.msra.mxu1 %v3780_v23  ;;  %v3854_v23 = vld [vmem:[%s5730_s0 + $0x204] ss:$28 sps:$4 sm:$0xff]  }
  0x2b   :  { %2181 = vmatpush1.bf16.msra.mxu0 %v4280_v24  ;;  %1893 = vmatprep.subr.bf16.mxu1 %v4136_v0 }
  0x2c   :  { %2182 = vmatprep.subr.bf16.mxu0 %v4136_v0 }
  0x2e   :  { %1894 = vmatpush1.bf16.msra.mxu1 %v3782_v25  ;;  %v3857_v25 = vld [vmem:[%s5730_s0 + $0x200] ss:$28 sps:$4 sm:$0xff]  }
  0x2f   :  { %2183 = vmatpush1.bf16.msra.mxu0 %v4291_v26  ;;  %1895 = vmatprep.subr.bf16.mxu1 %v4136_v0 }
  0x30   :  { %2184 = vmatprep.subr.bf16.mxu0 %v4136_v0 }
  0x32   :  { %1896 = vmatpush1.bf16.msra.mxu1 %v3784_v27  ;;  %v3863_v27 = vld [vmem:[%s5730_s0 + $0x230] ss:$28 sps:$4 sm:$0xff]  }
  0x33   :  { %2185 = vmatpush1.bf16.msra.mxu0 %v4302_v28  ;;  %1897 = vmatprep.subr.bf16.mxu1 %v4136_v0 }
  0x34   :  { %2186 = vmatprep.subr.bf16.mxu0 %v4136_v0 }
  0x36   :  { %1898 = vmatpush1.bf16.msra.mxu1 %v3786_v29  ;;  %v3866_v29 = vld [vmem:[%s5730_s0 + $0x26c] ss:$28 sps:$4 sm:$0xff]  }
  0x37   :  { %2187 = vmatpush1.bf16.msra.mxu0 %v4313_v30  ;;  %1899 = vmatprep.subr.bf16.mxu1 %v4136_v0 }
  0x38   :  { %2188 = vmatprep.subr.bf16.mxu0 %v4136_v0 }
  0x3a   :  { %1900 = vmatpush1.bf16.msra.mxu1 %v3788_v31  ;;  %v3870_v31 = vld [vmem:[%s5730_s0 + $0x268] ss:$28 sps:$4 sm:$0xff]  }
  0x3b   :  { %2189 = vmatpush1.bf16.msra.mxu0 %v4324_v32  ;;  %1901 = vmatprep.subr.bf16.mxu1 %v4136_v0 }
  0x3c   :  { %2190 = vmatprep.subr.bf16.mxu0 %v4136_v0 }
  0x3e   :  { %1902 = vmatpush1.bf16.msra.mxu1 %v3790_v33  ;;  %v3872_v33 = vld [vmem:[%s5730_s0 + $0x2a4] ss:$28 sps:$4 sm:$0xff]  }
  0x3f   :  { %2191 = vmatpush1.bf16.msra.mxu0 %v4335_v34  ;;  %3535 = vmatprep.subr.bf16.mxu1 %v4136_v0 }
  0x40   :  { %2449 = vmatprep.subr.bf16.mxu0 %v4136_v0 }
  0x41   :  { %1904 = vmatmul.mubr.bf16.vlgmr.msra.gmra.mrb[0].mxu1 %v3792_v35  ;;  %v3876_v35 = vld [vmem:[%s5730_s0 + $0x2a0] ss:$28 sps:$4 sm:$0xff]  }
  0x42   :  { %2193 = vmatmul.mubr.bf16.vlgmr.msra.gmra.mrb[0].mxu0 %v3795_v36  ;;  %3551 = vmatpush1.bf16.msra.mxu1 %v4165_v2  ;;  %v3830_v2 = vld [vmem:[%s5730_s0 + $0x118] ss:$28 sps:$4 sm:$0xff]   ;;  %v3877_v36 = vld [vmem:[%s5730_s0 + $0x2a8] ss:$28 sps:$4 sm:$0xff]  }
  0x43   :  { %2450 = vmatpush1.bf16.msra.mxu0 %v3798_v37  ;;  %1911 = vmatprep.mubr.bf16.mxu1 %v3799_v38  ;;  %v3879_v37 = vld [vmem:[%s5730_s0 + $0x2dc] ss:$28 sps:$4 sm:$0xff]   ;;  %v3881_v38 = vld [vmem:[%s5730_s0 + $0x2e4] ss:$28 sps:$4 sm:$0xff]  }
  0x44   :  { %2200 = vmatprep.mubr.bf16.mxu0 %v3801_v39  ;;  %2451 = vmatprep.subr.bf16.mxu0 %v4136_v0  ;;  %v3883_v39 = vld [vmem:[%s5730_s0 + $0x2d8] ss:$28 sps:$4 sm:$0xff]  }
  0x45   :  { %3536 = vmatprep.subr.bf16.mxu1 %v4136_v0 }
  0x46   :  { %3552 = vmatpush1.bf16.msra.mxu1 %v4175_v4  ;;  %v3832_v4 = vld [vmem:[%s5730_s0 + $0x154] ss:$28 sps:$4 sm:$0xff]  }
  0x47   :  { %2452 = vmatpush1.bf16.msra.mxu0 %v3805_v40  ;;  %3537 = vmatprep.subr.bf16.mxu1 %v4136_v0  ;;  %v3884_v40 = vld [vmem:[%s5730_s0 + $0x2e0] ss:$28 sps:$4 sm:$0xff]  }
  0x48   :  { %2453 = vmatprep.subr.bf16.mxu0 %v4136_v0 }
  0x49   :  { %1912 = vmatmul.mubr.bf16.gmra.mrb[4].mxu1 %v3803_v41  ;;  %v3886_v41 = vld [vmem:[%s5730_s0 + $0x314] ss:$28 sps:$4 sm:$0xff]  }
  0x4a   :  { %2201 = vmatmul.mubr.bf16.gmra.mrb[4].mxu0 %v3804_v42  ;;  %1919 = vmatprep.mubr.bf16.mxu1 %v3806_v43  ;;  %v3888_v42 = vld [vmem:[%s5730_s0 + $0x31c] ss:$28 sps:$4 sm:$0xff]   ;;  %v3890_v43 = vld [vmem:[%s5730_s0 + $0x310] ss:$28 sps:$4 sm:$0xff]  }
  0x4b   :  { %2208 = vmatprep.mubr.bf16.mxu0 %v3808_v44  ;;  %2454 = vmatpush1.bf16.msra.mxu0 %v3818_v45  ;;  %v3891_v44 = vld [vmem:[%s5730_s0 + $0x318] ss:$28 sps:$4 sm:$0xff]   ;;  %v3892_v45 = vld [vmem:[%s5730_s0 + $0x34c] ss:$28 sps:$4 sm:$0xff]  }
  0x4c   :  { %3553 = vmatpush1.bf16.msra.mxu1 %v4186_v6  ;;  %2455 = vmatprep.subr.bf16.mxu0 %v4136_v0  ;;  %v3898_v6 = vld [vmem:[%s5729_s1 + $0x150] sm:$0xff]  }
  0x4d   :  { %3538 = vmatprep.subr.bf16.mxu1 %v4136_v0 }
  0x4f   :  { %2456 = vmatpush1.bf16.msra.mxu0 %v3825_v46  ;;  %v3894_v46 = vld [vmem:[%s5730_s0 + $0x354] ss:$28 sps:$4 sm:$0xff]  }
  0x50   :  { %2457 = vmatprep.subr.bf16.mxu0 %v4136_v0  ;;  %3554 = vmatpush1.bf16.msra.mxu1 %v4197_v8  ;;  %v3905_v8 = vld [vmem:[%s5729_s1 + $0x158] sm:$0xff]  }
  0x51   :  { %1920 = vmatmul.mubr.bf16.gmra.mrb[8].mxu1 %v3810_v47  ;;  %3539 = vmatprep.subr.bf16.mxu1 %v4136_v0  ;;  %v3896_v47 = vld [vmem:[%s5730_s0 + $0x348] ss:$28 sps:$4 sm:$0xff]  }
  0x52   :  { %2209 = vmatmul.mubr.bf16.gmra.mrb[8].mxu0 %v3811_v48  ;;  %1927 = vmatprep.mubr.bf16.mxu1 %v3812_v49  ;;  %v3897_v48 = vld [vmem:[%s5730_s0 + $0x350] ss:$28 sps:$4 sm:$0xff]   ;;  %v3899_v49 = vld [vmem:[%s5730_s0 + $0x384] ss:$28 sps:$4 sm:$0xff]  }
  0x53   :  { %2216 = vmatprep.mubr.bf16.mxu0 %v3814_v50  ;;  %2458 = vmatpush1.bf16.msra.mxu0 %v3838_v51  ;;  %v3901_v50 = vld [vmem:[%s5730_s0 + $0x38c] ss:$28 sps:$4 sm:$0xff]   ;;  %v3903_v51 = vld [vmem:[%s5730_s0 + $0x380] ss:$28 sps:$4 sm:$0xff]  }
  0x54   :  { %2459 = vmatprep.subr.bf16.mxu0 %v4136_v0  ;;  %3555 = vmatpush1.bf16.msra.mxu1 %v4208_v10  ;;  %v3839_v10 = vld [vmem:[%s5730_s0 + $0x18c] ss:$28 sps:$4 sm:$0xff]  }
  0x55   :  { %3540 = vmatprep.subr.bf16.mxu1 %v4136_v0 }
  0x57   :  { %2460 = vmatpush1.bf16.msra.mxu0 %v3845_v52  ;;  %v3904_v52 = vld [vmem:[%s5730_s0 + $0x388] ss:$28 sps:$4 sm:$0xff]  }
  0x58   :  { %2461 = vmatprep.subr.bf16.mxu0 %v4136_v0  ;;  %3556 = vmatpush1.bf16.msra.mxu1 %v4219_v12  ;;  %v3918_v12 = vld [vmem:[%s5729_s1 + $0x160] sm:$0xff]  }
  0x59   :  { %1928 = vmatmul.mubr.bf16.gmra.mrb[12].mxu1 %v3816_v53  ;;  %3541 = vmatprep.subr.bf16.mxu1 %v4136_v0  ;;  %v3906_v53 = vld [vmem:[%s5730_s0 + $0x3bc] ss:$28 sps:$4 sm:$0xff]  }
  0x5a   :  { %2217 = vmatmul.mubr.bf16.gmra.mrb[12].mxu0 %v3817_v54  ;;  %1935 = vmatprep.mubr.bf16.mxu1 %v3819_v55  ;;  %v3908_v54 = vld [vmem:[%s5730_s0 + $0x3c4] ss:$28 sps:$4 sm:$0xff]  }
  0x5b   :  { %2224 = vmatprep.mubr.bf16.mxu0 %v3821_v56  ;;  %2462 = vmatpush1.bf16.msra.mxu0 %v3858_v57  ;;  %v4642_v55 = vld [vmem:[%s5729_s1 + $0x180] sm:$0xff]   ;;  %v3910_v56 = vld [vmem:[%s5730_s0 + $0x3b8] ss:$28 sps:$4 sm:$0xff]  }
  0x5c   :  { %2463 = vmatprep.subr.bf16.mxu0 %v4136_v0  ;;  %3557 = vmatpush1.bf16.msra.mxu1 %v4230_v14  ;;  %v3925_v14 = vld [vmem:[%s5729_s1 + $0x168] sm:$0xff]   ;;  %v3911_v57 = vld [vmem:[%s5730_s0 + $0x3c0] ss:$28 sps:$4 sm:$0xff]  }
  0x5d   :  { %3542 = vmatprep.subr.bf16.mxu1 %v4136_v0 }
  0x5f   :  { %2464 = vmatpush1.bf16.msra.mxu0 %v3865_v58  ;;  %v3912_v58 = vld [vmem:[%s5730_s0 + $0x3f4] ss:$28 sps:$4 sm:$0xff]  }
  0x60   :  { %2465 = vmatprep.subr.bf16.mxu0 %v4136_v0  ;;  %3558 = vmatpush1.bf16.msra.mxu1 %v4241_v16  ;;  %v3846_v16 = vld [vmem:[%s5730_s0 + $0x1c4] ss:$28 sps:$4 sm:$0xff]  }
  0x61   :  { %1936 = vmatmul.mubr.bf16.gmra.mrb[16].mxu1 %v3823_v59  ;;  %3543 = vmatprep.subr.bf16.mxu1 %v4136_v0  ;;  %v3914_v59 = vld [vmem:[%s5730_s0 + $0x3fc] ss:$28 sps:$4 sm:$0xff]  }
  0x62   :  { %2225 = vmatmul.mubr.bf16.gmra.mrb[16].mxu0 %v3824_v60  ;;  %1943 = vmatprep.mubr.bf16.mxu1 %v3826_v61  ;;  %v3916_v60 = vld [vmem:[%s5730_s0 + $0x3f0] ss:$28 sps:$4 sm:$0xff]   ;;  %v3917_v61 = vld [vmem:[%s5730_s0 + $0x3f8] ss:$28 sps:$4 sm:$0xff]  }
  0x63   :  { %2232 = vmatprep.mubr.bf16.mxu0 %v3828_v62  ;;  %2466 = vmatpush1.bf16.msra.mxu0 %v3878_v63  ;;  %v3919_v62 = vld [vmem:[%s5730_s0 + $0x42c] ss:$28 sps:$4 sm:$0xff]   ;;  %v3921_v63 = vld [vmem:[%s5730_s0 + $0x434] ss:$28 sps:$4 sm:$0xff]  }
  0x64   :  { %2467 = vmatprep.subr.bf16.mxu0 %v4136_v0  ;;  %3559 = vmatpush1.bf16.msra.mxu1 %v4252_v18  ;;  %v3938_v18 = vld [vmem:[%s5729_s1 + $0x170] sm:$0xff]  }
  0x65   :  { %3544 = vmatprep.subr.bf16.mxu1 %v4136_v0 }
  0x67   :  { %2468 = vmatpush1.bf16.msra.mxu0 %v3885_v1  ;;  %v3923_v1 = vld [vmem:[%s5730_s0 + $0x428] ss:$28 sps:$4 sm:$0xff]  }
  0x68   :  { %2469 = vmatprep.subr.bf16.mxu0 %v4136_v0  ;;  %3560 = vmatpush1.bf16.msra.mxu1 %v4269_v22  ;;  %v3852_v22 = vld [vmem:[%s5730_s0 + $0x1fc] ss:$28 sps:$4 sm:$0xff]  }
  0x69   :  { %1944 = vmatmul.mubr.bf16.gmra.mrb[20].mxu1 %v3830_v2  ;;  %3545 = vmatprep.subr.bf16.mxu1 %v4136_v0  ;;  %v3924_v2 = vld [vmem:[%s5730_s0 + $0x430] ss:$28 sps:$4 sm:$0xff]  }
  0x6a   :  { %2233 = vmatmul.mubr.bf16.gmra.mrb[20].mxu0 %v3831_v3  ;;  %1951 = vmatprep.mubr.bf16.mxu1 %v3832_v4  ;;  %v3926_v3 = vld [vmem:[%s5730_s0 + $0x464] ss:$28 sps:$4 sm:$0xff]   ;;  %v3928_v4 = vld [vmem:[%s5730_s0 + $0x46c] ss:$28 sps:$4 sm:$0xff]  }
  0x6b   :  { %2240 = vmatprep.mubr.bf16.mxu0 %v3834_v5  ;;  %2470 = vmatpush1.bf16.msra.mxu0 %v3898_v6  ;;  %v3930_v5 = vld [vmem:[%s5730_s0 + $0x460] ss:$28 sps:$4 sm:$0xff]   ;;  %v3931_v6 = vld [vmem:[%s5730_s0 + $0x468] ss:$28 sps:$4 sm:$0xff]  }
  0x6c   :  { %2471 = vmatprep.subr.bf16.mxu0 %v4136_v0  ;;  %3561 = vmatpush1.bf16.msra.mxu1 %v4280_v24  ;;  %v3856_v24 = vld [vmem:[%s5730_s0 + $0x1f8] ss:$28 sps:$4 sm:$0xff]  }
  0x6d   :  { %3546 = vmatprep.subr.bf16.mxu1 %v4136_v0 }
  0x6f   :  { %2472 = vmatpush1.bf16.msra.mxu0 %v3905_v8  ;;  %v3934_v8 = vld [vmem:[%s5730_s0 + $0x4a4] ss:$28 sps:$4 sm:$0xff]  }
  0x70   :  { %2473 = vmatprep.subr.bf16.mxu0 %v4136_v0  ;;  %3562 = vmatpush1.bf16.msra.mxu1 %v4291_v26  ;;  %v3859_v26 = vld [vmem:[%s5730_s0 + $0x234] ss:$28 sps:$4 sm:$0xff]  }
  0x71   :  { %1952 = vmatmul.mubr.bf16.gmra.mrb[24].mxu1 %v3836_v7  ;;  %3547 = vmatprep.subr.bf16.mxu1 %v4136_v0  ;;  %v3932_v7 = vld [vmem:[%s5730_s0 + $0x49c] ss:$28 sps:$4 sm:$0xff]  }
  0x72   :  { %2241 = vmatmul.mubr.bf16.gmra.mrb[24].mxu0 %v3837_v9  ;;  %1959 = vmatprep.mubr.bf16.mxu1 %v3839_v10  ;;  %v3936_v9 = vld [vmem:[%s5730_s0 + $0x498] ss:$28 sps:$4 sm:$0xff]   ;;  %v3937_v10 = vld [vmem:[%s5730_s0 + $0x4a0] ss:$28 sps:$4 sm:$0xff]  }
  0x73   :  { %2248 = vmatprep.mubr.bf16.mxu0 %v3841_v11  ;;  %2474 = vmatpush1.bf16.msra.mxu0 %v3918_v12  ;;  %v3939_v11 = vld [vmem:[%s5730_s0 + $0x4d4] ss:$28 sps:$4 sm:$0xff]   ;;  %v3941_v12 = vld [vmem:[%s5730_s0 + $0x4dc] ss:$28 sps:$4 sm:$0xff]  }
  0x74   :  { %2475 = vmatprep.subr.bf16.mxu0 %v4136_v0  ;;  %3563 = vmatpush1.bf16.msra.mxu1 %v4302_v28  ;;  %v3864_v28 = vld [vmem:[%s5730_s0 + $0x238] ss:$28 sps:$4 sm:$0xff]  }
  0x75   :  { %3548 = vmatprep.subr.bf16.mxu1 %v4136_v0 }
  0x77   :  { %2476 = vmatpush1.bf16.msra.mxu0 %v3925_v14  ;;  %v3944_v14 = vld [vmem:[%s5730_s0 + $0x4d8] ss:$28 sps:$4 sm:$0xff]  }
  0x78   :  { %2477 = vmatprep.subr.bf16.mxu0 %v4136_v0  ;;  %3564 = vmatpush1.bf16.msra.mxu1 %v4313_v30  ;;  %v3868_v30 = vld [vmem:[%s5730_s0 + $0x274] ss:$28 sps:$4 sm:$0xff]  }
  0x79   :  { %1960 = vmatmul.mubr.bf16.gmra.mrb[28].mxu1 %v3843_v13  ;;  %3549 = vmatprep.subr.bf16.mxu1 %v4136_v0  ;;  %v3943_v13 = vld [vmem:[%s5730_s0 + $0x4d0] ss:$28 sps:$4 sm:$0xff]  }
  0x7a   :  { %2249 = vmatmul.mubr.bf16.gmra.mrb[28].mxu0 %v3844_v15  ;;  %1967 = vmatprep.mubr.bf16.mxu1 %v3846_v16  ;;  %v3946_v15 = vld [vmem:[%s5730_s0 + $0x50c] ss:$28 sps:$4 sm:$0xff]   ;;  %v3948_v16 = vld [vmem:[%s5730_s0 + $0x514] ss:$28 sps:$4 sm:$0xff]  }
  0x7b   :  { %2256 = vmatprep.mubr.bf16.mxu0 %v3848_v17  ;;  %2478 = vmatpush1.bf16.msra.mxu0 %v3938_v18  ;;  %v3950_v17 = vld [vmem:[%s5730_s0 + $0x508] ss:$28 sps:$4 sm:$0xff]   ;;  %v3951_v18 = vld [vmem:[%s5730_s0 + $0x510] ss:$28 sps:$4 sm:$0xff]  }
  0x7c   :  { %2479 = vmatprep.subr.bf16.mxu0 %v4136_v0  ;;  %3565 = vmatpush1.bf16.msra.mxu1 %v4324_v32  ;;  %v3871_v32 = vld [vmem:[%s5730_s0 + $0x270] ss:$28 sps:$4 sm:$0xff]  }
  0x7d   :  { %3550 = vmatprep.subr.bf16.mxu1 %v4136_v0  ;;  %v3861_v0 = vld [vmem:[%s5730_s0 + $0x23c] ss:$28 sps:$4 sm:$0xff]  }
  0x7f   :  { %2480 = vmatpush1.bf16.msra.mxu0 %v3945_v20  ;;  %v3956_v20 = vld [vmem:[%s5730_s0 + $0x14] ss:$28 sps:$4 sm:$0xff]  }
  0x80   :  { %3566 = vmatpush1.bf16.msra.mxu1 %v4335_v34  ;;  %v3874_v34 = vld [vmem:[%s5730_s0 + $0x2ac] ss:$28 sps:$4 sm:$0xff]  }
  0x81   :  { %1968 = vmatmul.mubr.bf16.gmra.mrb[32].mxu1 %v3850_v19  ;;  %3455 = vmatprep.subr.bf16.mxu1 %v4642_v55  ;;  %v3952_v19 = vld [vmem:[%s5730_s0 + $0x544] ss:$28 sps:$4 sm:$0xff]  }
  0x82   :  { %2257 = vmatmul.mubr.bf16.gmra.mrb[32].mxu0 %v3851_v21  ;;  %1975 = vmatprep.mubr.bf16.mxu1 %v3852_v22  ;;  %v3957_v21 = vld [vmem:[%s5730_s0 + $0x540] ss:$28 sps:$4 sm:$0xff]   ;;  %v3954_v22 = vld [vmem:[%s5730_s0 + $0x10] ss:$28 sps:$4 sm:$0xff]  }
  0x83   :  { %2264 = vmatprep.mubr.bf16.mxu0 %v3854_v23  ;;  %v3958_v23 = vld [vmem:[%s5730_s0 + $0x57c] ss:$28 sps:$4 sm:$0xff]  }
  0x89   :  { %1976 = vmatmul.mubr.bf16.gmra.mrb[36].mxu1 %v3856_v24  ;;  %v3960_v24 = vld [vmem:[%s5730_s0 + $0x4c] ss:$28 sps:$4 sm:$0xff]  }
  0x8a   :  { %2265 = vmatmul.mubr.bf16.gmra.mrb[36].mxu0 %v3857_v25  ;;  %1983 = vmatprep.mubr.bf16.mxu1 %v3859_v26  ;;  %v3962_v25 = vld [vmem:[%s5730_s0 + $0x578] ss:$28 sps:$4 sm:$0xff]   ;;  %v3963_v26 = vld [vmem:[%s5730_s0 + $0x48] ss:$28 sps:$4 sm:$0xff]  }
  0x8b   :  { %2272 = vmatprep.mubr.bf16.mxu0 %v3861_v0  ;;  %v3964_v0 = vld [vmem:[%s5730_s0 + $0x5b4] ss:$28 sps:$4 sm:$0xff]  }
  0x91   :  { %1984 = vmatmul.mubr.bf16.gmra.mrb[40].mxu1 %v3863_v27  ;;  %v3966_v27 = vld [vmem:[%s5730_s0 + $0x84] ss:$28 sps:$4 sm:$0xff]  }
  0x92   :  { %2273 = vmatmul.mubr.bf16.gmra.mrb[40].mxu0 %v3864_v28  ;;  %1991 = vmatprep.mubr.bf16.mxu1 %v3866_v29  ;;  %v3968_v28 = vld [vmem:[%s5730_s0 + $0x5b0] ss:$28 sps:$4 sm:$0xff]   ;;  %v3969_v29 = vld [vmem:[%s5730_s0 + $0x80] ss:$28 sps:$4 sm:$0xff]  }
  0x93   :  { %2280 = vmatprep.mubr.bf16.mxu0 %v3868_v30  ;;  %v3970_v30 = vld [vmem:[%s5730_s0 + $0x5ec] ss:$28 sps:$4 sm:$0xff]  }
  0x99   :  { %1992 = vmatmul.mubr.bf16.gmra.mrb[44].mxu1 %v3870_v31  ;;  %v3972_v31 = vld [vmem:[%s5730_s0 + $0xbc] ss:$28 sps:$4 sm:$0xff]  }
  0x9a   :  { %2281 = vmatmul.mubr.bf16.gmra.mrb[44].mxu0 %v3871_v32  ;;  %1999 = vmatprep.mubr.bf16.mxu1 %v3872_v33 }
  0x9b   :  { %2288 = vmatprep.mubr.bf16.mxu0 %v3874_v34  ;;  %v3974_v34 = vld [vmem:[%s5730_s0 + $0x5e8] ss:$28 sps:$4 sm:$0xff]  }
  0xa1   :  { %2000 = vmatmul.mubr.bf16.gmra.mrb[48].mxu1 %v3876_v35 }
  0xa2   :  { %2289 = vmatmul.mubr.bf16.gmra.mrb[48].mxu0 %v3877_v36  ;;  %2007 = vmatprep.mubr.bf16.mxu1 %v3879_v37  ;;  %v3975_v36 = vld [vmem:[%s5730_s0 + $0xb8] ss:$28 sps:$4 sm:$0xff]   ;;  %v3976_v37 = vld [vmem:[%s5730_s0 + $0x624] ss:$28 sps:$4 sm:$0xff]  }
  0xa3   :  { %2296 = vmatprep.mubr.bf16.mxu0 %v3881_v38 }
  0xa9   :  { %2008 = vmatmul.mubr.bf16.gmra.mrb[52].mxu1 %v3883_v39  ;;  %v3978_v39 = vld [vmem:[%s5730_s0 + $0xf4] ss:$28 sps:$4 sm:$0xff]  }
  0xaa   :  { %2297 = vmatmul.mubr.bf16.gmra.mrb[52].mxu0 %v3884_v40  ;;  %2015 = vmatprep.mubr.bf16.mxu1 %v3886_v41 }
  0xab   :  { %2304 = vmatprep.mubr.bf16.mxu0 %v3888_v42  ;;  %v3980_v42 = vld [vmem:[%s5730_s0 + $0x620] ss:$28 sps:$4 sm:$0xff]  }
  0xb1   :  { %2016 = vmatmul.mubr.bf16.gmra.mrb[56].mxu1 %v3890_v43 }
  0xb2   :  { %2305 = vmatmul.mubr.bf16.gmra.mrb[56].mxu0 %v3891_v44  ;;  %2023 = vmatprep.mubr.bf16.mxu1 %v3892_v45  ;;  %v3981_v44 = vld [vmem:[%s5730_s0 + $0xf0] ss:$28 sps:$4 sm:$0xff]   ;;  %v3982_v45 = vld [vmem:[%s5730_s0 + $0x65c] ss:$28 sps:$4 sm:$0xff]  }
  0xb3   :  { %2312 = vmatprep.mubr.bf16.mxu0 %v3894_v46 }
  0xb9   :  { %2024 = vmatmul.mubr.bf16.gmra.mrb[60].mxu1 %v3896_v47  ;;  %v3984_v47 = vld [vmem:[%s5730_s0 + $0x12c] ss:$28 sps:$4 sm:$0xff]  }
  0xba   :  { %2313 = vmatmul.mubr.bf16.gmra.mrb[60].mxu0 %v3897_v48  ;;  %2031 = vmatprep.mubr.bf16.mxu1 %v3899_v49 }
  0xbb   :  { %2320 = vmatprep.mubr.bf16.mxu0 %v3901_v50  ;;  %v3986_v50 = vld [vmem:[%s5730_s0 + $0x658] ss:$28 sps:$4 sm:$0xff]  }
  0xc1   :  { %2032 = vmatmul.mubr.bf16.gmra.mrb[64].mxu1 %v3903_v51 }
  0xc2   :  { %2321 = vmatmul.mubr.bf16.gmra.mrb[64].mxu0 %v3904_v52  ;;  %2039 = vmatprep.mubr.bf16.mxu1 %v3906_v53  ;;  %v3987_v52 = vld [vmem:[%s5730_s0 + $0x128] ss:$28 sps:$4 sm:$0xff]   ;;  %v3988_v53 = vld [vmem:[%s5730_s0 + $0x694] ss:$28 sps:$4 sm:$0xff]  }
  0xc3   :  { %2328 = vmatprep.mubr.bf16.mxu0 %v3908_v54 }
  0xc9   :  { %2040 = vmatmul.mubr.bf16.gmra.mrb[68].mxu1 %v3910_v56  ;;  %v3990_v56 = vld [vmem:[%s5730_s0 + $0x164] ss:$28 sps:$4 sm:$0xff]  }
  0xca   :  { %2329 = vmatmul.mubr.bf16.gmra.mrb[68].mxu0 %v3911_v57  ;;  %2047 = vmatprep.mubr.bf16.mxu1 %v3912_v58 }
  0xcb   :  { %2336 = vmatprep.mubr.bf16.mxu0 %v3914_v59  ;;  %v3992_v59 = vld [vmem:[%s5730_s0 + $0x690] ss:$28 sps:$4 sm:$0xff]  }
  0xd1   :  { %2048 = vmatmul.mubr.bf16.gmra.mrb[72].mxu1 %v3916_v60 }
  0xd2   :  { %2337 = vmatmul.mubr.bf16.gmra.mrb[72].mxu0 %v3917_v61  ;;  %2055 = vmatprep.mubr.bf16.mxu1 %v3919_v62  ;;  %v3993_v61 = vld [vmem:[%s5730_s0 + $0x160] ss:$28 sps:$4 sm:$0xff]   ;;  %v3994_v62 = vld [vmem:[%s5730_s0 + $0x6cc] ss:$28 sps:$4 sm:$0xff]  }
  0xd3   :  { %2344 = vmatprep.mubr.bf16.mxu0 %v3921_v63 }
  0xd9   :  { %2056 = vmatmul.mubr.bf16.gmra.mrb[76].mxu1 %v3923_v1  ;;  %v3996_v1 = vld [vmem:[%s5730_s0 + $0x19c] ss:$28 sps:$4 sm:$0xff]  }
  0xda   :  { %2345 = vmatmul.mubr.bf16.gmra.mrb[76].mxu0 %v3924_v2  ;;  %2063 = vmatprep.mubr.bf16.mxu1 %v3926_v3 }
  0xdb   :  { %2352 = vmatprep.mubr.bf16.mxu0 %v3928_v4  ;;  %v3998_v4 = vld [vmem:[%s5730_s0 + $0x6c8] ss:$28 sps:$4 sm:$0xff]  }
  0xe1   :  { %2064 = vmatmul.mubr.bf16.gmra.mrb[80].mxu1 %v3930_v5 }
  0xe2   :  { %2353 = vmatmul.mubr.bf16.gmra.mrb[80].mxu0 %v3931_v6  ;;  %2071 = vmatprep.mubr.bf16.mxu1 %v3932_v7  ;;  %v3999_v6 = vld [vmem:[%s5730_s0 + $0x198] ss:$28 sps:$4 sm:$0xff]   ;;  %v4002_v7 = vld [vmem:[%s5730_s0 + $0x54c] ss:$28 sps:$4 sm:$0xff]  }
  0xe3   :  { %2360 = vmatprep.mubr.bf16.mxu0 %v3934_v8 }
  0xe9   :  { %2072 = vmatmul.mubr.bf16.gmra.mrb[84].mxu1 %v3936_v9  ;;  %v4003_v9 = vld [vmem:[%s5730_s0 + $0x1d4] ss:$28 sps:$4 sm:$0xff]  }
  0xea   :  { %2361 = vmatmul.mubr.bf16.gmra.mrb[84].mxu0 %v3937_v10  ;;  %2079 = vmatprep.mubr.bf16.mxu1 %v3939_v11 }
  0xeb   :  { %2368 = vmatprep.mubr.bf16.mxu0 %v3941_v12  ;;  %v4000_v12 = vld [vmem:[%s5730_s0 + $0x548] ss:$28 sps:$4 sm:$0xff]  }
  0xf1   :  { %2080 = vmatmul.mubr.bf16.gmra.mrb[88].mxu1 %v3943_v13 }
  0xf2   :  { %2369 = vmatmul.mubr.bf16.gmra.mrb[88].mxu0 %v3944_v14  ;;  %2087 = vmatprep.mubr.bf16.mxu1 %v3946_v15  ;;  %v4005_v14 = vld [vmem:[%s5730_s0 + $0x1d0] ss:$28 sps:$4 sm:$0xff]  }
  0xf3   :  { %2376 = vmatprep.mubr.bf16.mxu0 %v3948_v16  ;;  %v4007_v16 = vld [vmem:[%s5730_s0 + $0x584] ss:$28 sps:$4 sm:$0xff]  }
  0xf9   :  { %2088 = vmatmul.mubr.bf16.gmra.mrb[92].mxu1 %v3950_v17  ;;  %v4009_v17 = vld [vmem:[%s5730_s0 + $0x20c] ss:$28 sps:$4 sm:$0xff]  }
  0xfa   :  { %2377 = vmatmul.mubr.bf16.gmra.mrb[92].mxu0 %v3951_v18  ;;  %2095 = vmatprep.mubr.bf16.mxu1 %v3952_v19  ;;  %v4013_v18 = vld [vmem:[%s5729_s1 + $0x188] sm:$0xff]   ;;  %v4020_v19 = vld [vmem:[%s5729_s1 + $0x190] sm:$0xff]  }
  0xfb   :  { %2481 = vmatprep.mubr.bf16.mxu0 %v3956_v20 }
 0x101   :  { %2096 = vmatmul.mubr.bf16.gmra.mrb[96].mxu1 %v3957_v21 }
 0x102   :  { %2482 = vmatmul.mubr.bf16.vlgmr.msra.gmra.mrb[0].mxu0 %v3954_v22  ;;  %2103 = vmatprep.mubr.bf16.mxu1 %v3958_v23  ;;  %v4011_v22 = vld [vmem:[%s5730_s0 + $0x580] ss:$28 sps:$4 sm:$0xff]  }
 0x103   :  { %2489 = vmatprep.mubr.bf16.mxu0 %v3960_v24  ;;  %v4014_v24 = vld [vmem:[%s5730_s0 + $0x5bc] ss:$28 sps:$4 sm:$0xff]  }
 0x109   :  { %2104 = vmatmul.mubr.bf16.gmra.mrb[100].mxu1 %v3962_v25 }
 0x10a   :  { %2490 = vmatmul.mubr.bf16.gmra.mrb[4].mxu0 %v3963_v26  ;;  %2111 = vmatprep.mubr.bf16.mxu1 %v3964_v0  ;;  %v4016_v26 = vld [vmem:[%s5730_s0 + $0x244] ss:$28 sps:$4 sm:$0xff]   ;;  %v4027_v0 = vld [vmem:[%s5729_s1 + $0x198] sm:$0xff]  }
 0x10b   :  { %2497 = vmatprep.mubr.bf16.mxu0 %v3966_v27 }
 0x111   :  { %2112 = vmatmul.mubr.bf16.gmra.mrb[104].mxu1 %v3968_v28  ;;  %v4034_v28 = vld [vmem:[%s5729_s1 + $0x1a0] sm:$0xff]  }
 0x112   :  { %2498 = vmatmul.mubr.bf16.gmra.mrb[8].mxu0 %v3969_v29  ;;  %2119 = vmatprep.mubr.bf16.mxu1 %v3970_v30  ;;  %v4018_v30 = vld [vmem:[%s5730_s0 + $0x5b8] ss:$28 sps:$4 sm:$0xff]  }
 0x113   :  { %2505 = vmatprep.mubr.bf16.mxu0 %v3972_v31 }
 0x114   :  { %v4765_v32 = vpop.f32.mrb[0].mxu1 }
 0x115   :  { %v1907_v33 = vpop.f32.mrb[1].mxu1 }
 0x116   :  { %v4770_v35 = vpop.f32.mrb[2].mxu1  ;;  %v4019_v33 = vld [vmem:[%s5730_s0 + $0x240] ss:$28 sps:$4 sm:$0xff]  }
 0x117   :  { %v1910_v38 = vpop.f32.mrb[3].mxu1 }
 0x118   :  { %v4041_v38 = vld [vmem:[%s5729_s1 + $0x1a8] sm:$0xff]  }
 0x119   :  { %2120 = vmatmul.mubr.bf16.gmra.mrb[108].mxu1 %v3974_v34  ;;  %v4021_v34 = vld [vmem:[%s5730_s0 + $0x5f4] ss:$28 sps:$4 sm:$0xff]  }
 0x11a   :  { %2506 = vmatmul.mubr.bf16.gmra.mrb[12].mxu0 %v3975_v36  ;;  %2127 = vmatprep.mubr.bf16.mxu1 %v3976_v37  ;;  %v4023_v37 = vld [vmem:[%s5730_s0 + $0x27c] ss:$28 sps:$4 sm:$0xff]  }
 0x11b   :  { %2513 = vmatprep.mubr.bf16.mxu0 %v3978_v39 }
 0x11c   :  { %v4781_v40 = vpop.f32.mrb[4].mxu1 }
 0x11d   :  { %v1915_v41 = vpop.f32.mrb[5].mxu1 }
 0x11e   :  { %v4786_v43 = vpop.f32.mrb[6].mxu1  ;;  %v4048_v41 = vld [vmem:[%s5729_s1 + $0x1b0] sm:$0xff]  }
 0x11f   :  { %v1918_v46 = vpop.f32.mrb[7].mxu1 }
 0x120   :  { %v4026_v46 = vld [vmem:[%s5730_s0 + $0x278] ss:$28 sps:$4 sm:$0xff]  }
 0x121   :  { %2128 = vmatmul.mubr.bf16.gmra.mrb[112].mxu1 %v3980_v42 }
 0x122   :  { %2514 = vmatmul.mubr.bf16.gmra.mrb[16].mxu0 %v3981_v44  ;;  %2135 = vmatprep.mubr.bf16.mxu1 %v3982_v45  ;;  %v4025_v44 = vld [vmem:[%s5730_s0 + $0x5f0] ss:$28 sps:$4 sm:$0xff]  }
 0x123   :  { %2521 = vmatprep.mubr.bf16.mxu0 %v3984_v47  ;;  %v4028_v47 = vld [vmem:[%s5730_s0 + $0x62c] ss:$28 sps:$4 sm:$0xff]  }
 0x124   :  { %v4797_v48 = vpop.f32.mrb[8].mxu1 }
 0x125   :  { %v1923_v49 = vpop.f32.mrb[9].mxu1 }
 0x126   :  { %v4802_v51 = vpop.f32.mrb[10].mxu1 }
 0x127   :  { %v1926_v54 = vpop.f32.mrb[11].mxu1 }
 0x129   :  { %2136 = vmatmul.mubr.bf16.gmra.mrb[116].mxu1 %v3986_v50  ;;  %v4030_v50 = vld [vmem:[%s5730_s0 + $0x2b4] ss:$28 sps:$4 sm:$0xff]  }
 0x12a   :  { %2522 = vmatmul.mubr.bf16.gmra.mrb[20].mxu0 %v3987_v52  ;;  %2143 = vmatprep.mubr.bf16.mxu1 %v3988_v53  ;;  %v4055_v52 = vld [vmem:[%s5729_s1 + $0x1b8] sm:$0xff]  }
 0x12b   :  { %2529 = vmatprep.mubr.bf16.mxu0 %v3990_v56  ;;  %v4032_v56 = vld [vmem:[%s5730_s0 + $0x628] ss:$28 sps:$4 sm:$0xff]  }
 0x12c   :  { %v4813_v57 = vpop.f32.mrb[12].mxu1 }
 0x12d   :  { %v1931_v58 = vpop.f32.mrb[13].mxu1 }
 0x12e   :  { %v4818_v60 = vpop.f32.mrb[14].mxu1 }
 0x12f   :  { %v1934_v63 = vpop.f32.mrb[15].mxu1 }
 0x130   :  { %v4037_v63 = vld [vmem:[%s5730_s0 + $0x2ec] ss:$28 sps:$4 sm:$0xff]  }
 0x131   :  { %2144 = vmatmul.mubr.bf16.gmra.mrb[120].mxu1 %v3992_v59  ;;  %v4033_v59 = vld [vmem:[%s5730_s0 + $0x2b0] ss:$28 sps:$4 sm:$0xff]  }
 0x132   :  { %2530 = vmatmul.mubr.bf16.gmra.mrb[24].mxu0 %v3993_v61  ;;  %2151 = vmatprep.mubr.bf16.mxu1 %v3994_v62  ;;  %v4035_v61 = vld [vmem:[%s5730_s0 + $0x664] ss:$28 sps:$4 sm:$0xff]  }
 0x133   :  { %2537 = vmatprep.mubr.bf16.mxu0 %v3996_v1 }
 0x134   :  { %v4829_v2 = vpop.f32.mrb[16].mxu1 }
 0x135   :  { %v1939_v3 = vpop.f32.mrb[17].mxu1 }
 0x136   :  { %v4834_v5 = vpop.f32.mrb[18].mxu1 }
 0x137   :  { %v1942_v8 = vpop.f32.mrb[19].mxu1 }
 0x138   :  { %v4042_v8 = vld [vmem:[%s5730_s0 + $0x69c] ss:$28 sps:$4 sm:$0xff]  }
 0x139   :  { %2152 = vmatmul.mubr.bf16.gmra.mrb[124].mxu1 %v3998_v4  ;;  %v4039_v4 = vld [vmem:[%s5730_s0 + $0x660] ss:$28 sps:$4 sm:$0xff]  }
 0x13a   :  { %2538 = vmatmul.mubr.bf16.gmra.mrb[28].mxu0 %v3999_v6  ;;  %2384 = vmatprep.mubr.bf16.mxu1 %v4002_v7  ;;  %v4040_v7 = vld [vmem:[%s5730_s0 + $0x2e8] ss:$28 sps:$4 sm:$0xff]  }
 0x13b   :  { %2545 = vmatprep.mubr.bf16.mxu0 %v4003_v9 }
 0x13c   :  { %v4845_v10 = vpop.f32.mrb[20].mxu1 }
 0x13d   :  { %v1947_v11 = vpop.f32.mrb[21].mxu1 }
 0x13e   :  { %v4850_v13 = vpop.f32.mrb[22].mxu1  ;;  %v4044_v11 = vld [vmem:[%s5730_s0 + $0x324] ss:$28 sps:$4 sm:$0xff]  }
 0x13f   :  { %v1950_v15 = vpop.f32.mrb[23].mxu1 }
 0x140   :  { %v4046_v15 = vld [vmem:[%s5730_s0 + $0x698] ss:$28 sps:$4 sm:$0xff]  }
 0x141   :  { %2385 = vmatmul.mubr.bf16.vlgmr.msra.gmra.mrb[96].mxu1 %v4000_v12 }
 0x142   :  { %2546 = vmatmul.mubr.bf16.gmra.mrb[32].mxu0 %v4005_v14  ;;  %3456 = vmatpush3.bf16.msra.mxu1 %v4642_v55  ;;  %v4012_v55 = vld [vmem:[%s5730_s0 + $0x208] ss:$28 sps:$4 sm:$0xff]  }
 0x143   :  { %2392 = vmatprep.mubr.bf16.mxu1 %v4007_v16  ;;  %2553 = vmatprep.mubr.bf16.mxu0 %v4009_v17  ;;  %v4047_v17 = vld [vmem:[%s5730_s0 + $0x320] ss:$28 sps:$4 sm:$0xff]  }
 0x144   :  { %v4868_v20 = vpop.f32.mrb[24].mxu1  ;;  %3457 = vmatprep.subr.bf16.mxu1 %v4013_v18 }
 0x145   :  { %v1955_v21 = vpop.f32.mrb[25].mxu1 }
 0x146   :  { %v4873_v23 = vpop.f32.mrb[26].mxu1  ;;  %3458 = vmatpush3.bf16.msra.mxu1 %v4013_v18  ;;  %v4049_v18 = vld [vmem:[%s5730_s0 + $0x6d4] ss:$28 sps:$4 sm:$0xff]   ;;  %v4051_v21 = vld [vmem:[%s5730_s0 + $0x35c] ss:$28 sps:$4 sm:$0xff]  }
 0x147   :  { %v1958_v25 = vpop.f32.mrb[27].mxu1  ;;  %3459 = vmatprep.subr.bf16.mxu1 %v4020_v19 }
 0x149   :  { %2393 = vmatmul.mubr.bf16.gmra.mrb[100].mxu1 %v4011_v22 }
 0x14a   :  { %2554 = vmatmul.mubr.bf16.gmra.mrb[36].mxu0 %v4012_v55  ;;  %2400 = vmatprep.mubr.bf16.mxu1 %v4014_v24  ;;  %v4053_v24 = vld [vmem:[%s5730_s0 + $0x6d0] ss:$28 sps:$4 sm:$0xff]  }
 0x14b   :  { %2561 = vmatprep.mubr.bf16.mxu0 %v4016_v26  ;;  %3460 = vmatpush3.bf16.msra.mxu1 %v4020_v19  ;;  %v4054_v26 = vld [vmem:[%s5730_s0 + $0x358] ss:$28 sps:$4 sm:$0xff]  }
 0x14c   :  { %v4887_v27 = vpop.f32.mrb[28].mxu1  ;;  %3461 = vmatprep.subr.bf16.mxu1 %v4027_v0 }
 0x14d   :  { %v1963_v29 = vpop.f32.mrb[29].mxu1 }
 0x14e   :  { %v4895_v31 = vpop.f32.mrb[30].mxu1  ;;  %v4056_v29 = vld [vmem:[%s5730_s0 + $0x394] ss:$28 sps:$4 sm:$0xff]  }
 0x14f   :  { %v1966_v36 = vpop.f32.mrb[31].mxu1  ;;  %3462 = vmatpush3.bf16.msra.mxu1 %v4027_v0  ;;  %v4058_v0 = vld [vmem:[%s5730_s0 + $0x18] ss:$28 sps:$4 sm:$0xff]  }
 0x150   :  { %3463 = vmatprep.subr.bf16.mxu1 %v4034_v28 }
 0x151   :  { %2401 = vmatmul.mubr.bf16.gmra.mrb[104].mxu1 %v4018_v30 }
 0x152   :  { %2562 = vmatmul.mubr.bf16.gmra.mrb[40].mxu0 %v4019_v33  ;;  %2408 = vmatprep.mubr.bf16.mxu1 %v4021_v34  ;;  %v4060_v34 = vld [vmem:[%s5730_s0 + $0x50] ss:$28 sps:$4 sm:$0xff]  }
 0x153   :  { %2569 = vmatprep.mubr.bf16.mxu0 %v4023_v37  ;;  %3464 = vmatpush3.bf16.msra.mxu1 %v4034_v28  ;;  %v4059_v37 = vld [vmem:[%s5730_s0 + $0x390] ss:$28 sps:$4 sm:$0xff]  }
 0x154   :  { %v4909_v39 = vpop.f32.mrb[32].mxu1  ;;  %3465 = vmatprep.subr.bf16.mxu1 %v4041_v38 }
 0x155   :  { %v1971_v42 = vpop.f32.mrb[33].mxu1 }
 0x156   :  { %v4917_v45 = vpop.f32.mrb[34].mxu1  ;;  %v4061_v42 = vld [vmem:[%s5730_s0 + $0x3cc] ss:$28 sps:$4 sm:$0xff]  }
 0x157   :  { %v1974_v49 = vpop.f32.mrb[35].mxu1  ;;  %3466 = vmatpush3.bf16.msra.mxu1 %v4041_v38  ;;  %v4063_v38 = vld [vmem:[%s5730_s0 + $0x88] ss:$28 sps:$4 sm:$0xff]  }
 0x158   :  { %3467 = vmatprep.subr.bf16.mxu1 %v4048_v41 }
 0x159   :  { %2409 = vmatmul.mubr.bf16.gmra.mrb[108].mxu1 %v4025_v44 }
 0x15a   :  { %2570 = vmatmul.mubr.bf16.gmra.mrb[44].mxu0 %v4026_v46  ;;  %2416 = vmatprep.mubr.bf16.mxu1 %v4028_v47  ;;  %v4065_v47 = vld [vmem:[%s5730_s0 + $0xc0] ss:$28 sps:$4 sm:$0xff]  }
 0x15b   :  { %2577 = vmatprep.mubr.bf16.mxu0 %v4030_v50  ;;  %3468 = vmatpush3.bf16.msra.mxu1 %v4048_v41  ;;  %v4064_v50 = vld [vmem:[%s5730_s0 + $0x3c8] ss:$28 sps:$4 sm:$0xff]  }
 0x15c   :  { %v4931_v53 = vpop.f32.mrb[36].mxu1  ;;  %3469 = vmatprep.subr.bf16.mxu1 %v4055_v52 }
 0x15d   :  { %v1979_v54 = vpop.f32.mrb[37].mxu1 }
 0x15e   :  { %v4936_v58 = vpop.f32.mrb[38].mxu1 }
 0x15f   :  { %v1982_v62 = vpop.f32.mrb[39].mxu1  ;;  %3470 = vmatpush3.bf16.msra.mxu1 %v4055_v52  ;;  %v4068_v52 = vld [vmem:[%s5730_s0 + $0xf8] ss:$28 sps:$4 sm:$0xff]  }
 0x160   :  { %v4070_v62 = vld [vmem:[%s5730_s0 + $0x130] ss:$28 sps:$4 sm:$0xff]  }
 0x161   :  { %2417 = vmatmul.mubr.bf16.gmra.mrb[112].mxu1 %v4032_v56  ;;  %v4066_v56 = vld [vmem:[%s5730_s0 + $0x404] ss:$28 sps:$4 sm:$0xff]  }
 0x162   :  { %2578 = vmatmul.mubr.bf16.gmra.mrb[48].mxu0 %v4033_v59  ;;  %2424 = vmatprep.mubr.bf16.mxu1 %v4035_v61 }
 0x163   :  { %2585 = vmatprep.mubr.bf16.mxu0 %v4037_v63 }
 0x164   :  { %v4947_v1 = vpop.f32.mrb[40].mxu1 }
 0x165   :  { %v1987_v3 = vpop.f32.mrb[41].mxu1 }
 0x166   :  { %v4952_v6 = vpop.f32.mrb[42].mxu1  ;;  %v4069_v3 = vld [vmem:[%s5730_s0 + $0x400] ss:$28 sps:$4 sm:$0xff]  }
 0x167   :  { %v1990_v9 = vpop.f32.mrb[43].mxu1 }
 0x169   :  { %2425 = vmatmul.mubr.bf16.gmra.mrb[116].mxu1 %v4039_v4  ;;  %v4073_v4 = vld [vmem:[%s5730_s0 + $0x168] ss:$28 sps:$4 sm:$0xff]  }
 0x16a   :  { %2586 = vmatmul.mubr.bf16.gmra.mrb[52].mxu0 %v4040_v7  ;;  %2432 = vmatprep.mubr.bf16.mxu1 %v4042_v8  ;;  %v4071_v8 = vld [vmem:[%s5730_s0 + $0x43c] ss:$28 sps:$4 sm:$0xff]  }
 0x16b   :  { %2593 = vmatprep.mubr.bf16.mxu0 %v4044_v11 }
 0x16c   :  { %v4963_v12 = vpop.f32.mrb[44].mxu1 }
 0x16d   :  { %v1995_v14 = vpop.f32.mrb[45].mxu1 }
 0x16e   :  { %v4968_v16 = vpop.f32.mrb[46].mxu1  ;;  %v4075_v14 = vld [vmem:[%s5730_s0 + $0x1a0] ss:$28 sps:$4 sm:$0xff]  }
 0x16f   :  { %v1998_v19 = vpop.f32.mrb[47].mxu1 }
 0x171   :  { %2433 = vmatmul.mubr.bf16.gmra.mrb[120].mxu1 %v4046_v15 }
 0x172   :  { %2594 = vmatmul.mubr.bf16.gmra.mrb[56].mxu0 %v4047_v17  ;;  %2440 = vmatprep.mubr.bf16.mxu1 %v4049_v18  ;;  %v4074_v17 = vld [vmem:[%s5730_s0 + $0x438] ss:$28 sps:$4 sm:$0xff]  }
 0x173   :  { %2601 = vmatprep.mubr.bf16.mxu0 %v4051_v21  ;;  %v4078_v18 = vld [vmem:[%s5730_s0 + $0x1d8] ss:$28 sps:$4 sm:$0xff]  }
 0x174   :  { %v4979_v22 = vpop.f32.mrb[48].mxu1  ;;  %v4076_v21 = vld [vmem:[%s5730_s0 + $0x474] ss:$28 sps:$4 sm:$0xff]  }
 0x175   :  { %v2003_v55 = vpop.f32.mrb[49].mxu1 }
 0x176   :  { %v4984_v25 = vpop.f32.mrb[50].mxu1 }
 0x177   :  { %v2006_v28 = vpop.f32.mrb[51].mxu1 }
 0x178   :  { %v4079_v28 = vld [vmem:[%s5730_s0 + $0x470] ss:$28 sps:$4 sm:$0xff]  }
 0x179   :  { %2441 = vmatmul.mubr.bf16.gmra.mrb[124].mxu1 %v4053_v24 }
 0x17a   :  { %2602 = vmatmul.mubr.bf16.gmra.mrb[60].mxu0 %v4054_v26  ;;  %3471 = vmatprep.mubr.bf16.mxu1 %v4058_v0  ;;  %v4080_v26 = vld [vmem:[%s5730_s0 + $0x210] ss:$28 sps:$4 sm:$0xff]  }
 0x17b   :  { %2609 = vmatprep.mubr.bf16.mxu0 %v4056_v29  ;;  %v4083_v29 = vld [vmem:[%s5730_s0 + $0x248] ss:$28 sps:$4 sm:$0xff]  }
 0x17c   :  { %v4995_v30 = vpop.f32.mrb[52].mxu1 }
 0x17d   :  { %v2011_v33 = vpop.f32.mrb[53].mxu1 }
 0x17e   :  { %v5000_v36 = vpop.f32.mrb[54].mxu1 }
 0x17f   :  { %v2014_v41 = vpop.f32.mrb[55].mxu1 }
 0x180   :  { %v4085_v41 = vld [vmem:[%s5730_s0 + $0x280] ss:$28 sps:$4 sm:$0xff]  }
 0x181   :  { %3472 = vmatmul.mubr.bf16.vlgmr.msra.gmra.mrb[128].mxu1 %v4060_v34  ;;  %v4081_v34 = vld [vmem:[%s5730_s0 + $0x4ac] ss:$28 sps:$4 sm:$0xff]  }
 0x182   :  { %2610 = vmatmul.mubr.bf16.gmra.mrb[64].mxu0 %v4059_v37  ;;  %3475 = vmatprep.mubr.bf16.mxu1 %v4063_v38 }
 0x183   :  { %2617 = vmatprep.mubr.bf16.mxu0 %v4061_v42 }
 0x184   :  { %v5011_v44 = vpop.f32.mrb[56].mxu1 }
 0x185   :  { %v2019_v46 = vpop.f32.mrb[57].mxu1 }
 0x186   :  { %v5016_v49 = vpop.f32.mrb[58].mxu1  ;;  %v4084_v46 = vld [vmem:[%s5730_s0 + $0x4a8] ss:$28 sps:$4 sm:$0xff]  }
 0x187   :  { %v2022_v54 = vpop.f32.mrb[59].mxu1 }
 0x189   :  { %3476 = vmatmul.mubr.bf16.gmra.mrb[132].mxu1 %v4065_v47  ;;  %v4088_v47 = vld [vmem:[%s5730_s0 + $0x2b8] ss:$28 sps:$4 sm:$0xff]  }
 0x18a   :  { %2618 = vmatmul.mubr.bf16.gmra.mrb[68].mxu0 %v4064_v50  ;;  %3479 = vmatprep.mubr.bf16.mxu1 %v4068_v52  ;;  %v4086_v52 = vld [vmem:[%s5730_s0 + $0x4e4] ss:$28 sps:$4 sm:$0xff]  }
 0x18b   :  { %2625 = vmatprep.mubr.bf16.mxu0 %v4066_v56 }
 0x18c   :  { %v5027_v59 = vpop.f32.mrb[60].mxu1 }
 0x18d   :  { %v2027_v61 = vpop.f32.mrb[61].mxu1 }
 0x18e   :  { %v5032_v63 = vpop.f32.mrb[62].mxu1  ;;  %v4090_v61 = vld [vmem:[%s5730_s0 + $0x2f0] ss:$28 sps:$4 sm:$0xff]  }
 0x18f   :  { %v2030_v7 = vpop.f32.mrb[63].mxu1 }
 0x191   :  { %3480 = vmatmul.mubr.bf16.gmra.mrb[136].mxu1 %v4070_v62 }
 0x192   :  { %2626 = vmatmul.mubr.bf16.gmra.mrb[72].mxu0 %v4069_v3  ;;  %3483 = vmatprep.mubr.bf16.mxu1 %v4073_v4  ;;  %v4089_v3 = vld [vmem:[%s5730_s0 + $0x4e0] ss:$28 sps:$4 sm:$0xff]   ;;  %v4093_v4 = vld [vmem:[%s5730_s0 + $0x328] ss:$28 sps:$4 sm:$0xff]  }
 0x193   :  { %2633 = vmatprep.mubr.bf16.mxu0 %v4071_v8  ;;  %v4091_v8 = vld [vmem:[%s5730_s0 + $0x51c] ss:$28 sps:$4 sm:$0xff]  }
 0x194   :  { %v5043_v9 = vpop.f32.mrb[64].mxu1 }
 0x195   :  { %v2035_v11 = vpop.f32.mrb[65].mxu1 }
 0x196   :  { %v5048_v15 = vpop.f32.mrb[66].mxu1 }
 0x197   :  { %v2038_v19 = vpop.f32.mrb[67].mxu1 }
 0x198   :  { %v4094_v19 = vld [vmem:[%s5730_s0 + $0x518] ss:$28 sps:$4 sm:$0xff]  }
 0x199   :  { %3484 = vmatmul.mubr.bf16.gmra.mrb[140].mxu1 %v4075_v14 }
 0x19a   :  { %2634 = vmatmul.mubr.bf16.gmra.mrb[76].mxu0 %v4074_v17  ;;  %3487 = vmatprep.mubr.bf16.mxu1 %v4078_v18  ;;  %v4095_v17 = vld [vmem:[%s5730_s0 + $0x360] ss:$28 sps:$4 sm:$0xff]  }
 0x19b   :  { %2641 = vmatprep.mubr.bf16.mxu0 %v4076_v21  ;;  %v4098_v21 = vld [vmem:[%s5730_s0 + $0x398] ss:$28 sps:$4 sm:$0xff]  }
 0x19c   :  { %v5059_v55 = vpop.f32.mrb[68].mxu1 }
 0x19d   :  { %v2043_v24 = vpop.f32.mrb[69].mxu1 }
 0x19e   :  { %v5064_v0 = vpop.f32.mrb[70].mxu1 }
 0x19f   :  { %v2046_v33 = vpop.f32.mrb[71].mxu1 }
 0x1a0   :  { %v4100_v33 = vld [vmem:[%s5730_s0 + $0x3d0] ss:$28 sps:$4 sm:$0xff]  }
 0x1a1   :  { %3488 = vmatmul.mubr.bf16.gmra.mrb[144].mxu1 %v4080_v26  ;;  %v4096_v26 = vld [vmem:[%s5730_s0 + $0x554] ss:$28 sps:$4 sm:$0xff]  }
 0x1a2   :  { %2642 = vmatmul.mubr.bf16.gmra.mrb[80].mxu0 %v4079_v28  ;;  %3491 = vmatprep.mubr.bf16.mxu1 %v4083_v29 }
 0x1a3   :  { %2649 = vmatprep.mubr.bf16.mxu0 %v4081_v34 }
 0x1a4   :  { %v5075_v37 = vpop.f32.mrb[72].mxu1 }
 0x1a5   :  { %v2051_v38 = vpop.f32.mrb[73].mxu1 }
 0x1a6   :  { %v5080_v42 = vpop.f32.mrb[74].mxu1  ;;  %v4099_v38 = vld [vmem:[%s5730_s0 + $0x550] ss:$28 sps:$4 sm:$0xff]  }
 0x1a7   :  { %v2054_v50 = vpop.f32.mrb[75].mxu1 }
 0x1a9   :  { %3492 = vmatmul.mubr.bf16.gmra.mrb[148].mxu1 %v4085_v41  ;;  %v4103_v41 = vld [vmem:[%s5730_s0 + $0x408] ss:$28 sps:$4 sm:$0xff]  }
 0x1aa   :  { %2650 = vmatmul.mubr.bf16.gmra.mrb[84].mxu0 %v4084_v46  ;;  %3495 = vmatprep.mubr.bf16.mxu1 %v4088_v47  ;;  %v4101_v47 = vld [vmem:[%s5730_s0 + $0x58c] ss:$28 sps:$4 sm:$0xff]  }
 0x1ab   :  { %2657 = vmatprep.mubr.bf16.mxu0 %v4086_v52 }
 0x1ac   :  { %v5091_v54 = vpop.f32.mrb[76].mxu1 }
 0x1ad   :  { %v2059_v56 = vpop.f32.mrb[77].mxu1 }
 0x1ae   :  { %v5096_v62 = vpop.f32.mrb[78].mxu1  ;;  %v4105_v56 = vld [vmem:[%s5730_s0 + $0x440] ss:$28 sps:$4 sm:$0xff]  }
 0x1af   :  { %v2062_v7 = vpop.f32.mrb[79].mxu1 }
 0x1b1   :  { %3496 = vmatmul.mubr.bf16.gmra.mrb[152].mxu1 %v4090_v61 }
 0x1b2   :  { %2658 = vmatmul.mubr.bf16.gmra.mrb[88].mxu0 %v4089_v3  ;;  %3499 = vmatprep.mubr.bf16.mxu1 %v4093_v4  ;;  %v4104_v3 = vld [vmem:[%s5730_s0 + $0x588] ss:$28 sps:$4 sm:$0xff]   ;;  %v4108_v4 = vld [vmem:[%s5730_s0 + $0x478] ss:$28 sps:$4 sm:$0xff]  }
 0x1b3   :  { %2665 = vmatprep.mubr.bf16.mxu0 %v4091_v8  ;;  %v4106_v8 = vld [vmem:[%s5730_s0 + $0x5c4] ss:$28 sps:$4 sm:$0xff]  }
 0x1b4   :  { %v5107_v11 = vpop.f32.mrb[80].mxu1 }
 0x1b5   :  { %v2067_v14 = vpop.f32.mrb[81].mxu1 }
 0x1b6   :  { %v5112_v18 = vpop.f32.mrb[82].mxu1 }
 0x1b7   :  { %v2070_v24 = vpop.f32.mrb[83].mxu1 }
 0x1b8   :  { %v4109_v24 = vld [vmem:[%s5730_s0 + $0x5c0] ss:$28 sps:$4 sm:$0xff]  }
 0x1b9   :  { %3500 = vmatmul.mubr.bf16.gmra.mrb[156].mxu1 %v4095_v17 }
 0x1ba   :  { %2666 = vmatmul.mubr.bf16.gmra.mrb[92].mxu0 %v4094_v19  ;;  %3503 = vmatprep.mubr.bf16.mxu1 %v4098_v21  ;;  %v4110_v19 = vld [vmem:[%s5730_s0 + $0x4b0] ss:$28 sps:$4 sm:$0xff]  }
 0x1bb   :  { %2673 = vmatprep.mubr.bf16.mxu0 %v4096_v26  ;;  %v4113_v26 = vld [vmem:[%s5730_s0 + $0x4e8] ss:$28 sps:$4 sm:$0xff]  }
 0x1bc   :  { %v5123_v28 = vpop.f32.mrb[84].mxu1 }
 0x1bd   :  { %v2075_v29 = vpop.f32.mrb[85].mxu1 }
 0x1be   :  { %v5128_v34 = vpop.f32.mrb[86].mxu1 }
 0x1bf   :  { %v2078_v46 = vpop.f32.mrb[87].mxu1 }
 0x1c1   :  { %3504 = vmatmul.mubr.bf16.gmra.mrb[160].mxu1 %v4100_v33  ;;  %v4111_v33 = vld [vmem:[%s5730_s0 + $0x5fc] ss:$28 sps:$4 sm:$0xff]  }
 0x1c2   :  { %2674 = vmatmul.mubr.bf16.gmra.mrb[96].mxu0 %v4099_v38  ;;  %3507 = vmatprep.mubr.bf16.mxu1 %v4103_v41  ;;  %v4115_v41 = vld [vmem:[%s5730_s0 + $0x520] ss:$28 sps:$4 sm:$0xff]  }
 0x1c3   :  { %2681 = vmatprep.mubr.bf16.mxu0 %v4101_v47 }
 0x1c4   :  { %v5139_v50 = vpop.f32.mrb[88].mxu1 }
 0x1c5   :  { %v2083_v52 = vpop.f32.mrb[89].mxu1 }
 0x1c6   :  { %v5144_v61 = vpop.f32.mrb[90].mxu1  ;;  %v4114_v52 = vld [vmem:[%s5730_s0 + $0x5f8] ss:$28 sps:$4 sm:$0xff]  }
 0x1c7   :  { %v2086_v7 = vpop.f32.mrb[91].mxu1 }
 0x1c9   :  { %3508 = vmatmul.mubr.bf16.gmra.mrb[164].mxu1 %v4105_v56  ;;  %v4118_v56 = vld [vmem:[%s5730_s0 + $0x558] ss:$28 sps:$4 sm:$0xff]  }
 0x1ca   :  { %2682 = vmatmul.mubr.bf16.gmra.mrb[100].mxu0 %v4104_v3  ;;  %3511 = vmatprep.mubr.bf16.mxu1 %v4108_v4  ;;  %v4116_v4 = vld [vmem:[%s5730_s0 + $0x634] ss:$28 sps:$4 sm:$0xff]  }
 0x1cb   :  { %2689 = vmatprep.mubr.bf16.mxu0 %v4106_v8 }
 0x1cc   :  { %v5155_v14 = vpop.f32.mrb[92].mxu1 }
 0x1cd   :  { %v2091_v17 = vpop.f32.mrb[93].mxu1 }
 0x1ce   :  { %v5160_v21 = vpop.f32.mrb[94].mxu1  ;;  %v4120_v17 = vld [vmem:[%s5730_s0 + $0x590] ss:$28 sps:$4 sm:$0xff]  }
 0x1cf   :  { %v2094_v29 = vpop.f32.mrb[95].mxu1 }
 0x1d1   :  { %3512 = vmatmul.mubr.bf16.gmra.mrb[168].mxu1 %v4110_v19 }
 0x1d2   :  { %2690 = vmatmul.mubr.bf16.gmra.mrb[104].mxu0 %v4109_v24  ;;  %3515 = vmatprep.mubr.bf16.mxu1 %v4113_v26  ;;  %v4119_v26 = vld [vmem:[%s5730_s0 + $0x630] ss:$28 sps:$4 sm:$0xff]  }
 0x1d3   :  { %2697 = vmatprep.mubr.bf16.mxu0 %v4111_v33  ;;  %v4121_v33 = vld [vmem:[%s5730_s0 + $0x66c] ss:$28 sps:$4 sm:$0xff]  }
 0x1d5   :  { %v2483_v38 = vpop.f32.mrb[0].mxu0 }
 0x1d6   :  { %v5175_v46 = vadd.f32 %v2483_v38, %v4765_v32  ;;  %v2485_v47 = vpop.f32.mrb[1].mxu0 }
 0x1d7   :  { %v2486_v3 = vpop.f32.mrb[2].mxu0  ;;  %v4125_v47 = vld [vmem:[%s5730_s0 + $0x600] ss:$28 sps:$4 sm:$0xff]  }
 0x1d8   :  { %v5187_v7 = vadd.f32 %v2486_v3, %v4770_v35  ;;  %v2488_v8 = vpop.f32.mrb[3].mxu0  ;;  %v4123_v35 = vld [vmem:[%s5730_s0 + $0x5c8] ss:$28 sps:$4 sm:$0xff]  }
 0x1d9   :  { %3516 = vmatmul.mubr.bf16.gmra.mrb[172].mxu1 %v4115_v41  ;;  %v4124_v3 = vld [vmem:[%s5730_s0 + $0x668] ss:$28 sps:$4 sm:$0xff]  }
 0x1da   :  { %2698 = vmatmul.mubr.bf16.gmra.mrb[108].mxu0 %v4114_v52  ;;  %3519 = vmatprep.mubr.bf16.mxu1 %v4118_v56  ;;  %v4126_v8 = vld [vmem:[%s5730_s0 + $0x6a4] ss:$28 sps:$4 sm:$0xff]  }
 0x1db   :  { %2705 = vmatprep.mubr.bf16.mxu0 %v4116_v4 }
 0x1dd   :  { %v2491_v32 = vpop.f32.mrb[4].mxu0 }
 0x1de   :  { %v5193_v19 = vadd.f32 %v2491_v32, %v4781_v40  ;;  %v2493_v24 = vpop.f32.mrb[5].mxu0 }
 0x1df   :  { %v2494_v29 = vpop.f32.mrb[6].mxu0  ;;  %v4130_v24 = vld [vmem:[%s5730_s0 + $0x670] ss:$28 sps:$4 sm:$0xff]  }
 0x1e0   :  { %v5205_v38 = vadd.f32 %v2494_v29, %v4786_v43  ;;  %v2496_v41 = vpop.f32.mrb[7].mxu0  ;;  %v4128_v43 = vld [vmem:[%s5730_s0 + $0x638] ss:$28 sps:$4 sm:$0xff]   ;;  %v4129_v29 = vld [vmem:[%s5730_s0 + $0x6a0] ss:$28 sps:$4 sm:$0xff]  }
 0x1e1   :  { %3520 = vmatmul.mubr.bf16.gmra.mrb[176].mxu1 %v4120_v17  ;;  %v4131_v41 = vld [vmem:[%s5730_s0 + $0x6dc] ss:$28 sps:$4 sm:$0xff]  }
 0x1e2   :  { %2706 = vmatmul.mubr.bf16.gmra.mrb[112].mxu0 %v4119_v26  ;;  %3523 = vmatprep.mubr.bf16.mxu1 %v4123_v35 }
 0x1e3   :  { %2713 = vmatprep.mubr.bf16.mxu0 %v4121_v33 }
 0x1e5   :  { %v2499_v40 = vpop.f32.mrb[8].mxu0 }
 0x1e6   :  { %v5211_v52 = vadd.f32 %v2499_v40, %v4797_v48  ;;  %v2501_v56 = vpop.f32.mrb[9].mxu0 }
 0x1e7   :  { %v2502_v4 = vpop.f32.mrb[10].mxu0  ;;  %v4135_v56 = vld [vmem:[%s5730_s0 + $0x6e0] ss:$28 sps:$4 sm:$0xff]  }
 0x1e8   :  { %v5223_v32 = vadd.f32 %v2502_v4, %v4802_v51  ;;  %v2504_v17 = vpop.f32.mrb[11].mxu0  ;;  %v4133_v51 = vld [vmem:[%s5730_s0 + $0x6a8] ss:$28 sps:$4 sm:$0xff]   ;;  %v4134_v4 = vld [vmem:[%s5730_s0 + $0x6d8] ss:$28 sps:$4 sm:$0xff]  }
 0x1e9   :  { %3524 = vmatmul.mubr.bf16.gmra.mrb[180].mxu1 %v4125_v47 }
 0x1ea   :  { %2714 = vmatmul.mubr.bf16.gmra.mrb[116].mxu0 %v4124_v3  ;;  %3527 = vmatprep.mubr.bf16.mxu1 %v4128_v43 }
 0x1eb   :  { %2721 = vmatprep.mubr.bf16.mxu0 %v4126_v8 }
 0x1ed   :  { %v2507_v48 = vpop.f32.mrb[12].mxu0 }
 0x1ee   :  { %v5229_v26 = vadd.f32 %v2507_v48, %v4813_v57  ;;  %v2509_v35 = vpop.f32.mrb[13].mxu0 }
 0x1ef   :  { %v2510_v33 = vpop.f32.mrb[14].mxu0 }
 0x1f0   :  { %v5241_v40 = vadd.f32 %v2510_v33, %v4818_v60  ;;  %v2512_v47 = vpop.f32.mrb[15].mxu0 }
 0x1f1   :  { %3528 = vmatmul.mubr.bf16.gmra.mrb[184].mxu1 %v4130_v24 }
 0x1f2   :  { %2722 = vmatmul.mubr.bf16.gmra.mrb[120].mxu0 %v4129_v29  ;;  %3531 = vmatprep.mubr.bf16.mxu1 %v4133_v51 }
 0x1f3   :  { %2729 = vmatprep.mubr.bf16.mxu0 %v4131_v41 }
 0x1f5   :  { %v2515_v57 = vpop.f32.mrb[16].mxu0 }
 0x1f6   :  { %v5247_v3 = vadd.f32 %v2515_v57, %v4829_v2  ;;  %v2517_v43 = vpop.f32.mrb[17].mxu0 }
 0x1f7   :  { %v2518_v60 = vpop.f32.mrb[18].mxu0 }
 0x1f8   :  { %v5253_v8 = vadd.f32 %v2518_v60, %v4834_v5  ;;  %v2520_v17 = vpop.f32.mrb[19].mxu0 }
 0x1f9   :  { %3532 = vmatmul.mubr.bf16.gmra.mrb[188].mxu1 %v4135_v56 }
 0x1fa   :  { %2730 = vmatmul.mubr.bf16.gmra.mrb[124].mxu0 %v4134_v4 }
 0x1fd   :  { %v2523_v48 = vpop.f32.mrb[20].mxu0 }
 0x1fe   :  { %v5256_v24 = vadd.f32 %v2523_v48, %v4845_v10  ;;  %v2525_v35 = vpop.f32.mrb[21].mxu0 }
 0x1ff   :  { %v2526_v29 = vpop.f32.mrb[22].mxu0 }
 0x200   :  { %v5259_v2 = vadd.f32 %v2526_v29, %v4850_v13  ;;  %v2528_v51 = vpop.f32.mrb[23].mxu0 }
 0x205   :  { %v2531_v33 = vpop.f32.mrb[24].mxu0 }
 0x206   :  { %v5262_v41 = vadd.f32 %v2531_v33, %v4868_v20  ;;  %v2533_v47 = vpop.f32.mrb[25].mxu0 }
 0x207   :  { %v2534_v5 = vpop.f32.mrb[26].mxu0 }
 0x208   :  { %v5265_v57 = vadd.f32 %v2534_v5, %v4873_v23  ;;  %v2536_v56 = vpop.f32.mrb[27].mxu0 }
 0x20d   :  { %v2539_v43 = vpop.f32.mrb[28].mxu0 }
 0x20e   :  { %v5268_v10 = vadd.f32 %v2539_v43, %v4887_v27  ;;  %v2541_v4 = vpop.f32.mrb[29].mxu0 }
 0x20f   :  { %v2542_v60 = vpop.f32.mrb[30].mxu0 }
 0x210   :  { %v5271_v13 = vadd.f32 %v2542_v60, %v4895_v31  ;;  %v2544_v17 = vpop.f32.mrb[31].mxu0 }
 0x214   :  { %v5273_v48 = vpop.f32.mrb[96].mxu1 }
 0x215   :  { %v2547_v20 = vpop.f32.mrb[32].mxu0  ;;  %v2388_v35 = vpop.f32.mrb[97].mxu1 }
 0x216   :  { %v5276_v29 = vadd.f32 %v2547_v20, %v4909_v39  ;;  %v2549_v23 = vpop.f32.mrb[33].mxu0  ;;  %v5278_v51 = vpop.f32.mrb[98].mxu1 }
 0x217   :  { %v2550_v33 = vpop.f32.mrb[34].mxu0  ;;  %v2391_v47 = vpop.f32.mrb[99].mxu1 }
 0x218   :  { %v5281_v27 = vadd.f32 %v2550_v33, %v4917_v45  ;;  %v2552_v5 = vpop.f32.mrb[35].mxu0 }
 0x21c   :  { %v5283_v56 = vpop.f32.mrb[100].mxu1 }
 0x21d   :  { %5741 = vst [vmem:[#allocation2_spill] sm:$0xff] %v5283_v56  ;;  %v2555_v31 = vpop.f32.mrb[36].mxu0  ;;  %v2396_v43 = vpop.f32.mrb[101].mxu1 }
 0x21e   :  { %v5286_v4 = vadd.f32 %v2555_v31, %v4931_v53  ;;  %v2557_v60 = vpop.f32.mrb[37].mxu0  ;;  %v5288_v17 = vpop.f32.mrb[102].mxu1 }
 0x21f   :  { %5742 = vst [vmem:[#allocation3_spill] sm:$0xff] %v5288_v17  ;;  %v2558_v39 = vpop.f32.mrb[38].mxu0  ;;  %v2399_v20 = vpop.f32.mrb[103].mxu1 }
 0x220   :  { %v5291_v35 = vadd.f32 %v2558_v39, %v4936_v58  ;;  %v2560_v23 = vpop.f32.mrb[39].mxu0 }
 0x224   :  { %v5293_v47 = vpop.f32.mrb[104].mxu1 }
 0x225   :  { %5743 = vst [vmem:[#allocation4_spill] sm:$0xff] %v5293_v47  ;;  %v2563_v45 = vpop.f32.mrb[40].mxu0  ;;  %v2404_v33 = vpop.f32.mrb[105].mxu1 }
 0x226   :  { %v5296_v5 = vadd.f32 %v2563_v45, %v4947_v1  ;;  %v2565_v43 = vpop.f32.mrb[41].mxu0  ;;  %v5298_v56 = vpop.f32.mrb[106].mxu1 }
 0x227   :  { %5744 = vst [vmem:[#allocation5_spill] sm:$0xff] %v5298_v56  ;;  %v2566_v53 = vpop.f32.mrb[42].mxu0  ;;  %v2407_v31 = vpop.f32.mrb[107].mxu1 }
 0x228   :  { %v5301_v60 = vadd.f32 %v2566_v53, %v4952_v6  ;;  %v2568_v20 = vpop.f32.mrb[43].mxu0 }
 0x22c   :  { %v5303_v17 = vpop.f32.mrb[108].mxu1 }
 0x22d   :  { %5745 = vst [vmem:[#allocation6_spill] sm:$0xff] %v5303_v17  ;;  %v2571_v58 = vpop.f32.mrb[44].mxu0  ;;  %v2412_v39 = vpop.f32.mrb[109].mxu1 }
 0x22e   :  { %v5306_v23 = vadd.f32 %v2571_v58, %v4963_v12  ;;  %v2573_v33 = vpop.f32.mrb[45].mxu0  ;;  %v5308_v47 = vpop.f32.mrb[110].mxu1 }
 0x22f   :  { %5746 = vst [vmem:[#allocation7_spill] sm:$0xff] %v5308_v47  ;;  %v2574_v1 = vpop.f32.mrb[46].mxu0  ;;  %v2415_v45 = vpop.f32.mrb[111].mxu1 }
 0x230   :  { %v5311_v43 = vadd.f32 %v2574_v1, %v4968_v16  ;;  %v2576_v31 = vpop.f32.mrb[47].mxu0 }
 0x234   :  { %v5313_v56 = vpop.f32.mrb[112].mxu1 }
 0x235   :  { %5747 = vst [vmem:[#allocation8_spill] sm:$0xff] %v5313_v56  ;;  %v2579_v6 = vpop.f32.mrb[48].mxu0  ;;  %v2420_v53 = vpop.f32.mrb[113].mxu1 }
 0x236   :  { %v5316_v20 = vadd.f32 %v2579_v6, %v4979_v22  ;;  %v2581_v39 = vpop.f32.mrb[49].mxu0  ;;  %v5318_v17 = vpop.f32.mrb[114].mxu1 }
 0x237   :  { %5748 = vst [vmem:[#allocation9_spill] sm:$0xff] %v5318_v17  ;;  %v2582_v12 = vpop.f32.mrb[50].mxu0  ;;  %v2423_v58 = vpop.f32.mrb[115].mxu1 }
 0x238   :  { %v5321_v33 = vadd.f32 %v2582_v12, %v4984_v25  ;;  %v2584_v45 = vpop.f32.mrb[51].mxu0 }
 0x23c   :  { %v5323_v47 = vpop.f32.mrb[116].mxu1 }
 0x23d   :  { %5749 = vst [vmem:[#allocation10_spill] sm:$0xff] %v5323_v47  ;;  %v2587_v16 = vpop.f32.mrb[52].mxu0  ;;  %v2428_v1 = vpop.f32.mrb[117].mxu1 }
 0x23e   :  { %v5326_v31 = vadd.f32 %v2587_v16, %v4995_v30  ;;  %v2589_v53 = vpop.f32.mrb[53].mxu0  ;;  %v5328_v56 = vpop.f32.mrb[118].mxu1 }
 0x23f   :  { %5750 = vst [vmem:[#allocation11_spill] sm:$0xff] %v5328_v56  ;;  %v2590_v22 = vpop.f32.mrb[54].mxu0  ;;  %v2431_v6 = vpop.f32.mrb[119].mxu1 }
 0x240   :  { %v5331_v39 = vadd.f32 %v2590_v22, %v5000_v36  ;;  %v2592_v58 = vpop.f32.mrb[55].mxu0 }
 0x244   :  { %v5333_v17 = vpop.f32.mrb[120].mxu1 }
 0x245   :  { %5751 = vst [vmem:[#allocation12_spill] sm:$0xff] %v5333_v17  ;;  %v2595_v25 = vpop.f32.mrb[56].mxu0  ;;  %v2436_v12 = vpop.f32.mrb[121].mxu1 }
 0x246   :  { %v5336_v45 = vadd.f32 %v2595_v25, %v5011_v44  ;;  %v2597_v1 = vpop.f32.mrb[57].mxu0  ;;  %v5338_v47 = vpop.f32.mrb[122].mxu1 }
 0x247   :  { %5752 = vst [vmem:[#allocation13_spill] sm:$0xff] %v5338_v47  ;;  %v2598_v30 = vpop.f32.mrb[58].mxu0  ;;  %v2439_v16 = vpop.f32.mrb[123].mxu1 }
 0x248   :  { %v5341_v53 = vadd.f32 %v2598_v30, %v5016_v49  ;;  %v2600_v6 = vpop.f32.mrb[59].mxu0 }
 0x24c   :  { %v5343_v56 = vpop.f32.mrb[124].mxu1 }
 0x24d   :  { %v2603_v36 = vpop.f32.mrb[60].mxu0  ;;  %v2444_v22 = vpop.f32.mrb[125].mxu1 }
 0x24e   :  { %v5346_v58 = vadd.f32 %v2603_v36, %v5027_v59  ;;  %v2605_v12 = vpop.f32.mrb[61].mxu0  ;;  %v5348_v17 = vpop.f32.mrb[126].mxu1 }
 0x24f   :  { %5753 = vst [vmem:[#allocation14_spill] sm:$0xff] %v5348_v17  ;;  %v2606_v44 = vpop.f32.mrb[62].mxu0  ;;  %v2447_v25 = vpop.f32.mrb[127].mxu1 }
 0x250   :  { %v5351_v1 = vadd.f32 %v2606_v44, %v5032_v63  ;;  %v2608_v16 = vpop.f32.mrb[63].mxu0 }
 0x254   :  { %v3473_v47 = vpop.f32.mrb[128].mxu1 }
 0x255   :  { %v2611_v49 = vpop.f32.mrb[64].mxu0  ;;  %v5354_v30 = vadd.f32 %v5193_v19, %v3473_v47  ;;  %v2772_v6 = vpop.f32.mrb[129].mxu1 }
 0x256   :  { %v5357_v22 = vadd.f32 %v2611_v49, %v5043_v9  ;;  %v2613_v59 = vpop.f32.mrb[65].mxu0  ;;  %v5360_v36 = vadd.f32 %v5175_v46, %v2772_v6  ;;  %v3474_v12 = vpop.f32.mrb[130].mxu1 }
 0x257   :  { %v2614_v17 = vpop.f32.mrb[66].mxu0  ;;  %v5363_v25 = vadd.f32 %v5205_v38, %v3474_v12  ;;  %v2775_v63 = vpop.f32.mrb[131].mxu1 }
 0x258   :  { %v5366_v44 = vadd.f32 %v2614_v17, %v5048_v15  ;;  %v2616_v16 = vpop.f32.mrb[67].mxu0  ;;  %v5369_v19 = vadd.f32 %v5187_v7, %v2775_v63 }
 0x25c   :  { %v3477_v47 = vpop.f32.mrb[132].mxu1 }
 0x25d   :  { %v2619_v9 = vpop.f32.mrb[68].mxu0  ;;  %v5372_v49 = vadd.f32 %v5229_v26, %v3477_v47  ;;  %v2788_v46 = vpop.f32.mrb[133].mxu1 }
 0x25e   :  { %v5375_v6 = vadd.f32 %v2619_v9, %v5059_v55  ;;  %v2621_v59 = vpop.f32.mrb[69].mxu0  ;;  %v5378_v38 = vadd.f32 %v5211_v52, %v2788_v46  ;;  %v3478_v12 = vpop.f32.mrb[134].mxu1 }
 0x25f   :  { %v2622_v15 = vpop.f32.mrb[70].mxu0  ;;  %v5381_v17 = vadd.f32 %v5241_v40, %v3478_v12  ;;  %v2791_v7 = vpop.f32.mrb[135].mxu1 }
 0x260   :  { %v5384_v63 = vadd.f32 %v2622_v15, %v5064_v0  ;;  %v2624_v16 = vpop.f32.mrb[71].mxu0  ;;  %v5387_v26 = vadd.f32 %v5223_v32, %v2791_v7 }
 0x264   :  { %v3481_v47 = vpop.f32.mrb[136].mxu1 }
 0x265   :  { %v2627_v55 = vpop.f32.mrb[72].mxu0  ;;  %v5390_v9 = vadd.f32 %v5256_v24, %v3481_v47  ;;  %v2804_v52 = vpop.f32.mrb[137].mxu1 }
 0x266   :  { %v5393_v46 = vadd.f32 %v2627_v55, %v5075_v37  ;;  %v2629_v59 = vpop.f32.mrb[73].mxu0  ;;  %v5396_v40 = vadd.f32 %v5247_v3, %v2804_v52  ;;  %v3482_v12 = vpop.f32.mrb[138].mxu1 }
 0x267   :  { %v2630_v0 = vpop.f32.mrb[74].mxu0  ;;  %v5399_v15 = vadd.f32 %v5259_v2, %v3482_v12  ;;  %v2807_v32 = vpop.f32.mrb[139].mxu1 }
 0x268   :  { %v5402_v7 = vadd.f32 %v2630_v0, %v5080_v42  ;;  %v2632_v16 = vpop.f32.mrb[75].mxu0  ;;  %v5405_v24 = vadd.f32 %v5253_v8, %v2807_v32 }
 0x26c   :  { %v3485_v47 = vpop.f32.mrb[140].mxu1 }
 0x26d   :  { %v2635_v37 = vpop.f32.mrb[76].mxu0  ;;  %v5408_v55 = vadd.f32 %v5268_v10, %v3485_v47  ;;  %v2820_v3 = vpop.f32.mrb[141].mxu1 }
 0x26e   :  { %v5411_v52 = vadd.f32 %v2635_v37, %v5091_v54  ;;  %v2637_v59 = vpop.f32.mrb[77].mxu0  ;;  %v5414_v2 = vadd.f32 %v5262_v41, %v2820_v3  ;;  %v3486_v12 = vpop.f32.mrb[142].mxu1 }
 0x26f   :  { %5754 = vst [vmem:[#allocation15_spill] sm:$0xff] %v5408_v55  ;;  %v2638_v42 = vpop.f32.mrb[78].mxu0  ;;  %v5417_v0 = vadd.f32 %v5271_v13, %v3486_v12  ;;  %v2823_v8 = vpop.f32.mrb[143].mxu1 }
 0x270   :  { %5755 = vst [vmem:[#allocation16_spill] sm:$0xff] %v5414_v2  ;;  %v5420_v32 = vadd.f32 %v2638_v42, %v5096_v62  ;;  %v2640_v16 = vpop.f32.mrb[79].mxu0  ;;  %v5423_v10 = vadd.f32 %v5265_v57, %v2823_v8 }
 0x271   :  { %5756 = vst [vmem:[#allocation17_spill] sm:$0xff] %v5417_v0 }
 0x272   :  { %5757 = vst [vmem:[#allocation18_spill] sm:$0xff] %v5423_v10 }
 0x274   :  { %v3489_v47 = vpop.f32.mrb[144].mxu1 }
 0x275   :  { %v2643_v54 = vpop.f32.mrb[80].mxu0  ;;  %v5426_v37 = vadd.f32 %v5286_v4, %v3489_v47  ;;  %v2836_v41 = vpop.f32.mrb[145].mxu1 }
 0x276   :  { %v5429_v3 = vadd.f32 %v2643_v54, %v5107_v11  ;;  %v2645_v59 = vpop.f32.mrb[81].mxu0  ;;  %v5432_v13 = vadd.f32 %v5276_v29, %v2836_v41  ;;  %v3490_v12 = vpop.f32.mrb[146].mxu1 }
 0x277   :  { %v2646_v42 = vpop.f32.mrb[82].mxu0  ;;  %v5437_v57 = vadd.f32 %v5291_v35, %v3490_v12  ;;  %v2839_v8 = vpop.f32.mrb[147].mxu1 }
 0x278   :  { %v5442_v16 = vadd.f32 %v2646_v42, %v5112_v18  ;;  %v2648_v11 = vpop.f32.mrb[83].mxu0  ;;  %v5445_v47 = vadd.f32 %v5281_v27, %v2839_v8 }
 0x27c   :  { %v3493_v41 = vpop.f32.mrb[148].mxu1 }
 0x27d   :  { %v2651_v35 = vpop.f32.mrb[84].mxu0  ;;  %v5452_v59 = vadd.f32 %v5306_v23, %v3493_v41  ;;  %v2852_v12 = vpop.f32.mrb[149].mxu1 }
 0x27e   :  { %v5455_v4 = vadd.f32 %v2651_v35, %v5123_v28  ;;  %v2653_v18 = vpop.f32.mrb[85].mxu0  ;;  %v5458_v42 = vadd.f32 %v5296_v5, %v2852_v12  ;;  %v3494_v27 = vpop.f32.mrb[150].mxu1 }
 0x27f   :  { %v2654_v11 = vpop.f32.mrb[86].mxu0  ;;  %v5463_v54 = vadd.f32 %v5311_v43, %v3494_v27  ;;  %v2855_v29 = vpop.f32.mrb[151].mxu1 }
 0x280   :  { %v5468_v41 = vadd.f32 %v2654_v11, %v5128_v34  ;;  %v2656_v28 = vpop.f32.mrb[87].mxu0  ;;  %v5471_v35 = vadd.f32 %v5301_v60, %v2855_v29 }
 0x284   :  { %v3497_v18 = vpop.f32.mrb[152].mxu1 }
 0x285   :  { %v2659_v43 = vpop.f32.mrb[88].mxu0  ;;  %v5478_v27 = vadd.f32 %v5326_v31, %v3497_v18  ;;  %v2868_v8 = vpop.f32.mrb[153].mxu1 }
 0x286   :  { %v5481_v23 = vadd.f32 %v2659_v43, %v5139_v50  ;;  %v2661_v34 = vpop.f32.mrb[89].mxu0  ;;  %v5484_v11 = vadd.f32 %v5316_v20, %v2868_v8  ;;  %v3498_v60 = vpop.f32.mrb[154].mxu1 }
 0x287   :  { %v2662_v28 = vpop.f32.mrb[90].mxu0  ;;  %v5489_v12 = vadd.f32 %v5331_v39, %v3498_v60  ;;  %v2871_v5 = vpop.f32.mrb[155].mxu1 }
 0x288   :  { %v5494_v18 = vadd.f32 %v2662_v28, %v5144_v61  ;;  %v2664_v50 = vpop.f32.mrb[91].mxu0  ;;  %v5497_v43 = vadd.f32 %v5321_v33, %v2871_v5 }
 0x28c   :  { %v3501_v34 = vpop.f32.mrb[156].mxu1 }
 0x28d   :  { %v2667_v39 = vpop.f32.mrb[92].mxu0  ;;  %v5504_v60 = vadd.f32 %v5346_v58, %v3501_v34  ;;  %v2884_v29 = vpop.f32.mrb[157].mxu1 }
 0x28e   :  { %v3613_v31 = vadd.f32 %v2667_v39, %v5155_v14  ;;  %v2669_v61 = vpop.f32.mrb[93].mxu0  ;;  %v5508_v28 = vadd.f32 %v5336_v45, %v2884_v29  ;;  %v3502_v33 = vpop.f32.mrb[158].mxu1 }
 0x28f   :  { %5758 = vst [vmem:[#allocation19_spill] sm:$0xff] %v5504_v60  ;;  %v2670_v50 = vpop.f32.mrb[94].mxu0  ;;  %v5513_v20 = vadd.f32 %v5351_v1, %v3502_v33  ;;  %v2887_v8 = vpop.f32.mrb[159].mxu1 }
 0x290   :  { %5759 = vst [vmem:[#allocation20_spill] sm:$0xff] %v5508_v28  ;;  %v3614_v34 = vadd.f32 %v2670_v50, %v5160_v21  ;;  %v2672_v62 = vpop.f32.mrb[95].mxu0  ;;  %v5519_v14 = vadd.f32 %v5341_v53, %v2887_v8 }
 0x291   :  { %5760 = vst [vmem:[#allocation21_spill] sm:$0xff] %v5513_v20 }
 0x292   :  { %5761 = vst [vmem:[#allocation22_spill] sm:$0xff] %v5519_v14 }
 0x294   :  { %v3505_v39 = vpop.f32.mrb[160].mxu1 }
 0x295   :  { %v2675_v61 = vpop.f32.mrb[96].mxu0  ;;  %v5526_v1 = vadd.f32 %v5375_v6, %v3505_v39  ;;  %v2900_v33 = vpop.f32.mrb[161].mxu1 }
 0x296   :  { %v3615_v5 = vadd.f32 %v2675_v61, %v5273_v48  ;;  %v2677_v58 = vpop.f32.mrb[97].mxu0  ;;  %v5530_v21 = vadd.f32 %v5357_v22, %v2900_v33  ;;  %v3506_v53 = vpop.f32.mrb[162].mxu1  ;;  %v5762_v22 = vld [vmem:[#allocation2_spill] sm:$0xff] }
 0x297   :  { %v2678_v62 = vpop.f32.mrb[98].mxu0  ;;  %v5533_v8 = vadd.f32 %v5384_v63, %v3506_v53  ;;  %v2903_v50 = vpop.f32.mrb[163].mxu1 }
 0x298   :  { %v3616_v45 = vadd.f32 %v2678_v62, %v5278_v51  ;;  %v2680_v29 = vpop.f32.mrb[99].mxu0  ;;  %v5537_v20 = vadd.f32 %v5366_v44, %v2903_v50  ;;  %v5763_v44 = vld [vmem:[#allocation3_spill] sm:$0xff] }
 0x29c   :  { %v3509_v6 = vpop.f32.mrb[164].mxu1 }
 0x29d   :  { %v2683_v39 = vpop.f32.mrb[100].mxu0  ;;  %v5540_v48 = vadd.f32 %v5411_v52, %v3509_v6  ;;  %v2916_v58 = vpop.f32.mrb[165].mxu1 }
 0x29e   :  { %v3617_v61 = vadd.f32 %v2683_v39, %v5762_v22  ;;  %v2685_v33 = vpop.f32.mrb[101].mxu0  ;;  %v5544_v0 = vadd.f32 %v5393_v46, %v2916_v58  ;;  %v3510_v63 = vpop.f32.mrb[166].mxu1  ;;  %v5764_v46 = vld [vmem:[#allocation4_spill] sm:$0xff] }
 0x29f   :  { %v2686_v53 = vpop.f32.mrb[102].mxu0  ;;  %v5547_v51 = vadd.f32 %v5420_v32, %v3510_v63  ;;  %v2919_v29 = vpop.f32.mrb[167].mxu1 }
 0x2a0   :  { %v3618_v62 = vadd.f32 %v2686_v53, %v5763_v44  ;;  %v2688_v50 = vpop.f32.mrb[103].mxu0  ;;  %v5551_v14 = vadd.f32 %v5402_v7, %v2919_v29  ;;  %v5765_v7 = vld [vmem:[#allocation5_spill] sm:$0xff] }
 0x2a4   :  { %v3513_v52 = vpop.f32.mrb[168].mxu1 }
 0x2a5   :  { %v2691_v6 = vpop.f32.mrb[104].mxu0  ;;  %v5554_v39 = vadd.f32 %v5455_v4, %v3513_v52  ;;  %v2932_v22 = vpop.f32.mrb[169].mxu1 }
 0x2a6   :  { %v3619_v58 = vadd.f32 %v2691_v6, %v5764_v46  ;;  %v2693_v33 = vpop.f32.mrb[105].mxu0  ;;  %v5558_v10 = vadd.f32 %v5429_v3, %v2932_v22  ;;  %v3514_v32 = vpop.f32.mrb[170].mxu1  ;;  %v5767_v3 = vld [vmem:[#allocation6_spill] sm:$0xff] }
 0x2a7   :  { %v2694_v63 = vpop.f32.mrb[106].mxu0  ;;  %v5561_v53 = vadd.f32 %v5468_v41, %v3514_v32  ;;  %v2935_v44 = vpop.f32.mrb[171].mxu1 }
 0x2a8   :  { %v5564_v29 = vadd.f32 %v2694_v63, %v5765_v7  ;;  %v2696_v50 = vpop.f32.mrb[107].mxu0  ;;  %v5567_v4 = vadd.f32 %v5442_v16, %v2935_v44  ;;  %v5770_v7 = vld [vmem:[#allocation7_spill] sm:$0xff] }
 0x2ac   :  { %v3517_v52 = vpop.f32.mrb[172].mxu1 }
 0x2ad   :  { %v2699_v60 = vpop.f32.mrb[108].mxu0  ;;  %v5569_v6 = vadd.f32 %v3613_v31, %v3517_v52  ;;  %v2948_v46 = vpop.f32.mrb[173].mxu1 }
 0x2ae   :  { %v3621_v22 = vadd.f32 %v2699_v60, %v5767_v3  ;;  %v2701_v33 = vpop.f32.mrb[109].mxu0  ;;  %v5573_v55 = vadd.f32 %v5481_v23, %v2948_v46  ;;  %v3518_v41 = vpop.f32.mrb[174].mxu1  ;;  %v5771_v60 = vld [vmem:[#allocation8_spill] sm:$0xff] }
 0x2af   :  { %5766 = vst [vmem:[#allocation2_spill] sm:$0xff] %v5569_v6  ;;  %v2702_v32 = vpop.f32.mrb[110].mxu0  ;;  %v5575_v28 = vadd.f32 %v3614_v34, %v3518_v41  ;;  %v2951_v63 = vpop.f32.mrb[175].mxu1 }
 0x2b0   :  { %5768 = vst [vmem:[#allocation3_spill] sm:$0xff] %v5573_v55  ;;  %v3622_v50 = vadd.f32 %v2702_v32, %v5770_v7  ;;  %v2704_v16 = vpop.f32.mrb[111].mxu0  ;;  %v5579_v44 = vadd.f32 %v5494_v18, %v2951_v63  ;;  %v5588_v18 = vld [vmem:[%s5731_s2] ss:$0 sm:$0xff] }
 0x2b1   :  { %5769 = vst [vmem:[#allocation4_spill] sm:$0xff] %v5575_v28 }
 0x2b4   :  { %v3521_v31 = vpop.f32.mrb[176].mxu1 }
 0x2b5   :  { %v2707_v52 = vpop.f32.mrb[112].mxu0  ;;  %v2973_v2 = vadd.f32 %v3617_v61, %v3521_v31  ;;  %v2964_v6 = vpop.f32.mrb[177].mxu1  ;;  %v5772_v61 = vld [vmem:[#allocation9_spill] sm:$0xff] }
 0x2b6   :  { %v5582_v3 = vadd.f32 %v2707_v52, %v5771_v60  ;;  %v2709_v23 = vpop.f32.mrb[113].mxu0  ;;  %v2965_v46 = vadd.f32 %v3615_v5, %v2964_v6  ;;  %v3522_v33 = vpop.f32.mrb[178].mxu1  ;;  %v5773_v5 = vmax.f32 %v5354_v30, %v5426_v37  ;;  %v5776_v30 = vmax.f32 %v5369_v19, %v5445_v47 }
 0x2b7   :  { %v3045_v34 = vmax.f32 %v5526_v1, %v2973_v2  ;;  %v2710_v41 = vpop.f32.mrb[114].mxu0  ;;  %v2976_v28 = vadd.f32 %v3618_v62, %v3522_v33  ;;  %v2967_v55 = vpop.f32.mrb[179].mxu1  ;;  %v5774_v1 = vmax.f32 %v5360_v36, %v5432_v13  ;;  %v5777_v33 = vld [vmem:[#allocation10_spill] sm:$0xff] }
 0x2b8   :  { %v3043_v32 = vmax.f32 %v5530_v21, %v2965_v46  ;;  %v5592_v63 = vadd.f32 %v2710_v41, %v5772_v61  ;;  %v2712_v7 = vpop.f32.mrb[115].mxu0  ;;  %v2968_v16 = vadd.f32 %v3616_v45, %v2967_v55  ;;  %v5775_v21 = vmax.f32 %v5363_v25, %v5437_v57 }
 0x2b9   :  { %v3061_v6 = vmax.f32 %v5773_v5, %v3045_v34  ;;  %v3046_v2 = vmax.f32 %v5533_v8, %v2976_v28  ;;  %v5778_v5 = vld [vmem:[#allocation11_spill] sm:$0xff] }
 0x2ba   :  { %v3059_v62 = vmax.f32 %v5774_v1, %v3043_v32  ;;  %v3044_v31 = vmax.f32 %v5537_v20, %v2968_v16 }
 0x2bb   :  { %v3084_v52 = vadd.f32 %v5588_v18, %v3061_v6  ;;  %v3062_v60 = vmax.f32 %v5775_v21, %v3046_v2 }
 0x2bc   :  { %v3082_v55 = vadd.f32 %v5588_v18, %v3059_v62  ;;  %v3060_v37 = vmax.f32 %v5776_v30, %v3044_v31  ;;  %v3525_v45 = vpop.f32.mrb[180].mxu1 }
 0x2bd   :  { %v3100_v28 = vmax.f32 %v3084_v52, 0.0  ;;  %v3085_v8 = vadd.f32 %v5588_v18, %v3062_v60  ;;  %v2715_v36 = vpop.f32.mrb[116].mxu0  ;;  %v2989_v13 = vadd.f32 %v3621_v22, %v3525_v45  ;;  %v2980_v23 = vpop.f32.mrb[181].mxu1  ;;  %v5781_v52 = vmax.f32 %v5381_v17, %v5463_v54 }
 0x2be   :  { %v3098_v20 = vmax.f32 %v3082_v55, 0.0  ;;  %v3083_v46 = vadd.f32 %v5588_v18, %v3060_v37  ;;  %v3625_v34 = vadd.f32 %v2715_v36, %v5777_v33  ;;  %v2717_v25 = vpop.f32.mrb[117].mxu0  ;;  %v2981_v57 = vadd.f32 %v3619_v58, %v2980_v23  ;;  %v3526_v41 = vpop.f32.mrb[182].mxu1 }
 0x2bf   :  { %3116 = vst [vmem:[%s5732_s3 + $0x10] sm:$0xff] %v3100_v28  ;;  %v3101_v19 = vmax.f32 %v3085_v8, 0.0  ;;  %v3049_v47 = vmax.f32 %v5540_v48, %v2989_v13  ;;  %v2718_v32 = vpop.f32.mrb[118].mxu0  ;;  %v2992_v61 = vadd.f32 %v3622_v50, %v3526_v41  ;;  %v2983_v7 = vpop.f32.mrb[183].mxu1  ;;  %v5779_v48 = vmax.f32 %v5372_v49, %v5452_v59  ;;  %v5783_v28 = vld [vmem:[#allocation12_spill] sm:$0xff] }
 0x2c0   :  { %3114 = vst [vmem:[%s5732_s3] sm:$0xff] %v3098_v20  ;;  %v3099_v22 = vmax.f32 %v3083_v46, 0.0  ;;  %v3047_v16 = vmax.f32 %v5544_v0, %v2981_v57  ;;  %v3626_v58 = vadd.f32 %v2718_v32, %v5778_v5  ;;  %v2720_v6 = vpop.f32.mrb[119].mxu0  ;;  %v2984_v2 = vadd.f32 %v5564_v29, %v2983_v7 }
 0x2c1   :  { %3117 = vst [vmem:[%s5732_s3 + $0x18] sm:$0xff] %v3101_v19  ;;  %v3065_v50 = vmax.f32 %v5779_v48, %v3049_v47  ;;  %v3050_v1 = vmax.f32 %v5547_v51, %v2992_v61  ;;  %v5780_v0 = vmax.f32 %v5378_v38, %v5458_v42  ;;  %v5782_v59 = vmax.f32 %v5387_v26, %v5471_v35 }
 0x2c2   :  { %3115 = vst [vmem:[%s5732_s3 + $0x8] sm:$0xff] %v3099_v22  ;;  %v3048_v29 = vmax.f32 %v5551_v14, %v2984_v2  ;;  %v5787_v61 = vmax.f32 %v5399_v15, %v5489_v12 }
 0x2c3   :  { %v3063_v62 = vmax.f32 %v5780_v0, %v3047_v16  ;;  %v3088_v31 = vadd.f32 %v5588_v18, %v3065_v50  ;;  %v3066_v21 = vmax.f32 %v5781_v52, %v3050_v1  ;;  %v5789_v0 = vld [vmem:[#allocation3_spill] sm:$0xff] }
 0x2c4   :  { %v3064_v51 = vmax.f32 %v5782_v59, %v3048_v29  ;;  %v3529_v60 = vpop.f32.mrb[184].mxu1  ;;  %v5790_v29 = vld [vmem:[#allocation14_spill] sm:$0xff]  ;;  %v5792_v59 = vld [vmem:[#allocation16_spill] sm:$0xff] }
 0x2c5   :  { %v3086_v49 = vadd.f32 %v5588_v18, %v3063_v62  ;;  %v3104_v55 = vmax.f32 %v3088_v31, 0.0  ;;  %v3089_v30 = vadd.f32 %v5588_v18, %v3066_v21  ;;  %v2723_v38 = vpop.f32.mrb[120].mxu0  ;;  %v3005_v42 = vadd.f32 %v3625_v34, %v3529_v60  ;;  %v2996_v37 = vpop.f32.mrb[185].mxu1  ;;  %v5784_v34 = vld [vmem:[#allocation13_spill] sm:$0xff]  ;;  %v5791_v21 = vld [vmem:[#allocation2_spill] sm:$0xff] }
 0x2c6   :  { %v3087_v45 = vadd.f32 %v5588_v18, %v3064_v51  ;;  %v3627_v8 = vadd.f32 %v2723_v38, %v5783_v28  ;;  %v2725_v17 = vpop.f32.mrb[121].mxu0  ;;  %v2997_v54 = vadd.f32 %v5582_v3, %v2996_v37  ;;  %v3530_v36 = vpop.f32.mrb[186].mxu1  ;;  %v5793_v51 = vld [vmem:[#allocation20_spill] sm:$0xff]  ;;  %v5796_v37 = vld [vmem:[#allocation19_spill] sm:$0xff] }
 0x2c7   :  { %v3102_v14 = vmax.f32 %v3086_v49, 0.0  ;;  %3120 = vst [vmem:[%s5732_s3 + $0x30] sm:$0xff] %v3104_v55  ;;  %v3105_v26 = vmax.f32 %v3089_v30, 0.0  ;;  %v3053_v35 = vmax.f32 %v5554_v39, %v3005_v42  ;;  %v2726_v13 = vpop.f32.mrb[122].mxu0  ;;  %v3008_v23 = vadd.f32 %v3626_v58, %v3530_v36  ;;  %v2999_v20 = vpop.f32.mrb[187].mxu1  ;;  %v5795_v42 = vld [vmem:[#allocation15_spill] sm:$0xff] }
 0x2c8   :  { %v3103_v46 = vmax.f32 %v3087_v45, 0.0  ;;  %v3051_v33 = vmax.f32 %v5558_v10, %v2997_v54  ;;  %v3628_v3 = vadd.f32 %v2726_v13, %v5784_v34  ;;  %v2728_v25 = vpop.f32.mrb[123].mxu0  ;;  %v3000_v57 = vadd.f32 %v5592_v63, %v2999_v20  ;;  %v5799_v54 = vld [vmem:[#allocation18_spill] sm:$0xff]  ;;  %v5802_v20 = vld [vmem:[#allocation17_spill] sm:$0xff] }
 0x2c9   :  { %3118 = vst [vmem:[%s5732_s3 + $0x20] sm:$0xff] %v3102_v14  ;;  %3121 = vst [vmem:[%s5732_s3 + $0x38] sm:$0xff] %v3105_v26  ;;  %v5785_v39 = vmax.f32 %v5390_v9, %v5478_v27  ;;  %v3054_v19 = vmax.f32 %v5561_v53, %v3008_v23  ;;  %v5786_v10 = vmax.f32 %v5396_v40, %v5484_v11  ;;  %v5800_v36 = vld [vmem:[#allocation22_spill] sm:$0xff] }
 0x2ca   :  { %3119 = vst [vmem:[%s5732_s3 + $0x28] sm:$0xff] %v3103_v46  ;;  %v3052_v63 = vmax.f32 %v5567_v4, %v3000_v57  ;;  %v5788_v27 = vmax.f32 %v5405_v24, %v5497_v43  ;;  %v5794_v60 = vmax.f32 %v5792_v59, %v5793_v51  ;;  %v5797_v14 = vmax.f32 %v5795_v42, %v5796_v37  ;;  %v5803_v46 = vld [vmem:[#allocation21_spill] sm:$0xff] }
 0x2cb   :  { %v3069_v41 = vmax.f32 %v5785_v39, %v3053_v35  ;;  %v3067_v47 = vmax.f32 %v5786_v10, %v3051_v33  ;;  %v3070_v7 = vmax.f32 %v5787_v61, %v3054_v19  ;;  %v5801_v26 = vmax.f32 %v5799_v54, %v5800_v36 }
 0x2cc   :  { %v3068_v53 = vmax.f32 %v5788_v27, %v3052_v63  ;;  %v3533_v22 = vpop.f32.mrb[188].mxu1  ;;  %v5804_v33 = vmax.f32 %v5802_v20, %v5803_v46 }
 0x2cd   :  { %v3092_v32 = vadd.f32 %v5588_v18, %v3069_v41  ;;  %v3090_v9 = vadd.f32 %v5588_v18, %v3067_v47  ;;  %v3093_v5 = vadd.f32 %v5588_v18, %v3070_v7  ;;  %v2731_v40 = vpop.f32.mrb[124].mxu0  ;;  %v3012_v11 = vpop.f32.mrb[189].mxu1 }
 0x2ce   :  { %v3091_v4 = vadd.f32 %v5588_v18, %v3068_v53  ;;  %v3629_v6 = vadd.f32 %v2731_v40, %v5343_v56  ;;  %v2733_v2 = vpop.f32.mrb[125].mxu0  ;;  %v3013_v15 = vadd.f32 %v3627_v8, %v3012_v11  ;;  %v3534_v12 = vpop.f32.mrb[190].mxu1  ;;  %v5798_v8 = vld [vmem:[#allocation4_spill] sm:$0xff] }
 0x2cf   :  { %v3108_v16 = vmax.f32 %v3092_v32, 0.0  ;;  %v3106_v58 = vmax.f32 %v3090_v9, 0.0  ;;  %v3109_v24 = vmax.f32 %v3093_v5, 0.0  ;;  %v2734_v43 = vpop.f32.mrb[126].mxu0  ;;  %v3015_v48 = vpop.f32.mrb[191].mxu1 }
 0x2d0   :  { %v3107_v50 = vmax.f32 %v3091_v4, 0.0  ;;  %v3021_v1 = vadd.f32 %v3629_v6, %v3533_v22  ;;  %v3055_v62 = vmax.f32 %v5789_v0, %v3013_v15  ;;  %v3630_v56 = vadd.f32 %v2734_v43, %v5790_v29  ;;  %v2736_v31 = vpop.f32.mrb[127].mxu0 }
 0x2d1   :  { %3124 = vst [vmem:[%s5732_s3 + $0x50] sm:$0xff] %v3108_v16  ;;  %3122 = vst [vmem:[%s5732_s3 + $0x40] sm:$0xff] %v3106_v58  ;;  %v3016_v52 = vadd.f32 %v3628_v3, %v3015_v48 }
 0x2d2   :  { %3125 = vst [vmem:[%s5732_s3 + $0x58] sm:$0xff] %v3109_v24  ;;  %3123 = vst [vmem:[%s5732_s3 + $0x48] sm:$0xff] %v3107_v50  ;;  %v3057_v49 = vmax.f32 %v5791_v21, %v3021_v1  ;;  %v3071_v55 = vmax.f32 %v5794_v60, %v3055_v62  ;;  %v3024_v30 = vadd.f32 %v3630_v56, %v3534_v12 }
 0x2d3   :  { %v3056_v38 = vmax.f32 %v5579_v44, %v3016_v52 }
 0x2d4   :  { %v3073_v45 = vmax.f32 %v5797_v14, %v3057_v49  ;;  %v3094_v28 = vadd.f32 %v5588_v18, %v3071_v55  ;;  %v3058_v17 = vmax.f32 %v5798_v8, %v3024_v30 }
 0x2d5   :  { %v3072_v35 = vmax.f32 %v5801_v26, %v3056_v38 }
 0x2d6   :  { %v3096_v13 = vadd.f32 %v5588_v18, %v3073_v45  ;;  %v3110_v23 = vmax.f32 %v3094_v28, 0.0  ;;  %v3074_v34 = vmax.f32 %v5804_v33, %v3058_v17 }
 0x2d7   :  { %v3095_v44 = vadd.f32 %v5588_v18, %v3072_v35 }
 0x2d8   :  { %v3112_v3 = vmax.f32 %v3096_v13, 0.0  ;;  %3126 = vst [vmem:[%s5732_s3 + $0x60] sm:$0xff] %v3110_v23  ;;  %v3097_v25 = vadd.f32 %v5588_v18, %v3074_v34 }
 0x2d9   :  { %v3111_v57 = vmax.f32 %v3095_v44, 0.0 }
 0x2da   :  { %3128 = vst [vmem:[%s5732_s3 + $0x70] sm:$0xff] %v3112_v3  ;;  %v3113_v39 = vmax.f32 %v3097_v25, 0.0 }
 0x2db   :  { %3127 = vst [vmem:[%s5732_s3 + $0x68] sm:$0xff] %v3111_v57 }
 0x2dc   :  { %3129 = vst [vmem:[%s5732_s3 + $0x78] sm:$0xff] %v3113_v39 }

// kernel: example_model_forward.6
= control target key start
LH: loop header
LB: loop body
LE: loop exit
PB: predicated region body
PF: predicated region fallthrough
CT: control target
= control target key end

     0   :  { %s3896_s1 = inlined_call_operand.vmem [shape: bf16[1664,128], index: 1, kind: input, shape index: {}]   ;;  %s3897_s0 = inlined_call_operand.vmem [shape: bf16[4,32,1664], index: 0, kind: input, shape index: {}]   ;;  %s3898_s2 = inlined_call_operand.vmem [shape: f32[1,128], index: 2, kind: input, shape index: {}]   ;;  %s3899_s3 = inlined_call_operand.vmem [shape: f32[32,128], index: 3, kind: output, shape index: {}]  }
   0x1   :  { %v2858_v0 = vld [vmem:[%s3896_s1 + $0x40] sm:$0xff]   ;;  %v2862_v4 = vld [vmem:[%s3896_s1 + $0x48] sm:$0xff]   ;;  %v2866_v8 = vld [vmem:[%s3896_s1 + $0x50] sm:$0xff]  }
   0x2   :  { %v2859_v1 = vld [vmem:[%s3896_s1 + $0xc0] sm:$0xff]   ;;  %2410 = vmatprep.subr.bf16.mxu0 %v2858_v0  ;;  %v2863_v5 = vld [vmem:[%s3896_s1 + $0xc8] sm:$0xff]   ;;  %v2867_v9 = vld [vmem:[%s3896_s1 + $0xd0] sm:$0xff]  }
   0x3   :  { %v2860_v2 = vld [vmem:[%s3896_s1] sm:$0xff]   ;;  %2474 = vmatprep.subr.bf16.mxu1 %v2859_v1  ;;  %v2864_v6 = vld [vmem:[%s3896_s1 + $0x8] sm:$0xff]   ;;  %v2868_v10 = vld [vmem:[%s3896_s1 + $0x10] sm:$0xff]  }
   0x4   :  { %v2861_v3 = vld [vmem:[%s3896_s1 + $0x80] sm:$0xff]   ;;  %2411 = vmatpush3.bf16.msra.mxu0 %v2860_v2  ;;  %v2865_v7 = vld [vmem:[%s3896_s1 + $0x88] sm:$0xff]   ;;  %v2869_v11 = vld [vmem:[%s3896_s1 + $0x90] sm:$0xff]  }
   0x5   :  { %2475 = vmatpush3.bf16.msra.mxu1 %v2861_v3  ;;  %2412 = vmatprep.subr.bf16.mxu0 %v2862_v4  ;;  %v2870_v12 = vld [vmem:[%s3896_s1 + $0x58] sm:$0xff]   ;;  %v2874_v16 = vld [vmem:[%s3896_s1 + $0x60] sm:$0xff]   ;;  %v2878_v20 = vld [vmem:[%s3896_s1 + $0x68] sm:$0xff]  }
   0x6   :  { %2476 = vmatprep.subr.bf16.mxu1 %v2863_v5  ;;  %v2871_v13 = vld [vmem:[%s3896_s1 + $0xd8] sm:$0xff]   ;;  %v2875_v17 = vld [vmem:[%s3896_s1 + $0xe0] sm:$0xff]   ;;  %v2879_v21 = vld [vmem:[%s3896_s1 + $0xe8] sm:$0xff]  }
   0x7   :  { %v2872_v14 = vld [vmem:[%s3896_s1 + $0x18] sm:$0xff]   ;;  %v2876_v18 = vld [vmem:[%s3896_s1 + $0x20] sm:$0xff]   ;;  %v2880_v22 = vld [vmem:[%s3896_s1 + $0x28] sm:$0xff]  }
   0x8   :  { %2413 = vmatpush3.bf16.msra.mxu0 %v2864_v6  ;;  %v2873_v15 = vld [vmem:[%s3896_s1 + $0x98] sm:$0xff]   ;;  %v2877_v19 = vld [vmem:[%s3896_s1 + $0xa0] sm:$0xff]   ;;  %v2881_v23 = vld [vmem:[%s3896_s1 + $0xa8] sm:$0xff]  }
   0x9   :  { %2477 = vmatpush3.bf16.msra.mxu1 %v2865_v7  ;;  %2414 = vmatprep.subr.bf16.mxu0 %v2866_v8  ;;  %v2882_v24 = vld [vmem:[%s3896_s1 + $0x70] sm:$0xff]   ;;  %v2886_v28 = vld [vmem:[%s3896_s1 + $0x78] sm:$0xff]   ;;  %v2895_v35 = vld [vmem:[%s3897_s0 + $0xc] ss:$52 sps:$4 sm:$0xff]  }
   0xa   :  { %2478 = vmatprep.subr.bf16.mxu1 %v2867_v9  ;;  %v2883_v25 = vld [vmem:[%s3896_s1 + $0xf0] sm:$0xff]   ;;  %v2887_v29 = vld [vmem:[%s3896_s1 + $0xf8] sm:$0xff]   ;;  %v2896_v36 = vld [vmem:[%s3896_s1 + $0x140] sm:$0xff]   ;;  %1616 = vmatprep.mubr.bf16.mxu1 %v2895_v35 }
   0xb   :  { %v2884_v26 = vld [vmem:[%s3896_s1 + $0x30] sm:$0xff]   ;;  %v2888_v30 = vld [vmem:[%s3896_s1 + $0x38] sm:$0xff]   ;;  %v2897_v37 = vld [vmem:[%s3896_s1 + $0x1c0] sm:$0xff]  }
   0xc   :  { %2415 = vmatpush3.bf16.msra.mxu0 %v2868_v10  ;;  %v2885_v27 = vld [vmem:[%s3896_s1 + $0xb0] sm:$0xff]   ;;  %v2889_v31 = vld [vmem:[%s3896_s1 + $0xb8] sm:$0xff]   ;;  %v2898_v38 = vld [vmem:[%s3896_s1 + $0x100] sm:$0xff]  }
   0xd   :  { %2479 = vmatpush3.bf16.msra.mxu1 %v2869_v11  ;;  %2416 = vmatprep.subr.bf16.mxu0 %v2870_v12  ;;  %v2890_v32 = vld [vmem:[%s3897_s0] ss:$52 sps:$4 sm:$0xff]   ;;  %v2892_v33 = vld [vmem:[%s3897_s0 + $0x4] ss:$52 sps:$4 sm:$0xff]   ;;  %v2893_v34 = vld [vmem:[%s3897_s0 + $0x8] ss:$52 sps:$4 sm:$0xff]  }
   0xe   :  { %2480 = vmatprep.subr.bf16.mxu1 %v2871_v13  ;;  %1519 = vmatprep.mubr.bf16.mxu0 %v2892_v33  ;;  %v2899_v39 = vld [vmem:[%s3896_s1 + $0x180] sm:$0xff]   ;;  %v2902_v41 = vld [vmem:[%s3897_s0 + $0x74] ss:$52 sps:$4 sm:$0xff]   ;;  %v2912_v49 = vld [vmem:[%s3897_s0 + $0xdc] ss:$52 sps:$4 sm:$0xff]  }
   0xf   :  { %v2900_v40 = vld [vmem:[%s3897_s0 + $0x6c] ss:$52 sps:$4 sm:$0xff]   ;;  %v2904_v42 = vld [vmem:[%s3897_s0 + $0x68] ss:$52 sps:$4 sm:$0xff]   ;;  %v2905_v43 = vld [vmem:[%s3897_s0 + $0x70] ss:$52 sps:$4 sm:$0xff]  }
  0x10   :  { %2417 = vmatpush3.bf16.msra.mxu0 %v2872_v14  ;;  %v2906_v44 = vld [vmem:[%s3896_s1 + $0x148] sm:$0xff]   ;;  %v2914_v50 = vld [vmem:[%s3897_s0 + $0xd0] ss:$52 sps:$4 sm:$0xff]   ;;  %v2925_v59 = vld [vmem:[%s3897_s0 + $0x140] ss:$52 sps:$4 sm:$0xff]  }
  0x11   :  { %2481 = vmatpush3.bf16.msra.mxu1 %v2873_v15  ;;  %2418 = vmatprep.subr.bf16.mxu0 %v2874_v16  ;;  %v2907_v45 = vld [vmem:[%s3896_s1 + $0x1c8] sm:$0xff]   ;;  %v2916_v52 = vld [vmem:[%s3896_s1 + $0x150] sm:$0xff]   ;;  %v2922_v57 = vld [vmem:[%s3897_s0 + $0x144] ss:$52 sps:$4 sm:$0xff]  }
  0x12   :  { %2482 = vmatprep.subr.bf16.mxu1 %v2875_v17  ;;  %v2908_v46 = vld [vmem:[%s3896_s1 + $0x108] sm:$0xff]   ;;  %v2917_v53 = vld [vmem:[%s3896_s1 + $0x1d0] sm:$0xff]   ;;  %v2926_v60 = vld [vmem:[%s3896_s1 + $0x158] sm:$0xff]  }
  0x13   :  { %v2909_v47 = vld [vmem:[%s3896_s1 + $0x188] sm:$0xff]   ;;  %v2918_v54 = vld [vmem:[%s3896_s1 + $0x110] sm:$0xff]   ;;  %v2927_v61 = vld [vmem:[%s3896_s1 + $0x1d8] sm:$0xff]  }
  0x14   :  { %2419 = vmatpush3.bf16.msra.mxu0 %v2876_v18  ;;  %v2910_v48 = vld [vmem:[%s3897_s0 + $0xd4] ss:$52 sps:$4 sm:$0xff]   ;;  %v2915_v51 = vld [vmem:[%s3897_s0 + $0xd8] ss:$52 sps:$4 sm:$0xff]   ;;  %v2920_v56 = vld [vmem:[%s3897_s0 + $0x13c] ss:$52 sps:$4 sm:$0xff]  }
  0x15   :  { %2483 = vmatpush3.bf16.msra.mxu1 %v2877_v19  ;;  %2420 = vmatprep.subr.bf16.mxu0 %v2878_v20  ;;  %v2919_v55 = vld [vmem:[%s3896_s1 + $0x190] sm:$0xff]   ;;  %v2924_v58 = vld [vmem:[%s3897_s0 + $0x138] ss:$52 sps:$4 sm:$0xff]   ;;  %v2936_v3 = vld [vmem:[%s3896_s1 + $0x160] sm:$0xff]  }
  0x16   :  { %2484 = vmatprep.subr.bf16.mxu1 %v2879_v21  ;;  %v2928_v62 = vld [vmem:[%s3896_s1 + $0x118] sm:$0xff]   ;;  %v2932_v1 = vld [vmem:[%s3897_s0 + $0x1ac] ss:$52 sps:$4 sm:$0xff]   ;;  %v2942_v9 = vld [vmem:[%s3897_s0 + $0x214] ss:$52 sps:$4 sm:$0xff]  }
  0x17   :  { %v2929_v63 = vld [vmem:[%s3896_s1 + $0x198] sm:$0xff]   ;;  %v2934_v2 = vld [vmem:[%s3897_s0 + $0x1a0] ss:$52 sps:$4 sm:$0xff]   ;;  %v2946_v10 = vld [vmem:[%s3896_s1 + $0x168] sm:$0xff]  }
  0x18   :  { %2421 = vmatpush3.bf16.msra.mxu0 %v2880_v22  ;;  %v2930_v0 = vld [vmem:[%s3897_s0 + $0x1a4] ss:$52 sps:$4 sm:$0xff]   ;;  %v2935_v4 = vld [vmem:[%s3897_s0 + $0x1a8] ss:$52 sps:$4 sm:$0xff]   ;;  %v2940_v8 = vld [vmem:[%s3897_s0 + $0x20c] ss:$52 sps:$4 sm:$0xff]  }
  0x19   :  { %2485 = vmatpush3.bf16.msra.mxu1 %v2881_v23  ;;  %2422 = vmatprep.subr.bf16.mxu0 %v2882_v24  ;;  %v2937_v5 = vld [vmem:[%s3896_s1 + $0x1e0] sm:$0xff]   ;;  %v2947_v11 = vld [vmem:[%s3896_s1 + $0x1e8] sm:$0xff]   ;;  %v2952_v17 = vld [vmem:[%s3897_s0 + $0x27c] ss:$52 sps:$4 sm:$0xff]  }
  0x1a   :  { %2486 = vmatprep.subr.bf16.mxu1 %v2883_v25  ;;  %v2938_v6 = vld [vmem:[%s3896_s1 + $0x120] sm:$0xff]   ;;  %v2944_v12 = vld [vmem:[%s3897_s0 + $0x208] ss:$52 sps:$4 sm:$0xff]   ;;  %v2956_v18 = vld [vmem:[%s3896_s1 + $0x170] sm:$0xff]  }
  0x1b   :  { %v2939_v7 = vld [vmem:[%s3896_s1 + $0x1a0] sm:$0xff]   ;;  %v2948_v13 = vld [vmem:[%s3896_s1 + $0x128] sm:$0xff]   ;;  %v2957_v19 = vld [vmem:[%s3896_s1 + $0x1f0] sm:$0xff]  }
  0x1c   :  { %2423 = vmatpush3.bf16.msra.mxu0 %v2884_v26  ;;  %v2949_v14 = vld [vmem:[%s3896_s1 + $0x1a8] sm:$0xff]   ;;  %v2945_v15 = vld [vmem:[%s3897_s0 + $0x210] ss:$52 sps:$4 sm:$0xff]   ;;  %v2966_v26 = vld [vmem:[%s3896_s1 + $0x178] sm:$0xff]  }
  0x1d   :  { %2487 = vmatpush3.bf16.msra.mxu1 %v2885_v27  ;;  %2424 = vmatprep.subr.bf16.mxu0 %v2886_v28  ;;  %v2950_v16 = vld [vmem:[%s3897_s0 + $0x274] ss:$52 sps:$4 sm:$0xff]   ;;  %v2954_v22 = vld [vmem:[%s3897_s0 + $0x270] ss:$52 sps:$4 sm:$0xff]   ;;  %v2955_v23 = vld [vmem:[%s3897_s0 + $0x278] ss:$52 sps:$4 sm:$0xff]  }
  0x1e   :  { %2488 = vmatprep.subr.bf16.mxu1 %v2887_v29  ;;  %v2958_v20 = vld [vmem:[%s3896_s1 + $0x130] sm:$0xff]   ;;  %v2962_v25 = vld [vmem:[%s3897_s0 + $0x2e4] ss:$52 sps:$4 sm:$0xff]  }
  0x1f   :  { %v2959_v21 = vld [vmem:[%s3896_s1 + $0x1b0] sm:$0xff]   ;;  %v2967_v27 = vld [vmem:[%s3896_s1 + $0x1f8] sm:$0xff]   ;;  %v2976_v33 = vld [vmem:[%s3896_s1 + $0x240] sm:$0xff]  }
  0x20   :  { %2425 = vmatpush3.bf16.msra.mxu0 %v2888_v30  ;;  %v2960_v24 = vld [vmem:[%s3897_s0 + $0x2dc] ss:$52 sps:$4 sm:$0xff]   ;;  %v2964_v30 = vld [vmem:[%s3897_s0 + $0x2d8] ss:$52 sps:$4 sm:$0xff]  }
  0x21   :  { %2489 = vmatpush3.bf16.msra.mxu1 %v2889_v31  ;;  %2538 = vmatprep.subr.bf16.mxu0 %v2896_v36  ;;  %v2968_v28 = vld [vmem:[%s3896_s1 + $0x138] sm:$0xff]   ;;  %v2965_v31 = vld [vmem:[%s3897_s0 + $0x2e0] ss:$52 sps:$4 sm:$0xff]   ;;  %v2970_v36 = vld [vmem:[%s3897_s0 + $0x10] ss:$52 sps:$4 sm:$0xff]  }
  0x22   :  { %2602 = vmatprep.subr.bf16.mxu1 %v2897_v37  ;;  %v2969_v29 = vld [vmem:[%s3896_s1 + $0x1b8] sm:$0xff]  }
  0x23   :  { %1520 = vmatmul.mubr.bf16.vlgmr.msra.gmra.mrb[0].mxu0 %v2890_v32  ;;  %v2972_v32 = vld [vmem:[%s3897_s0 + $0x14] ss:$52 sps:$4 sm:$0xff]   ;;  %v2975_v35 = vld [vmem:[%s3897_s0 + $0x1c] ss:$52 sps:$4 sm:$0xff]   ;;  %v2973_v37 = vld [vmem:[%s3897_s0 + $0x18] ss:$52 sps:$4 sm:$0xff]  }
  0x24   :  { %1617 = vmatmul.mubr.bf16.vlgmr.msra.gmra.mrb[0].mxu1 %v2893_v34  ;;  %2539 = vmatpush3.bf16.msra.mxu0 %v2898_v38  ;;  %v2977_v34 = vld [vmem:[%s3896_s1 + $0x2c0] sm:$0xff]  }
  0x25   :  { %2603 = vmatpush3.bf16.msra.mxu1 %v2899_v39  ;;  %1527 = vmatprep.mubr.bf16.mxu0 %v2900_v40  ;;  %v2978_v38 = vld [vmem:[%s3896_s1 + $0x200] sm:$0xff]   ;;  %v2980_v40 = vld [vmem:[%s3897_s0 + $0x7c] ss:$52 sps:$4 sm:$0xff]  }
  0x26   :  { %1624 = vmatprep.mubr.bf16.mxu1 %v2902_v41  ;;  %2540 = vmatprep.subr.bf16.mxu0 %v2906_v44  ;;  %v2979_v39 = vld [vmem:[%s3896_s1 + $0x280] sm:$0xff]   ;;  %v2988_v44 = vld [vmem:[%s3896_s1 + $0x208] sm:$0xff]  }
  0x27   :  { %2604 = vmatprep.subr.bf16.mxu1 %v2907_v45  ;;  %v2982_v41 = vld [vmem:[%s3897_s0 + $0x84] ss:$52 sps:$4 sm:$0xff]   ;;  %v2989_v45 = vld [vmem:[%s3896_s1 + $0x288] sm:$0xff]  }
  0x28   :  { %2541 = vmatpush3.bf16.msra.mxu0 %v2908_v46  ;;  %v2984_v46 = vld [vmem:[%s3897_s0 + $0x78] ss:$52 sps:$4 sm:$0xff]  }
  0x29   :  { %2605 = vmatpush3.bf16.msra.mxu1 %v2909_v47  ;;  %2542 = vmatprep.subr.bf16.mxu0 %v2916_v52  ;;  %v2996_v47 = vld [vmem:[%s3896_s1 + $0x250] sm:$0xff]  }
  0x2a   :  { %2606 = vmatprep.subr.bf16.mxu1 %v2917_v53  ;;  %v2998_v52 = vld [vmem:[%s3896_s1 + $0x210] sm:$0xff]  }
  0x2b   :  { %1528 = vmatmul.mubr.bf16.gmra.mrb[4].mxu0 %v2904_v42  ;;  %v2986_v42 = vld [vmem:[%s3896_s1 + $0x248] sm:$0xff]   ;;  %v2999_v53 = vld [vmem:[%s3896_s1 + $0x290] sm:$0xff]  }
  0x2c   :  { %1625 = vmatmul.mubr.bf16.gmra.mrb[4].mxu1 %v2905_v43  ;;  %1535 = vmatprep.mubr.bf16.mxu0 %v2910_v48  ;;  %v2987_v43 = vld [vmem:[%s3896_s1 + $0x2c8] sm:$0xff]   ;;  %v2985_v48 = vld [vmem:[%s3897_s0 + $0x80] ss:$52 sps:$4 sm:$0xff]  }
  0x2d   :  { %1632 = vmatprep.mubr.bf16.mxu1 %v2912_v49  ;;  %2543 = vmatpush3.bf16.msra.mxu0 %v2918_v54  ;;  %v2997_v49 = vld [vmem:[%s3896_s1 + $0x2d0] sm:$0xff]   ;;  %v3006_v54 = vld [vmem:[%s3896_s1 + $0x258] sm:$0xff]  }
  0x2e   :  { %2607 = vmatpush3.bf16.msra.mxu1 %v2919_v55  ;;  %2544 = vmatprep.subr.bf16.mxu0 %v2926_v60  ;;  %v3007_v55 = vld [vmem:[%s3896_s1 + $0x2d8] sm:$0xff]   ;;  %v3000_v60 = vld [vmem:[%s3897_s0 + $0x14c] ss:$52 sps:$4 sm:$0xff]  }
  0x2f   :  { %2608 = vmatprep.subr.bf16.mxu1 %v2927_v61  ;;  %v3002_v61 = vld [vmem:[%s3897_s0 + $0x154] ss:$52 sps:$4 sm:$0xff]  }
  0x31   :  { %2545 = vmatpush3.bf16.msra.mxu0 %v2928_v62  ;;  %v3016_v62 = vld [vmem:[%s3896_s1 + $0x260] sm:$0xff]  }
  0x32   :  { %2609 = vmatpush3.bf16.msra.mxu1 %v2929_v63  ;;  %2546 = vmatprep.subr.bf16.mxu0 %v2936_v3  ;;  %v3017_v63 = vld [vmem:[%s3896_s1 + $0x2e0] sm:$0xff]  }
  0x33   :  { %1536 = vmatmul.mubr.bf16.gmra.mrb[8].mxu0 %v2914_v50  ;;  %2610 = vmatprep.subr.bf16.mxu1 %v2937_v5  ;;  %v2990_v50 = vld [vmem:[%s3897_s0 + $0xe4] ss:$52 sps:$4 sm:$0xff]   ;;  %v3012_v5 = vld [vmem:[%s3897_s0 + $0x1bc] ss:$52 sps:$4 sm:$0xff]  }
  0x34   :  { %1633 = vmatmul.mubr.bf16.gmra.mrb[8].mxu1 %v2915_v51  ;;  %1543 = vmatprep.mubr.bf16.mxu0 %v2920_v56  ;;  %v2992_v51 = vld [vmem:[%s3897_s0 + $0xec] ss:$52 sps:$4 sm:$0xff]   ;;  %v3005_v3 = vld [vmem:[%s3897_s0 + $0x150] ss:$52 sps:$4 sm:$0xff]  }
  0x35   :  { %1640 = vmatprep.mubr.bf16.mxu1 %v2922_v57  ;;  %2547 = vmatpush3.bf16.msra.mxu0 %v2938_v6  ;;  %v2994_v56 = vld [vmem:[%s3897_s0 + $0xe0] ss:$52 sps:$4 sm:$0xff]   ;;  %v3008_v57 = vld [vmem:[%s3896_s1 + $0x218] sm:$0xff]   ;;  %v3026_v6 = vld [vmem:[%s3896_s1 + $0x268] sm:$0xff]  }
  0x36   :  { %2611 = vmatpush3.bf16.msra.mxu1 %v2939_v7  ;;  %2548 = vmatprep.subr.bf16.mxu0 %v2946_v10  ;;  %v3027_v7 = vld [vmem:[%s3896_s1 + $0x2e8] sm:$0xff]   ;;  %v3014_v10 = vld [vmem:[%s3897_s0 + $0x1b0] ss:$52 sps:$4 sm:$0xff]  }
  0x37   :  { %2612 = vmatprep.subr.bf16.mxu1 %v2947_v11  ;;  %v3015_v11 = vld [vmem:[%s3897_s0 + $0x1b8] ss:$52 sps:$4 sm:$0xff]  }
  0x39   :  { %2549 = vmatpush3.bf16.msra.mxu0 %v2948_v13  ;;  %v3022_v13 = vld [vmem:[%s3897_s0 + $0x224] ss:$52 sps:$4 sm:$0xff]  }
  0x3a   :  { %2613 = vmatpush3.bf16.msra.mxu1 %v2949_v14  ;;  %2550 = vmatprep.subr.bf16.mxu0 %v2956_v18  ;;  %v3036_v14 = vld [vmem:[%s3896_s1 + $0x270] sm:$0xff]   ;;  %v3024_v18 = vld [vmem:[%s3897_s0 + $0x218] ss:$52 sps:$4 sm:$0xff]  }
  0x3b   :  { %1544 = vmatmul.mubr.bf16.gmra.mrb[12].mxu0 %v2924_v58  ;;  %2614 = vmatprep.subr.bf16.mxu1 %v2957_v19  ;;  %v3009_v58 = vld [vmem:[%s3896_s1 + $0x298] sm:$0xff]   ;;  %v3025_v19 = vld [vmem:[%s3897_s0 + $0x220] ss:$52 sps:$4 sm:$0xff]  }
  0x3c   :  { %1641 = vmatmul.mubr.bf16.gmra.mrb[12].mxu1 %v2925_v59  ;;  %1551 = vmatprep.mubr.bf16.mxu0 %v2930_v0  ;;  %v2995_v59 = vld [vmem:[%s3897_s0 + $0xe8] ss:$52 sps:$4 sm:$0xff]   ;;  %v3018_v0 = vld [vmem:[%s3896_s1 + $0x220] sm:$0xff]  }
  0x3d   :  { %1648 = vmatprep.mubr.bf16.mxu1 %v2932_v1  ;;  %2551 = vmatpush3.bf16.msra.mxu0 %v2958_v20  ;;  %v3019_v1 = vld [vmem:[%s3896_s1 + $0x2a0] sm:$0xff]  }
  0x3e   :  { %2615 = vmatpush3.bf16.msra.mxu1 %v2959_v21  ;;  %2552 = vmatprep.subr.bf16.mxu0 %v2966_v26  ;;  %v3030_v20 = vld [vmem:[%s3897_s0 + $0x284] ss:$52 sps:$4 sm:$0xff]  }
  0x3f   :  { %2616 = vmatprep.subr.bf16.mxu1 %v2967_v27  ;;  %v3046_v21 = vld [vmem:[%s3896_s1 + $0x278] sm:$0xff]   ;;  %v3056_v26 = vld [vmem:[%s3896_s1 + $0x300] sm:$0xff]  }
  0x40   :  { %v3034_v27 = vld [vmem:[%s3897_s0 + $0x280] ss:$52 sps:$4 sm:$0xff]  }
  0x41   :  { %2553 = vmatpush3.bf16.msra.mxu0 %v2968_v28  ;;  %v3035_v28 = vld [vmem:[%s3897_s0 + $0x288] ss:$52 sps:$4 sm:$0xff]  }
  0x42   :  { %2617 = vmatpush3.bf16.msra.mxu1 %v2969_v29  ;;  %2666 = vmatprep.subr.bf16.mxu0 %v2976_v33  ;;  %v3040_v29 = vld [vmem:[%s3897_s0 + $0x2ec] ss:$52 sps:$4 sm:$0xff]   ;;  %v3052_v33 = vld [vmem:[%s3897_s0 + $0x24] ss:$52 sps:$4 sm:$0xff]  }
  0x43   :  { %1552 = vmatmul.mubr.bf16.gmra.mrb[16].mxu0 %v2934_v2  ;;  %2730 = vmatprep.subr.bf16.mxu1 %v2977_v34  ;;  %v3004_v2 = vld [vmem:[%s3897_s0 + $0x148] ss:$52 sps:$4 sm:$0xff]   ;;  %v3055_v34 = vld [vmem:[%s3897_s0 + $0x2c] ss:$52 sps:$4 sm:$0xff]  }
  0x44   :  { %1649 = vmatmul.mubr.bf16.gmra.mrb[16].mxu1 %v2935_v4  ;;  %1559 = vmatprep.mubr.bf16.mxu0 %v2940_v8  ;;  %v3010_v4 = vld [vmem:[%s3897_s0 + $0x1b4] ss:$52 sps:$4 sm:$0xff]  }
  0x45   :  { %1656 = vmatprep.mubr.bf16.mxu1 %v2942_v9  ;;  %v3028_v8 = vld [vmem:[%s3896_s1 + $0x228] sm:$0xff]  }
  0x46   :  { %v3029_v9 = vld [vmem:[%s3896_s1 + $0x2a8] sm:$0xff]  }
  0x4b   :  { %1560 = vmatmul.mubr.bf16.gmra.mrb[20].mxu0 %v2944_v12  ;;  %v3020_v12 = vld [vmem:[%s3897_s0 + $0x21c] ss:$52 sps:$4 sm:$0xff]  }
  0x4c   :  { %1657 = vmatmul.mubr.bf16.gmra.mrb[20].mxu1 %v2945_v15  ;;  %1567 = vmatprep.mubr.bf16.mxu0 %v2950_v16  ;;  %v3037_v15 = vld [vmem:[%s3896_s1 + $0x2f0] sm:$0xff]  }
  0x4d   :  { %1664 = vmatprep.mubr.bf16.mxu1 %v2952_v17  ;;  %v3038_v16 = vld [vmem:[%s3896_s1 + $0x230] sm:$0xff]  }
  0x4e   :  { %v3039_v17 = vld [vmem:[%s3896_s1 + $0x2b0] sm:$0xff]  }
  0x53   :  { %1568 = vmatmul.mubr.bf16.gmra.mrb[24].mxu0 %v2954_v22  ;;  %v3032_v22 = vld [vmem:[%s3897_s0 + $0x28c] ss:$52 sps:$4 sm:$0xff]  }
  0x54   :  { %1665 = vmatmul.mubr.bf16.gmra.mrb[24].mxu1 %v2955_v23  ;;  %1575 = vmatprep.mubr.bf16.mxu0 %v2960_v24  ;;  %v3047_v23 = vld [vmem:[%s3896_s1 + $0x2f8] sm:$0xff]  }
  0x55   :  { %1672 = vmatprep.mubr.bf16.mxu1 %v2962_v25  ;;  %v3048_v24 = vld [vmem:[%s3896_s1 + $0x238] sm:$0xff]  }
  0x56   :  { %v3049_v25 = vld [vmem:[%s3896_s1 + $0x2b8] sm:$0xff]  }
  0x5b   :  { %1576 = vmatmul.mubr.bf16.gmra.mrb[28].mxu0 %v2964_v30  ;;  %v3042_v30 = vld [vmem:[%s3897_s0 + $0x2f4] ss:$52 sps:$4 sm:$0xff]  }
  0x5c   :  { %1673 = vmatmul.mubr.bf16.gmra.mrb[28].mxu1 %v2965_v31  ;;  %1713 = vmatprep.mubr.bf16.mxu0 %v2972_v32  ;;  %v3044_v31 = vld [vmem:[%s3897_s0 + $0x2e8] ss:$52 sps:$4 sm:$0xff]   ;;  %v3045_v32 = vld [vmem:[%s3897_s0 + $0x2f0] ss:$52 sps:$4 sm:$0xff]  }
  0x5d   :  { %1810 = vmatprep.mubr.bf16.mxu1 %v2975_v35  ;;  %v3050_v35 = vld [vmem:[%s3897_s0 + $0x20] ss:$52 sps:$4 sm:$0xff]  }
  0x63   :  { %1714 = vmatmul.mubr.bf16.vlgmr.msra.gmra.mrb[32].mxu0 %v2970_v36  ;;  %v3053_v36 = vld [vmem:[%s3897_s0 + $0x28] ss:$52 sps:$4 sm:$0xff]  }
  0x64   :  { %1811 = vmatmul.mubr.bf16.vlgmr.msra.gmra.mrb[32].mxu1 %v2973_v37  ;;  %2667 = vmatpush3.bf16.msra.mxu0 %v2978_v38  ;;  %v3057_v37 = vld [vmem:[%s3897_s0 + $0x8c] ss:$52 sps:$4 sm:$0xff]   ;;  %v3059_v38 = vld [vmem:[%s3897_s0 + $0x94] ss:$52 sps:$4 sm:$0xff]  }
  0x65   :  { %2731 = vmatpush3.bf16.msra.mxu1 %v2979_v39  ;;  %1721 = vmatprep.mubr.bf16.mxu0 %v2980_v40  ;;  %v3063_v39 = vld [vmem:[%s3896_s1 + $0x308] sm:$0xff]   ;;  %v3070_v40 = vld [vmem:[%s3896_s1 + $0x310] sm:$0xff]  }
  0x66   :  { %1818 = vmatprep.mubr.bf16.mxu1 %v2982_v41  ;;  %2668 = vmatprep.subr.bf16.mxu0 %v2986_v42  ;;  %v3061_v41 = vld [vmem:[%s3897_s0 + $0x88] ss:$52 sps:$4 sm:$0xff]   ;;  %v3062_v42 = vld [vmem:[%s3897_s0 + $0x90] ss:$52 sps:$4 sm:$0xff]  }
  0x67   :  { %2732 = vmatprep.subr.bf16.mxu1 %v2987_v43  ;;  %v3064_v43 = vld [vmem:[%s3897_s0 + $0xf4] ss:$52 sps:$4 sm:$0xff]  }
  0x68   :  { %2669 = vmatpush3.bf16.msra.mxu0 %v2988_v44  ;;  %v3066_v44 = vld [vmem:[%s3897_s0 + $0xfc] ss:$52 sps:$4 sm:$0xff]  }
  0x69   :  { %2733 = vmatpush3.bf16.msra.mxu1 %v2989_v45  ;;  %2670 = vmatprep.subr.bf16.mxu0 %v2996_v47  ;;  %v3077_v45 = vld [vmem:[%s3896_s1 + $0x318] sm:$0xff]   ;;  %v3068_v47 = vld [vmem:[%s3897_s0 + $0xf0] ss:$52 sps:$4 sm:$0xff]  }
  0x6a   :  { %2734 = vmatprep.subr.bf16.mxu1 %v2997_v49  ;;  %v3071_v49 = vld [vmem:[%s3897_s0 + $0x15c] ss:$52 sps:$4 sm:$0xff]  }
  0x6b   :  { %1722 = vmatmul.mubr.bf16.gmra.mrb[36].mxu0 %v2984_v46  ;;  %v3084_v46 = vld [vmem:[%s3896_s1 + $0x320] sm:$0xff]  }
  0x6c   :  { %1819 = vmatmul.mubr.bf16.gmra.mrb[36].mxu1 %v2985_v48  ;;  %1729 = vmatprep.mubr.bf16.mxu0 %v2990_v50  ;;  %v3069_v48 = vld [vmem:[%s3897_s0 + $0xf8] ss:$52 sps:$4 sm:$0xff]  }
  0x6d   :  { %1826 = vmatprep.mubr.bf16.mxu1 %v2992_v51  ;;  %2671 = vmatpush3.bf16.msra.mxu0 %v2998_v52  ;;  %v3073_v50 = vld [vmem:[%s3897_s0 + $0x164] ss:$52 sps:$4 sm:$0xff]   ;;  %v3091_v51 = vld [vmem:[%s3896_s1 + $0x328] sm:$0xff]   ;;  %v3098_v52 = vld [vmem:[%s3896_s1 + $0x330] sm:$0xff]  }
  0x6e   :  { %2735 = vmatpush3.bf16.msra.mxu1 %v2999_v53  ;;  %2672 = vmatprep.subr.bf16.mxu0 %v3006_v54  ;;  %v3075_v53 = vld [vmem:[%s3897_s0 + $0x158] ss:$52 sps:$4 sm:$0xff]   ;;  %v3076_v54 = vld [vmem:[%s3897_s0 + $0x160] ss:$52 sps:$4 sm:$0xff]  }
  0x6f   :  { %2736 = vmatprep.subr.bf16.mxu1 %v3007_v55  ;;  %v3078_v55 = vld [vmem:[%s3897_s0 + $0x1c4] ss:$52 sps:$4 sm:$0xff]  }
  0x71   :  { %2673 = vmatpush3.bf16.msra.mxu0 %v3008_v57  ;;  %v3105_v57 = vld [vmem:[%s3896_s1 + $0x338] sm:$0xff]  }
  0x72   :  { %2737 = vmatpush3.bf16.msra.mxu1 %v3009_v58  ;;  %2674 = vmatprep.subr.bf16.mxu0 %v3016_v62  ;;  %v3082_v58 = vld [vmem:[%s3897_s0 + $0x1c0] ss:$52 sps:$4 sm:$0xff]   ;;  %v3089_v62 = vld [vmem:[%s3897_s0 + $0x228] ss:$52 sps:$4 sm:$0xff]  }
  0x73   :  { %1730 = vmatmul.mubr.bf16.gmra.mrb[40].mxu0 %v2994_v56  ;;  %2738 = vmatprep.subr.bf16.mxu1 %v3017_v63  ;;  %v3080_v56 = vld [vmem:[%s3897_s0 + $0x1cc] ss:$52 sps:$4 sm:$0xff]   ;;  %v3090_v63 = vld [vmem:[%s3897_s0 + $0x230] ss:$52 sps:$4 sm:$0xff]  }
  0x74   :  { %1827 = vmatmul.mubr.bf16.gmra.mrb[40].mxu1 %v2995_v59  ;;  %1737 = vmatprep.mubr.bf16.mxu0 %v3000_v60  ;;  %v3083_v59 = vld [vmem:[%s3897_s0 + $0x1c8] ss:$52 sps:$4 sm:$0xff]   ;;  %v3085_v60 = vld [vmem:[%s3897_s0 + $0x22c] ss:$52 sps:$4 sm:$0xff]  }
  0x75   :  { %1834 = vmatprep.mubr.bf16.mxu1 %v3002_v61  ;;  %2675 = vmatpush3.bf16.msra.mxu0 %v3018_v0  ;;  %v3087_v61 = vld [vmem:[%s3897_s0 + $0x234] ss:$52 sps:$4 sm:$0xff]  }
  0x76   :  { %2739 = vmatpush3.bf16.msra.mxu1 %v3019_v1  ;;  %2676 = vmatprep.subr.bf16.mxu0 %v3026_v6  ;;  %v3092_v0 = vld [vmem:[%s3897_s0 + $0x294] ss:$52 sps:$4 sm:$0xff]   ;;  %v3094_v1 = vld [vmem:[%s3897_s0 + $0x29c] ss:$52 sps:$4 sm:$0xff]   ;;  %v3103_v6 = vld [vmem:[%s3897_s0 + $0x2f8] ss:$52 sps:$4 sm:$0xff]  }
  0x77   :  { %2740 = vmatprep.subr.bf16.mxu1 %v3027_v7  ;;  %v3104_v7 = vld [vmem:[%s3897_s0 + $0x300] ss:$52 sps:$4 sm:$0xff]  }
  0x79   :  { %2677 = vmatpush3.bf16.msra.mxu0 %v3028_v8  ;;  %v3106_v8 = vld [vmem:[%s3897_s0 + $0x30] ss:$52 sps:$4 sm:$0xff]  }
  0x7a   :  { %2741 = vmatpush3.bf16.msra.mxu1 %v3029_v9  ;;  %2678 = vmatprep.subr.bf16.mxu0 %v3036_v14  ;;  %v3107_v9 = vld [vmem:[%s3897_s0 + $0x1d0] ss:$52 sps:$4 sm:$0xff]   ;;  %v3112_v14 = vld [vmem:[%s3897_s0 + $0x168] ss:$52 sps:$4 sm:$0xff]  }
  0x7b   :  { %1738 = vmatmul.mubr.bf16.gmra.mrb[44].mxu0 %v3004_v2  ;;  %2742 = vmatprep.subr.bf16.mxu1 %v3037_v15  ;;  %v3096_v2 = vld [vmem:[%s3897_s0 + $0x290] ss:$52 sps:$4 sm:$0xff]   ;;  %v3113_v15 = vld [vmem:[%s3897_s0 + $0x308] ss:$52 sps:$4 sm:$0xff]  }
  0x7c   :  { %1835 = vmatmul.mubr.bf16.gmra.mrb[44].mxu1 %v3005_v3  ;;  %1745 = vmatprep.mubr.bf16.mxu0 %v3010_v4  ;;  %v3097_v3 = vld [vmem:[%s3897_s0 + $0x298] ss:$52 sps:$4 sm:$0xff]   ;;  %v3099_v4 = vld [vmem:[%s3897_s0 + $0x2fc] ss:$52 sps:$4 sm:$0xff]  }
  0x7d   :  { %1842 = vmatprep.mubr.bf16.mxu1 %v3012_v5  ;;  %2679 = vmatpush3.bf16.msra.mxu0 %v3038_v16  ;;  %v3101_v5 = vld [vmem:[%s3897_s0 + $0x304] ss:$52 sps:$4 sm:$0xff]  }
  0x7e   :  { %2743 = vmatpush3.bf16.msra.mxu1 %v3039_v17  ;;  %2680 = vmatprep.subr.bf16.mxu0 %v3046_v21 }
  0x7f   :  { %2744 = vmatprep.subr.bf16.mxu1 %v3047_v23 }
  0x81   :  { %2681 = vmatpush3.bf16.msra.mxu0 %v3048_v24 }
  0x82   :  { %2745 = vmatpush3.bf16.msra.mxu1 %v3049_v25  ;;  %2810 = vmatprep.subr.bf16.mxu0 %v3056_v26 }
  0x83   :  { %1746 = vmatmul.mubr.bf16.gmra.mrb[48].mxu0 %v3014_v10  ;;  %2842 = vmatprep.subr.bf16.mxu1 %v3056_v26  ;;  %v3108_v10 = vld [vmem:[%s3897_s0 + $0x98] ss:$52 sps:$4 sm:$0xff]  }
  0x84   :  { %1843 = vmatmul.mubr.bf16.gmra.mrb[48].mxu1 %v3015_v11  ;;  %1753 = vmatprep.mubr.bf16.mxu0 %v3020_v12  ;;  %v3109_v11 = vld [vmem:[%s3897_s0 + $0x238] ss:$52 sps:$4 sm:$0xff]   ;;  %v3110_v12 = vld [vmem:[%s3897_s0 + $0x100] ss:$52 sps:$4 sm:$0xff]  }
  0x85   :  { %1850 = vmatprep.mubr.bf16.mxu1 %v3022_v13  ;;  %v3111_v13 = vld [vmem:[%s3897_s0 + $0x2a0] ss:$52 sps:$4 sm:$0xff]  }
  0x8b   :  { %1754 = vmatmul.mubr.bf16.gmra.mrb[52].mxu0 %v3024_v18 }
  0x8c   :  { %1851 = vmatmul.mubr.bf16.gmra.mrb[52].mxu1 %v3025_v19  ;;  %1761 = vmatprep.mubr.bf16.mxu0 %v3030_v20 }
  0x8d   :  { %1858 = vmatprep.mubr.bf16.mxu1 %v3032_v22 }
  0x93   :  { %1762 = vmatmul.mubr.bf16.gmra.mrb[56].mxu0 %v3034_v27 }
  0x94   :  { %1859 = vmatmul.mubr.bf16.gmra.mrb[56].mxu1 %v3035_v28  ;;  %1769 = vmatprep.mubr.bf16.mxu0 %v3040_v29 }
  0x95   :  { %1866 = vmatprep.mubr.bf16.mxu1 %v3042_v30 }
  0x9b   :  { %1770 = vmatmul.mubr.bf16.gmra.mrb[60].mxu0 %v3044_v31 }
  0x9c   :  { %1867 = vmatmul.mubr.bf16.gmra.mrb[60].mxu1 %v3045_v32  ;;  %1907 = vmatprep.mubr.bf16.mxu0 %v3052_v33 }
  0x9d   :  { %2004 = vmatprep.mubr.bf16.mxu1 %v3055_v34 }
  0xa3   :  { %1908 = vmatmul.mubr.bf16.vlgmr.msra.gmra.mrb[64].mxu0 %v3050_v35 }
  0xa4   :  { %2005 = vmatmul.mubr.bf16.vlgmr.msra.gmra.mrb[64].mxu1 %v3053_v36  ;;  %2811 = vmatpush3.bf16.msra.mxu0 %v3056_v26 }
  0xa5   :  { %2850 = vmatpush3.bf16.msra.mxu1 %v3056_v26  ;;  %1915 = vmatprep.mubr.bf16.mxu0 %v3057_v37 }
  0xa6   :  { %2012 = vmatprep.mubr.bf16.mxu1 %v3059_v38  ;;  %2812 = vmatprep.subr.bf16.mxu0 %v3063_v39 }
  0xa7   :  { %2843 = vmatprep.subr.bf16.mxu1 %v3063_v39 }
  0xa8   :  { %2813 = vmatpush3.bf16.msra.mxu0 %v3063_v39 }
  0xa9   :  { %2851 = vmatpush3.bf16.msra.mxu1 %v3063_v39  ;;  %2814 = vmatprep.subr.bf16.mxu0 %v3070_v40 }
  0xaa   :  { %2844 = vmatprep.subr.bf16.mxu1 %v3070_v40 }
  0xab   :  { %1916 = vmatmul.mubr.bf16.gmra.mrb[68].mxu0 %v3061_v41 }
  0xac   :  { %2013 = vmatmul.mubr.bf16.gmra.mrb[68].mxu1 %v3062_v42  ;;  %1923 = vmatprep.mubr.bf16.mxu0 %v3064_v43 }
  0xad   :  { %2020 = vmatprep.mubr.bf16.mxu1 %v3066_v44  ;;  %2815 = vmatpush3.bf16.msra.mxu0 %v3070_v40 }
  0xae   :  { %2852 = vmatpush3.bf16.msra.mxu1 %v3070_v40  ;;  %2816 = vmatprep.subr.bf16.mxu0 %v3077_v45 }
  0xaf   :  { %2845 = vmatprep.subr.bf16.mxu1 %v3077_v45 }
  0xb1   :  { %2817 = vmatpush3.bf16.msra.mxu0 %v3077_v45 }
  0xb2   :  { %2853 = vmatpush3.bf16.msra.mxu1 %v3077_v45  ;;  %2818 = vmatprep.subr.bf16.mxu0 %v3084_v46 }
  0xb3   :  { %1924 = vmatmul.mubr.bf16.gmra.mrb[72].mxu0 %v3068_v47  ;;  %2846 = vmatprep.subr.bf16.mxu1 %v3084_v46 }
  0xb4   :  { %2021 = vmatmul.mubr.bf16.gmra.mrb[72].mxu1 %v3069_v48  ;;  %1931 = vmatprep.mubr.bf16.mxu0 %v3071_v49 }
  0xb5   :  { %2028 = vmatprep.mubr.bf16.mxu1 %v3073_v50  ;;  %2819 = vmatpush3.bf16.msra.mxu0 %v3084_v46 }
  0xb6   :  { %2854 = vmatpush3.bf16.msra.mxu1 %v3084_v46  ;;  %2820 = vmatprep.subr.bf16.mxu0 %v3091_v51 }
  0xb7   :  { %2847 = vmatprep.subr.bf16.mxu1 %v3091_v51 }
  0xb9   :  { %2821 = vmatpush3.bf16.msra.mxu0 %v3091_v51 }
  0xba   :  { %2855 = vmatpush3.bf16.msra.mxu1 %v3091_v51  ;;  %2822 = vmatprep.subr.bf16.mxu0 %v3098_v52 }
  0xbb   :  { %1932 = vmatmul.mubr.bf16.gmra.mrb[76].mxu0 %v3075_v53  ;;  %2848 = vmatprep.subr.bf16.mxu1 %v3098_v52 }
  0xbc   :  { %2029 = vmatmul.mubr.bf16.gmra.mrb[76].mxu1 %v3076_v54  ;;  %1939 = vmatprep.mubr.bf16.mxu0 %v3078_v55 }
  0xbd   :  { %2036 = vmatprep.mubr.bf16.mxu1 %v3080_v56  ;;  %2823 = vmatpush3.bf16.msra.mxu0 %v3098_v52 }
  0xbe   :  { %2856 = vmatpush3.bf16.msra.mxu1 %v3098_v52  ;;  %2824 = vmatprep.subr.bf16.mxu0 %v3105_v57 }
  0xbf   :  { %2849 = vmatprep.subr.bf16.mxu1 %v3105_v57 }
  0xc1   :  { %2825 = vmatpush3.bf16.msra.mxu0 %v3105_v57 }
  0xc2   :  { %2857 = vmatpush3.bf16.msra.mxu1 %v3105_v57 }
  0xc3   :  { %1940 = vmatmul.mubr.bf16.gmra.mrb[80].mxu0 %v3082_v58 }
  0xc4   :  { %2037 = vmatmul.mubr.bf16.gmra.mrb[80].mxu1 %v3083_v59  ;;  %1947 = vmatprep.mubr.bf16.mxu0 %v3085_v60 }
  0xc5   :  { %2044 = vmatprep.mubr.bf16.mxu1 %v3087_v61 }
  0xcb   :  { %1948 = vmatmul.mubr.bf16.gmra.mrb[84].mxu0 %v3089_v62 }
  0xcc   :  { %2045 = vmatmul.mubr.bf16.gmra.mrb[84].mxu1 %v3090_v63  ;;  %1955 = vmatprep.mubr.bf16.mxu0 %v3092_v0 }
  0xcd   :  { %2052 = vmatprep.mubr.bf16.mxu1 %v3094_v1 }
  0xd3   :  { %1956 = vmatmul.mubr.bf16.gmra.mrb[88].mxu0 %v3096_v2 }
  0xd4   :  { %2053 = vmatmul.mubr.bf16.gmra.mrb[88].mxu1 %v3097_v3  ;;  %1963 = vmatprep.mubr.bf16.mxu0 %v3099_v4 }
  0xd5   :  { %2060 = vmatprep.mubr.bf16.mxu1 %v3101_v5 }
  0xdb   :  { %1964 = vmatmul.mubr.bf16.gmra.mrb[92].mxu0 %v3103_v6 }
  0xdc   :  { %2061 = vmatmul.mubr.bf16.gmra.mrb[92].mxu1 %v3104_v7  ;;  %2826 = vmatprep.mubr.bf16.mxu0 %v3106_v8 }
  0xdd   :  { %2834 = vmatprep.mubr.bf16.mxu1 %v3107_v9 }
  0xe3   :  { %2827 = vmatmul.mubr.bf16.vlgmr.msra.gmra.mrb[96].mxu0 %v3108_v10 }
  0xe4   :  { %2835 = vmatmul.mubr.bf16.vlgmr.msra.gmra.mrb[96].mxu1 %v3109_v11  ;;  %2830 = vmatprep.mubr.bf16.mxu0 %v3110_v12 }
  0xe5   :  { %2838 = vmatprep.mubr.bf16.mxu1 %v3111_v13 }
  0xeb   :  { %2831 = vmatmul.mubr.bf16.gmra.mrb[100].mxu0 %v3112_v14 }
  0xec   :  { %2839 = vmatmul.mubr.bf16.gmra.mrb[100].mxu1 %v3113_v15 }
  0xf6   :  { %v2426_v16 = vpop.f32.mrb[0].mxu0 }
  0xf7   :  { %v2490_v17 = vpop.f32.mrb[0].mxu1  ;;  %v2427_v18 = vpop.f32.mrb[1].mxu0 }
  0xf8   :  { %v2428_v19 = vadd.f32 %v2427_v18, %v2426_v16  ;;  %v2491_v20 = vpop.f32.mrb[1].mxu1  ;;  %v2429_v21 = vpop.f32.mrb[2].mxu0 }
  0xf9   :  { %v2492_v22 = vadd.f32 %v2491_v20, %v2490_v17  ;;  %v2493_v23 = vpop.f32.mrb[2].mxu1  ;;  %v2430_v24 = vpop.f32.mrb[3].mxu0 }
  0xfa   :  { %v2431_v25 = vadd.f32 %v2430_v24, %v2429_v21  ;;  %v2494_v26 = vpop.f32.mrb[3].mxu1 }
  0xfb   :  { %v3758_v27 = vadd.f32 %v2492_v22, %v2428_v19  ;;  %v2495_v28 = vadd.f32 %v2494_v26, %v2493_v23 }
  0xfd   :  { %v3760_v29 = vadd.f32 %v2495_v28, %v2431_v25 }
  0xfe   :  { %v2432_v30 = vpop.f32.mrb[4].mxu0 }
  0xff   :  { %v2496_v31 = vpop.f32.mrb[4].mxu1  ;;  %v2433_v32 = vpop.f32.mrb[5].mxu0 }
 0x100   :  { %v2434_v33 = vadd.f32 %v2433_v32, %v2432_v30  ;;  %v2497_v34 = vpop.f32.mrb[5].mxu1  ;;  %v2435_v35 = vpop.f32.mrb[6].mxu0 }
 0x101   :  { %v2498_v36 = vadd.f32 %v2497_v34, %v2496_v31  ;;  %v2499_v37 = vpop.f32.mrb[6].mxu1  ;;  %v2436_v38 = vpop.f32.mrb[7].mxu0 }
 0x102   :  { %v2437_v39 = vadd.f32 %v2436_v38, %v2435_v35  ;;  %v2500_v40 = vpop.f32.mrb[7].mxu1 }
 0x103   :  { %v3762_v41 = vadd.f32 %v2498_v36, %v2434_v33  ;;  %v2501_v42 = vadd.f32 %v2500_v40, %v2499_v37 }
 0x105   :  { %v3764_v43 = vadd.f32 %v2501_v42, %v2437_v39 }
 0x106   :  { %v2438_v44 = vpop.f32.mrb[8].mxu0 }
 0x107   :  { %v2502_v45 = vpop.f32.mrb[8].mxu1  ;;  %v2439_v46 = vpop.f32.mrb[9].mxu0 }
 0x108   :  { %v2440_v47 = vadd.f32 %v2439_v46, %v2438_v44  ;;  %v2503_v48 = vpop.f32.mrb[9].mxu1  ;;  %v2441_v49 = vpop.f32.mrb[10].mxu0 }
 0x109   :  { %v2504_v50 = vadd.f32 %v2503_v48, %v2502_v45  ;;  %v2505_v51 = vpop.f32.mrb[10].mxu1  ;;  %v2442_v52 = vpop.f32.mrb[11].mxu0 }
 0x10a   :  { %v2443_v53 = vadd.f32 %v2442_v52, %v2441_v49  ;;  %v2506_v54 = vpop.f32.mrb[11].mxu1 }
 0x10b   :  { %v3766_v55 = vadd.f32 %v2504_v50, %v2440_v47  ;;  %v2507_v56 = vadd.f32 %v2506_v54, %v2505_v51 }
 0x10d   :  { %v3768_v57 = vadd.f32 %v2507_v56, %v2443_v53 }
 0x10e   :  { %v2444_v58 = vpop.f32.mrb[12].mxu0 }
 0x10f   :  { %v2508_v59 = vpop.f32.mrb[12].mxu1  ;;  %v2445_v60 = vpop.f32.mrb[13].mxu0 }
 0x110   :  { %v2446_v61 = vadd.f32 %v2445_v60, %v2444_v58  ;;  %v2509_v62 = vpop.f32.mrb[13].mxu1  ;;  %v2447_v63 = vpop.f32.mrb[14].mxu0 }
 0x111   :  { %v2510_v0 = vadd.f32 %v2509_v62, %v2508_v59  ;;  %v2511_v1 = vpop.f32.mrb[14].mxu1  ;;  %v2448_v2 = vpop.f32.mrb[15].mxu0 }
 0x112   :  { %v2449_v3 = vadd.f32 %v2448_v2, %v2447_v63  ;;  %v2512_v4 = vpop.f32.mrb[15].mxu1 }
 0x113   :  { %v3770_v5 = vadd.f32 %v2510_v0, %v2446_v61  ;;  %v2513_v6 = vadd.f32 %v2512_v4, %v2511_v1 }
 0x115   :  { %v3772_v7 = vadd.f32 %v2513_v6, %v2449_v3 }
 0x116   :  { %v2450_v8 = vpop.f32.mrb[16].mxu0 }
 0x117   :  { %v2514_v9 = vpop.f32.mrb[16].mxu1  ;;  %v2451_v10 = vpop.f32.mrb[17].mxu0 }
 0x118   :  { %v2452_v11 = vadd.f32 %v2451_v10, %v2450_v8  ;;  %v2515_v12 = vpop.f32.mrb[17].mxu1  ;;  %v2453_v13 = vpop.f32.mrb[18].mxu0 }
 0x119   :  { %v2516_v14 = vadd.f32 %v2515_v12, %v2514_v9  ;;  %v2517_v15 = vpop.f32.mrb[18].mxu1  ;;  %v2454_v16 = vpop.f32.mrb[19].mxu0 }
 0x11a   :  { %v2455_v17 = vadd.f32 %v2454_v16, %v2453_v13  ;;  %v2518_v18 = vpop.f32.mrb[19].mxu1 }
 0x11b   :  { %v3774_v19 = vadd.f32 %v2516_v14, %v2452_v11  ;;  %v2519_v20 = vadd.f32 %v2518_v18, %v2517_v15 }
 0x11d   :  { %v3776_v21 = vadd.f32 %v2519_v20, %v2455_v17 }
 0x11e   :  { %v2456_v22 = vpop.f32.mrb[20].mxu0 }
 0x11f   :  { %v2520_v23 = vpop.f32.mrb[20].mxu1  ;;  %v2457_v24 = vpop.f32.mrb[21].mxu0 }
 0x120   :  { %v2458_v25 = vadd.f32 %v2457_v24, %v2456_v22  ;;  %v2521_v26 = vpop.f32.mrb[21].mxu1  ;;  %v2459_v28 = vpop.f32.mrb[22].mxu0 }
 0x121   :  { %v2522_v30 = vadd.f32 %v2521_v26, %v2520_v23  ;;  %v2523_v31 = vpop.f32.mrb[22].mxu1  ;;  %v2460_v32 = vpop.f32.mrb[23].mxu0 }
 0x122   :  { %v2461_v33 = vadd.f32 %v2460_v32, %v2459_v28  ;;  %v2524_v34 = vpop.f32.mrb[23].mxu1 }
 0x123   :  { %v3778_v35 = vadd.f32 %v2522_v30, %v2458_v25  ;;  %v2525_v36 = vadd.f32 %v2524_v34, %v2523_v31 }
 0x125   :  { %v3780_v37 = vadd.f32 %v2525_v36, %v2461_v33 }
 0x126   :  { %v2462_v38 = vpop.f32.mrb[24].mxu0 }
 0x127   :  { %v2526_v39 = vpop.f32.mrb[24].mxu1  ;;  %v2463_v40 = vpop.f32.mrb[25].mxu0 }
 0x128   :  { %v2464_v42 = vadd.f32 %v2463_v40, %v2462_v38  ;;  %v2527_v44 = vpop.f32.mrb[25].mxu1  ;;  %v2465_v45 = vpop.f32.mrb[26].mxu0 }
 0x129   :  { %v2528_v46 = vadd.f32 %v2527_v44, %v2526_v39  ;;  %v2529_v47 = vpop.f32.mrb[26].mxu1  ;;  %v2466_v48 = vpop.f32.mrb[27].mxu0 }
 0x12a   :  { %v2467_v49 = vadd.f32 %v2466_v48, %v2465_v45  ;;  %v2530_v50 = vpop.f32.mrb[27].mxu1 }
 0x12b   :  { %v3782_v51 = vadd.f32 %v2528_v46, %v2464_v42  ;;  %v2531_v52 = vadd.f32 %v2530_v50, %v2529_v47 }
 0x12d   :  { %v3784_v53 = vadd.f32 %v2531_v52, %v2467_v49 }
 0x12e   :  { %v2468_v54 = vpop.f32.mrb[28].mxu0 }
 0x12f   :  { %v2532_v56 = vpop.f32.mrb[28].mxu1  ;;  %v2469_v58 = vpop.f32.mrb[29].mxu0 }
 0x130   :  { %v2470_v59 = vadd.f32 %v2469_v58, %v2468_v54  ;;  %v2533_v60 = vpop.f32.mrb[29].mxu1  ;;  %v2471_v61 = vpop.f32.mrb[30].mxu0 }
 0x131   :  { %v2534_v62 = vadd.f32 %v2533_v60, %v2532_v56  ;;  %v2535_v63 = vpop.f32.mrb[30].mxu1  ;;  %v2472_v0 = vpop.f32.mrb[31].mxu0 }
 0x132   :  { %v2473_v1 = vadd.f32 %v2472_v0, %v2471_v61  ;;  %v2536_v2 = vpop.f32.mrb[31].mxu1 }
 0x133   :  { %v3786_v3 = vadd.f32 %v2534_v62, %v2470_v59  ;;  %v2537_v4 = vadd.f32 %v2536_v2, %v2535_v63 }
 0x135   :  { %v3788_v6 = vadd.f32 %v2537_v4, %v2473_v1 }
 0x136   :  { %v2554_v8 = vpop.f32.mrb[32].mxu0 }
 0x137   :  { %v2618_v9 = vpop.f32.mrb[32].mxu1  ;;  %v2555_v10 = vpop.f32.mrb[33].mxu0 }
 0x138   :  { %v2556_v11 = vadd.f32 %v2555_v10, %v2554_v8  ;;  %v2619_v12 = vpop.f32.mrb[33].mxu1  ;;  %v2557_v13 = vpop.f32.mrb[34].mxu0 }
 0x139   :  { %v2620_v14 = vadd.f32 %v2619_v12, %v2618_v9  ;;  %v2621_v15 = vpop.f32.mrb[34].mxu1  ;;  %v2558_v16 = vpop.f32.mrb[35].mxu0 }
 0x13a   :  { %v1716_v17 = vadd.f32 %v2556_v11, %v3758_v27  ;;  %v2559_v18 = vadd.f32 %v2558_v16, %v2557_v13  ;;  %v2622_v20 = vpop.f32.mrb[35].mxu1 }
 0x13b   :  { %v2623_v22 = vadd.f32 %v2622_v20, %v2621_v15 }
 0x13c   :  { %v3791_v23 = vadd.f32 %v2620_v14, %v1716_v17  ;;  %v1719_v24 = vadd.f32 %v2559_v18, %v3760_v29 }
 0x13e   :  { %v3794_v25 = vadd.f32 %v2623_v22, %v1719_v24  ;;  %v2560_v26 = vpop.f32.mrb[36].mxu0 }
 0x13f   :  { %v2624_v28 = vpop.f32.mrb[36].mxu1  ;;  %v2561_v30 = vpop.f32.mrb[37].mxu0 }
 0x140   :  { %v2562_v31 = vadd.f32 %v2561_v30, %v2560_v26  ;;  %v2625_v32 = vpop.f32.mrb[37].mxu1  ;;  %v2563_v33 = vpop.f32.mrb[38].mxu0 }
 0x141   :  { %v2626_v34 = vadd.f32 %v2625_v32, %v2624_v28  ;;  %v2627_v36 = vpop.f32.mrb[38].mxu1  ;;  %v2564_v38 = vpop.f32.mrb[39].mxu0 }
 0x142   :  { %v1724_v27 = vadd.f32 %v2562_v31, %v3762_v41  ;;  %v2565_v39 = vadd.f32 %v2564_v38, %v2563_v33  ;;  %v2628_v40 = vpop.f32.mrb[39].mxu1 }
 0x143   :  { %v2629_v42 = vadd.f32 %v2628_v40, %v2627_v36 }
 0x144   :  { %v3797_v44 = vadd.f32 %v2626_v34, %v1724_v27  ;;  %v1727_v29 = vadd.f32 %v2565_v39, %v3764_v43 }
 0x146   :  { %v3800_v45 = vadd.f32 %v2629_v42, %v1727_v29  ;;  %v2566_v46 = vpop.f32.mrb[40].mxu0 }
 0x147   :  { %v2630_v47 = vpop.f32.mrb[40].mxu1  ;;  %v2567_v48 = vpop.f32.mrb[41].mxu0 }
 0x148   :  { %v2568_v49 = vadd.f32 %v2567_v48, %v2566_v46  ;;  %v2631_v50 = vpop.f32.mrb[41].mxu1  ;;  %v2569_v52 = vpop.f32.mrb[42].mxu0 }
 0x149   :  { %v2632_v54 = vadd.f32 %v2631_v50, %v2630_v47  ;;  %v2633_v56 = vpop.f32.mrb[42].mxu1  ;;  %v2570_v58 = vpop.f32.mrb[43].mxu0 }
 0x14a   :  { %v1732_v41 = vadd.f32 %v2568_v49, %v3766_v55  ;;  %v2571_v59 = vadd.f32 %v2570_v58, %v2569_v52  ;;  %v2634_v60 = vpop.f32.mrb[43].mxu1 }
 0x14b   :  { %v2635_v61 = vadd.f32 %v2634_v60, %v2633_v56 }
 0x14c   :  { %v3803_v62 = vadd.f32 %v2632_v54, %v1732_v41  ;;  %v1735_v43 = vadd.f32 %v2571_v59, %v3768_v57 }
 0x14e   :  { %v3806_v63 = vadd.f32 %v2635_v61, %v1735_v43  ;;  %v2572_v0 = vpop.f32.mrb[44].mxu0 }
 0x14f   :  { %v2636_v1 = vpop.f32.mrb[44].mxu1  ;;  %v2573_v2 = vpop.f32.mrb[45].mxu0 }
 0x150   :  { %v2574_v4 = vadd.f32 %v2573_v2, %v2572_v0  ;;  %v2637_v8 = vpop.f32.mrb[45].mxu1  ;;  %v2575_v9 = vpop.f32.mrb[46].mxu0 }
 0x151   :  { %v2638_v10 = vadd.f32 %v2637_v8, %v2636_v1  ;;  %v2639_v11 = vpop.f32.mrb[46].mxu1  ;;  %v2576_v12 = vpop.f32.mrb[47].mxu0 }
 0x152   :  { %v1740_v55 = vadd.f32 %v2574_v4, %v3770_v5  ;;  %v2577_v13 = vadd.f32 %v2576_v12, %v2575_v9  ;;  %v2640_v14 = vpop.f32.mrb[47].mxu1 }
 0x153   :  { %v2641_v15 = vadd.f32 %v2640_v14, %v2639_v11 }
 0x154   :  { %v3809_v16 = vadd.f32 %v2638_v10, %v1740_v55  ;;  %v1743_v57 = vadd.f32 %v2577_v13, %v3772_v7 }
 0x156   :  { %v3812_v17 = vadd.f32 %v2641_v15, %v1743_v57  ;;  %v2578_v18 = vpop.f32.mrb[48].mxu0 }
 0x157   :  { %v2642_v20 = vpop.f32.mrb[48].mxu1  ;;  %v2579_v22 = vpop.f32.mrb[49].mxu0 }
 0x158   :  { %v2580_v24 = vadd.f32 %v2579_v22, %v2578_v18  ;;  %v2643_v26 = vpop.f32.mrb[49].mxu1  ;;  %v2581_v28 = vpop.f32.mrb[50].mxu0 }
 0x159   :  { %v2644_v30 = vadd.f32 %v2643_v26, %v2642_v20  ;;  %v2645_v31 = vpop.f32.mrb[50].mxu1  ;;  %v2582_v32 = vpop.f32.mrb[51].mxu0 }
 0x15a   :  { %v1748_v5 = vadd.f32 %v2580_v24, %v3774_v19  ;;  %v2583_v33 = vadd.f32 %v2582_v32, %v2581_v28  ;;  %v2646_v34 = vpop.f32.mrb[51].mxu1 }
 0x15b   :  { %v2647_v36 = vadd.f32 %v2646_v34, %v2645_v31 }
 0x15c   :  { %v3815_v38 = vadd.f32 %v2644_v30, %v1748_v5  ;;  %v1751_v7 = vadd.f32 %v2583_v33, %v3776_v21 }
 0x15e   :  { %v3818_v27 = vadd.f32 %v2647_v36, %v1751_v7  ;;  %v2584_v39 = vpop.f32.mrb[52].mxu0 }
 0x15f   :  { %v2648_v40 = vpop.f32.mrb[52].mxu1  ;;  %v2585_v42 = vpop.f32.mrb[53].mxu0 }
 0x160   :  { %v2586_v29 = vadd.f32 %v2585_v42, %v2584_v39  ;;  %v2649_v46 = vpop.f32.mrb[53].mxu1  ;;  %v2587_v47 = vpop.f32.mrb[54].mxu0 }
 0x161   :  { %v2650_v48 = vadd.f32 %v2649_v46, %v2648_v40  ;;  %v2651_v49 = vpop.f32.mrb[54].mxu1  ;;  %v2588_v50 = vpop.f32.mrb[55].mxu0 }
 0x162   :  { %v1756_v19 = vadd.f32 %v2586_v29, %v3778_v35  ;;  %v2589_v52 = vadd.f32 %v2588_v50, %v2587_v47  ;;  %v2652_v54 = vpop.f32.mrb[55].mxu1 }
 0x163   :  { %v2653_v56 = vadd.f32 %v2652_v54, %v2651_v49 }
 0x164   :  { %v3821_v58 = vadd.f32 %v2650_v48, %v1756_v19  ;;  %v1759_v21 = vadd.f32 %v2589_v52, %v3780_v37 }
 0x166   :  { %v3824_v41 = vadd.f32 %v2653_v56, %v1759_v21  ;;  %v2590_v59 = vpop.f32.mrb[56].mxu0 }
 0x167   :  { %v2654_v60 = vpop.f32.mrb[56].mxu1  ;;  %v2591_v61 = vpop.f32.mrb[57].mxu0 }
 0x168   :  { %v2592_v43 = vadd.f32 %v2591_v61, %v2590_v59  ;;  %v2655_v0 = vpop.f32.mrb[57].mxu1  ;;  %v2593_v1 = vpop.f32.mrb[58].mxu0 }
 0x169   :  { %v2656_v2 = vadd.f32 %v2655_v0, %v2654_v60  ;;  %v2657_v4 = vpop.f32.mrb[58].mxu1  ;;  %v2594_v8 = vpop.f32.mrb[59].mxu0 }
 0x16a   :  { %v1764_v35 = vadd.f32 %v2592_v43, %v3782_v51  ;;  %v2595_v9 = vadd.f32 %v2594_v8, %v2593_v1  ;;  %v2658_v10 = vpop.f32.mrb[59].mxu1 }
 0x16b   :  { %v2659_v11 = vadd.f32 %v2658_v10, %v2657_v4 }
 0x16c   :  { %v3827_v12 = vadd.f32 %v2656_v2, %v1764_v35  ;;  %v1767_v37 = vadd.f32 %v2595_v9, %v3784_v53 }
 0x16e   :  { %v3830_v55 = vadd.f32 %v2659_v11, %v1767_v37  ;;  %v2596_v13 = vpop.f32.mrb[60].mxu0 }
 0x16f   :  { %v2660_v14 = vpop.f32.mrb[60].mxu1  ;;  %v2597_v15 = vpop.f32.mrb[61].mxu0 }
 0x170   :  { %v2598_v57 = vadd.f32 %v2597_v15, %v2596_v13  ;;  %v2661_v18 = vpop.f32.mrb[61].mxu1  ;;  %v2599_v20 = vpop.f32.mrb[62].mxu0 }
 0x171   :  { %v2662_v22 = vadd.f32 %v2661_v18, %v2660_v14  ;;  %v2663_v24 = vpop.f32.mrb[62].mxu1  ;;  %v2600_v26 = vpop.f32.mrb[63].mxu0 }
 0x172   :  { %v1772_v51 = vadd.f32 %v2598_v57, %v3786_v3  ;;  %v2601_v28 = vadd.f32 %v2600_v26, %v2599_v20  ;;  %v2664_v30 = vpop.f32.mrb[63].mxu1 }
 0x173   :  { %v2665_v31 = vadd.f32 %v2664_v30, %v2663_v24 }
 0x174   :  { %v3833_v32 = vadd.f32 %v2662_v22, %v1772_v51  ;;  %v1775_v53 = vadd.f32 %v2601_v28, %v3788_v6 }
 0x176   :  { %v3836_v5 = vadd.f32 %v2665_v31, %v1775_v53  ;;  %v2682_v33 = vpop.f32.mrb[64].mxu0 }
 0x177   :  { %v2746_v34 = vpop.f32.mrb[64].mxu1  ;;  %v2683_v36 = vpop.f32.mrb[65].mxu0 }
 0x178   :  { %v2684_v7 = vadd.f32 %v2683_v36, %v2682_v33  ;;  %v2747_v39 = vpop.f32.mrb[65].mxu1  ;;  %v2685_v40 = vpop.f32.mrb[66].mxu0 }
 0x179   :  { %v2748_v42 = vadd.f32 %v2747_v39, %v2746_v34  ;;  %v2749_v29 = vpop.f32.mrb[66].mxu1  ;;  %v2686_v46 = vpop.f32.mrb[67].mxu0 }
 0x17a   :  { %v1910_v3 = vadd.f32 %v2684_v7, %v3791_v23  ;;  %v2687_v47 = vadd.f32 %v2686_v46, %v2685_v40  ;;  %v2750_v48 = vpop.f32.mrb[67].mxu1 }
 0x17b   :  { %v2751_v49 = vadd.f32 %v2750_v48, %v2749_v29 }
 0x17c   :  { %v1913_v50 = vadd.f32 %v2687_v47, %v3794_v25  ;;  %v3840_v19 = vadd.f32 %v2748_v42, %v1910_v3 }
 0x17e   :  { %v2688_v6 = vpop.f32.mrb[68].mxu0  ;;  %v3842_v52 = vadd.f32 %v2751_v49, %v1913_v50 }
 0x17f   :  { %v2752_v54 = vpop.f32.mrb[68].mxu1  ;;  %v2689_v56 = vpop.f32.mrb[69].mxu0 }
 0x180   :  { %v2690_v21 = vadd.f32 %v2689_v56, %v2688_v6  ;;  %v2753_v59 = vpop.f32.mrb[69].mxu1  ;;  %v2691_v60 = vpop.f32.mrb[70].mxu0 }
 0x181   :  { %v2754_v61 = vadd.f32 %v2753_v59, %v2752_v54  ;;  %v2755_v43 = vpop.f32.mrb[70].mxu1  ;;  %v2692_v0 = vpop.f32.mrb[71].mxu0 }
 0x182   :  { %v1918_v23 = vadd.f32 %v2690_v21, %v3797_v44  ;;  %v2693_v1 = vadd.f32 %v2692_v0, %v2691_v60  ;;  %v2756_v2 = vpop.f32.mrb[71].mxu1 }
 0x183   :  { %v2757_v4 = vadd.f32 %v2756_v2, %v2755_v43 }
 0x184   :  { %v1921_v25 = vadd.f32 %v2693_v1, %v3800_v45  ;;  %v3846_v8 = vadd.f32 %v2754_v61, %v1918_v23 }
 0x186   :  { %v2694_v35 = vpop.f32.mrb[72].mxu0  ;;  %v3848_v9 = vadd.f32 %v2757_v4, %v1921_v25 }
 0x187   :  { %v2758_v10 = vpop.f32.mrb[72].mxu1  ;;  %v2695_v11 = vpop.f32.mrb[73].mxu0 }
 0x188   :  { %v2696_v37 = vadd.f32 %v2695_v11, %v2694_v35  ;;  %v2759_v13 = vpop.f32.mrb[73].mxu1  ;;  %v2697_v14 = vpop.f32.mrb[74].mxu0 }
 0x189   :  { %v2760_v15 = vadd.f32 %v2759_v13, %v2758_v10  ;;  %v2761_v57 = vpop.f32.mrb[74].mxu1  ;;  %v2698_v18 = vpop.f32.mrb[75].mxu0 }
 0x18a   :  { %v1926_v44 = vadd.f32 %v2696_v37, %v3803_v62  ;;  %v2699_v20 = vadd.f32 %v2698_v18, %v2697_v14  ;;  %v2762_v22 = vpop.f32.mrb[75].mxu1 }
 0x18b   :  { %v2763_v24 = vadd.f32 %v2762_v22, %v2761_v57 }
 0x18c   :  { %v1929_v45 = vadd.f32 %v2699_v20, %v3806_v63  ;;  %v3852_v26 = vadd.f32 %v2760_v15, %v1926_v44 }
 0x18e   :  { %v2700_v51 = vpop.f32.mrb[76].mxu0  ;;  %v3854_v28 = vadd.f32 %v2763_v24, %v1929_v45 }
 0x18f   :  { %v2764_v30 = vpop.f32.mrb[76].mxu1  ;;  %v2701_v31 = vpop.f32.mrb[77].mxu0 }
 0x190   :  { %v2702_v53 = vadd.f32 %v2701_v31, %v2700_v51  ;;  %v2765_v33 = vpop.f32.mrb[77].mxu1  ;;  %v2703_v34 = vpop.f32.mrb[78].mxu0 }
 0x191   :  { %v2766_v36 = vadd.f32 %v2765_v33, %v2764_v30  ;;  %v2767_v7 = vpop.f32.mrb[78].mxu1  ;;  %v2704_v39 = vpop.f32.mrb[79].mxu0 }
 0x192   :  { %v1934_v62 = vadd.f32 %v2702_v53, %v3809_v16  ;;  %v2705_v40 = vadd.f32 %v2704_v39, %v2703_v34  ;;  %v2768_v42 = vpop.f32.mrb[79].mxu1 }
 0x193   :  { %v2769_v29 = vadd.f32 %v2768_v42, %v2767_v7 }
 0x194   :  { %v1937_v63 = vadd.f32 %v2705_v40, %v3812_v17  ;;  %v3858_v46 = vadd.f32 %v2766_v36, %v1934_v62 }
 0x196   :  { %v2706_v3 = vpop.f32.mrb[80].mxu0  ;;  %v3860_v47 = vadd.f32 %v2769_v29, %v1937_v63 }
 0x197   :  { %v2770_v48 = vpop.f32.mrb[80].mxu1  ;;  %v2707_v49 = vpop.f32.mrb[81].mxu0 }
 0x198   :  { %v2708_v50 = vadd.f32 %v2707_v49, %v2706_v3  ;;  %v2771_v6 = vpop.f32.mrb[81].mxu1  ;;  %v2709_v54 = vpop.f32.mrb[82].mxu0 }
 0x199   :  { %v2772_v56 = vadd.f32 %v2771_v6, %v2770_v48  ;;  %v2773_v21 = vpop.f32.mrb[82].mxu1  ;;  %v2710_v59 = vpop.f32.mrb[83].mxu0 }
 0x19a   :  { %v1942_v16 = vadd.f32 %v2708_v50, %v3815_v38  ;;  %v2711_v60 = vadd.f32 %v2710_v59, %v2709_v54  ;;  %v2774_v61 = vpop.f32.mrb[83].mxu1 }
 0x19b   :  { %v2775_v43 = vadd.f32 %v2774_v61, %v2773_v21 }
 0x19c   :  { %v1945_v17 = vadd.f32 %v2711_v60, %v3818_v27  ;;  %v2039_v0 = vadd.f32 %v2772_v56, %v1942_v16 }
 0x19e   :  { %v2712_v23 = vpop.f32.mrb[84].mxu0  ;;  %v3864_v1 = vadd.f32 %v2775_v43, %v1945_v17 }
 0x19f   :  { %v2776_v2 = vpop.f32.mrb[84].mxu1  ;;  %v2713_v4 = vpop.f32.mrb[85].mxu0 }
 0x1a0   :  { %v2714_v25 = vadd.f32 %v2713_v4, %v2712_v23  ;;  %v2777_v35 = vpop.f32.mrb[85].mxu1  ;;  %v2715_v10 = vpop.f32.mrb[86].mxu0 }
 0x1a1   :  { %v2778_v11 = vadd.f32 %v2777_v35, %v2776_v2  ;;  %v2779_v37 = vpop.f32.mrb[86].mxu1  ;;  %v2716_v13 = vpop.f32.mrb[87].mxu0 }
 0x1a2   :  { %v1950_v14 = vadd.f32 %v2714_v25, %v3821_v58  ;;  %v2717_v38 = vadd.f32 %v2716_v13, %v2715_v10  ;;  %v2780_v15 = vpop.f32.mrb[87].mxu1 }
 0x1a3   :  { %v2781_v57 = vadd.f32 %v2780_v15, %v2779_v37 }
 0x1a4   :  { %v1953_v18 = vadd.f32 %v2717_v38, %v3824_v41  ;;  %v2047_v27 = vadd.f32 %v2778_v11, %v1950_v14 }
 0x1a6   :  { %v2718_v44 = vpop.f32.mrb[88].mxu0  ;;  %v2050_v20 = vadd.f32 %v2781_v57, %v1953_v18 }
 0x1a7   :  { %v2782_v22 = vpop.f32.mrb[88].mxu1  ;;  %v2719_v24 = vpop.f32.mrb[89].mxu0 }
 0x1a8   :  { %v2720_v45 = vadd.f32 %v2719_v24, %v2718_v44  ;;  %v2783_v51 = vpop.f32.mrb[89].mxu1  ;;  %v2721_v30 = vpop.f32.mrb[90].mxu0 }
 0x1a9   :  { %v2784_v31 = vadd.f32 %v2783_v51, %v2782_v22  ;;  %v2785_v53 = vpop.f32.mrb[90].mxu1  ;;  %v2722_v33 = vpop.f32.mrb[91].mxu0 }
 0x1aa   :  { %v1958_v34 = vadd.f32 %v2720_v45, %v3827_v12  ;;  %v2723_v36 = vadd.f32 %v2722_v33, %v2721_v30  ;;  %v2786_v58 = vpop.f32.mrb[91].mxu1 }
 0x1ab   :  { %v2787_v7 = vadd.f32 %v2786_v58, %v2785_v53 }
 0x1ac   :  { %v1961_v39 = vadd.f32 %v2723_v36, %v3830_v55  ;;  %v2055_v62 = vadd.f32 %v2784_v31, %v1958_v34 }
 0x1ae   :  { %v2724_v41 = vpop.f32.mrb[92].mxu0  ;;  %v2058_v40 = vadd.f32 %v2787_v7, %v1961_v39 }
 0x1af   :  { %v2788_v42 = vpop.f32.mrb[92].mxu1  ;;  %v2725_v29 = vpop.f32.mrb[93].mxu0 }
 0x1b0   :  { %v2726_v63 = vadd.f32 %v2725_v29, %v2724_v41  ;;  %v2789_v3 = vpop.f32.mrb[93].mxu1  ;;  %v2727_v48 = vpop.f32.mrb[94].mxu0 }
 0x1b1   :  { %v2790_v49 = vadd.f32 %v2789_v3, %v2788_v42  ;;  %v2791_v50 = vpop.f32.mrb[94].mxu1  ;;  %v2728_v6 = vpop.f32.mrb[95].mxu0 }
 0x1b2   :  { %v1966_v54 = vadd.f32 %v2726_v63, %v3833_v32  ;;  %v2729_v56 = vadd.f32 %v2728_v6, %v2727_v48  ;;  %v2792_v12 = vpop.f32.mrb[95].mxu1 }
 0x1b3   :  { %v2793_v21 = vadd.f32 %v2792_v12, %v2791_v50 }
 0x1b4   :  { %v1969_v59 = vadd.f32 %v2729_v56, %v3836_v5  ;;  %v2063_v16 = vadd.f32 %v2790_v49, %v1966_v54 }
 0x1b6   :  { %v2828_v55 = vpop.f32.mrb[96].mxu0  ;;  %v2066_v60 = vadd.f32 %v2793_v21, %v1969_v59 }
 0x1b7   :  { %v2112_v61 = vadd.f32 %v2828_v55, %v3846_v8  ;;  %v2836_v43 = vpop.f32.mrb[96].mxu1  ;;  %v2103_v17 = vpop.f32.mrb[97].mxu0 }
 0x1b8   :  { %v2144_v23 = vadd.f32 %v2836_v43, %v2047_v27  ;;  %v2104_v2 = vadd.f32 %v2103_v17, %v3840_v19  ;;  %v2135_v4 = vpop.f32.mrb[97].mxu1  ;;  %v2829_v25 = vpop.f32.mrb[98].mxu0 }
 0x1b9   :  { %v2136_v35 = vadd.f32 %v2135_v4, %v2039_v0  ;;  %v2115_v32 = vadd.f32 %v2829_v25, %v3848_v9  ;;  %v2837_v10 = vpop.f32.mrb[98].mxu1  ;;  %v2106_v11 = vpop.f32.mrb[99].mxu0 }
 0x1ba   :  { %v2147_v37 = vadd.f32 %v2837_v10, %v2050_v20  ;;  %v2107_v5 = vadd.f32 %v2106_v11, %v3842_v52  ;;  %v2138_v13 = vpop.f32.mrb[99].mxu1 }
 0x1bb   :  { %v2139_v14 = vadd.f32 %v2138_v13, %v3864_v1 }
 0x1be   :  { %v2832_v38 = vpop.f32.mrb[100].mxu0 }
 0x1bf   :  { %v2128_v8 = vadd.f32 %v2832_v38, %v3858_v46  ;;  %v2840_v15 = vpop.f32.mrb[100].mxu1  ;;  %v2119_v57 = vpop.f32.mrb[101].mxu0  ;;  %v2409_v46 = vld [vmem:[%s3898_s2] ss:$0 sm:$0xff] }
 0x1c0   :  { %v2160_v18 = vadd.f32 %v2840_v15, %v2063_v16  ;;  %v2120_v19 = vadd.f32 %v2119_v57, %v3852_v26  ;;  %v2151_v27 = vpop.f32.mrb[101].mxu1  ;;  %v2833_v0 = vpop.f32.mrb[102].mxu0 }
 0x1c1   :  { %v2168_v44 = vmax.f32 %v2112_v61, %v2128_v8  ;;  %v2152_v9 = vadd.f32 %v2151_v27, %v2055_v62  ;;  %v2131_v22 = vadd.f32 %v2833_v0, %v3860_v47  ;;  %v2841_v20 = vpop.f32.mrb[102].mxu1  ;;  %v2122_v24 = vpop.f32.mrb[103].mxu0 }
 0x1c2   :  { %v2172_v52 = vmax.f32 %v2144_v23, %v2160_v18  ;;  %v2166_v45 = vmax.f32 %v2104_v2, %v2120_v19  ;;  %v2163_v51 = vadd.f32 %v2841_v20, %v2066_v60  ;;  %v2123_v1 = vadd.f32 %v2122_v24, %v3854_v28  ;;  %v2154_v30 = vpop.f32.mrb[103].mxu1 }
 0x1c3   :  { %v2170_v31 = vmax.f32 %v2136_v35, %v2152_v9  ;;  %v2169_v26 = vmax.f32 %v2115_v32, %v2131_v22  ;;  %v2155_v53 = vadd.f32 %v2154_v30, %v2058_v40 }
 0x1c4   :  { %v2176_v33 = vmax.f32 %v2168_v44, %v2172_v52  ;;  %v2173_v34 = vmax.f32 %v2147_v37, %v2163_v51  ;;  %v2167_v36 = vmax.f32 %v2107_v5, %v2123_v1 }
 0x1c5   :  { %v2174_v58 = vmax.f32 %v2166_v45, %v2170_v31  ;;  %v2171_v47 = vmax.f32 %v2139_v14, %v2155_v53 }
 0x1c6   :  { %v2187_v7 = vadd.f32 %v2409_v46, %v2176_v33  ;;  %v2177_v39 = vmax.f32 %v2169_v26, %v2173_v34 }
 0x1c7   :  { %v2185_v62 = vadd.f32 %v2409_v46, %v2174_v58  ;;  %v2175_v41 = vmax.f32 %v2167_v36, %v2171_v47 }
 0x1c8   :  { %v2191_v42 = vmax.f32 %v2187_v7, 0.0  ;;  %v2188_v29 = vadd.f32 %v2409_v46, %v2177_v39 }
 0x1c9   :  { %v2189_v28 = vmax.f32 %v2185_v62, 0.0  ;;  %v2186_v63 = vadd.f32 %v2409_v46, %v2175_v41 }
 0x1ca   :  { %2195 = vst [vmem:[%s3899_s3 + $0x10] sm:$0xff] %v2191_v42  ;;  %v2192_v3 = vmax.f32 %v2188_v29, 0.0 }
 0x1cb   :  { %2193 = vst [vmem:[%s3899_s3] sm:$0xff] %v2189_v28  ;;  %v2190_v40 = vmax.f32 %v2186_v63, 0.0 }
 0x1cc   :  { %2196 = vst [vmem:[%s3899_s3 + $0x18] sm:$0xff] %v2192_v3 }
 0x1cd   :  { %2194 = vst [vmem:[%s3899_s3 + $0x8] sm:$0xff] %v2190_v40 }

// kernel: example_model_forward.7
= control target key start
LH: loop header
LB: loop body
LE: loop exit
PB: predicated region body
PF: predicated region fallthrough
CT: control target
= control target key end

     0   :  { %v293_v28 = vlaneseq  ;;  %v2128_v36 = vmov 1966171168   ;;  %s2618_s0 = inlined_call_operand.vmem [shape: bf16[2,2048], index: 0, kind: input, shape index: {}]   ;;  %s2619_s1 = inlined_call_operand.vmem [shape: bf16[2048,128], index: 1, kind: input, shape index: {}]   ;;  %s2620_s2 = inlined_call_operand.vmem [shape: f32[1,128], index: 2, kind: input, shape index: {}]   ;;  %s2621_s3 = inlined_call_operand.vmem [shape: bf16[128,128], index: 3, kind: input, shape index: {}]   ;;  %s2622_s4 = inlined_call_operand.vmem [shape: f32[1,128], index: 4, kind: input, shape index: {}]   ;;  %s2623_s5 = inlined_call_operand.hbm [shape: f32[2,128], index: 5, kind: output, shape index: {}]  }
   0x1   :  { %v1966_v0 = vld [vmem:[%s2619_s1 + $0x40] sm:$0xff]   ;;  %v1970_v4 = vld [vmem:[%s2619_s1 + $0x48] sm:$0xff]   ;;  %v1974_v8 = vld [vmem:[%s2619_s1 + $0x50] sm:$0xff]   ;;  %v291_v37 = vunpack.c.l.s4 %v2128_v36 }
   0x2   :  { %v1967_v1 = vld [vmem:[%s2619_s1 + $0xc0] sm:$0xff]   ;;  %1757 = vmatprep.subr.bf16.mxu0 %v1966_v0  ;;  %v1971_v5 = vld [vmem:[%s2619_s1 + $0xc8] sm:$0xff]   ;;  %v1975_v9 = vld [vmem:[%s2619_s1 + $0xd0] sm:$0xff]   ;;  %v294_v33 = vshrl.u32 %v293_v28, 7 }
   0x3   :  { %v1968_v2 = vld [vmem:[%s2619_s1] sm:$0xff]   ;;  %1779 = vmatprep.subr.bf16.mxu1 %v1967_v1  ;;  %v1972_v6 = vld [vmem:[%s2619_s1 + $0x8] sm:$0xff]   ;;  %v1976_v10 = vld [vmem:[%s2619_s1 + $0x10] sm:$0xff]   ;;  %v292_v40 = vunpack.c.0.s8 %v291_v37 }
   0x4   :  { %v1969_v3 = vld [vmem:[%s2619_s1 + $0x80] sm:$0xff]   ;;  %1758 = vmatpush3.bf16.msra.mxu0 %v1968_v2  ;;  %v1973_v7 = vld [vmem:[%s2619_s1 + $0x88] sm:$0xff]   ;;  %v1977_v11 = vld [vmem:[%s2619_s1 + $0x90] sm:$0xff]  }
   0x5   :  { %1780 = vmatpush3.bf16.msra.mxu1 %v1969_v3  ;;  %1759 = vmatprep.subr.bf16.mxu0 %v1970_v4  ;;  %v1978_v12 = vld [vmem:[%s2619_s1 + $0x58] sm:$0xff]   ;;  %v1982_v16 = vld [vmem:[%s2619_s1 + $0x60] sm:$0xff]   ;;  %v1986_v20 = vld [vmem:[%s2619_s1 + $0x68] sm:$0xff]   ;;  %v2267_v41 = vsub.s32 %v292_v40, %v294_v33 }
   0x6   :  { %1781 = vmatprep.subr.bf16.mxu1 %v1971_v5  ;;  %v1979_v13 = vld [vmem:[%s2619_s1 + $0xd8] sm:$0xff]   ;;  %v1983_v17 = vld [vmem:[%s2619_s1 + $0xe0] sm:$0xff]   ;;  %v1987_v21 = vld [vmem:[%s2619_s1 + $0xe8] sm:$0xff]  }
   0x7   :  { %v1980_v14 = vld [vmem:[%s2619_s1 + $0x18] sm:$0xff]   ;;  %v1984_v18 = vld [vmem:[%s2619_s1 + $0x20] sm:$0xff]   ;;  %v1988_v22 = vld [vmem:[%s2619_s1 + $0x28] sm:$0xff]  }
   0x8   :  { %1760 = vmatpush3.bf16.msra.mxu0 %v1972_v6  ;;  %v1981_v15 = vld [vmem:[%s2619_s1 + $0x98] sm:$0xff]   ;;  %v1985_v19 = vld [vmem:[%s2619_s1 + $0xa0] sm:$0xff]   ;;  %v1989_v23 = vld [vmem:[%s2619_s1 + $0xa8] sm:$0xff]  }
   0x9   :  { %1782 = vmatpush3.bf16.msra.mxu1 %v1973_v7  ;;  %1761 = vmatprep.subr.bf16.mxu0 %v1974_v8  ;;  %v1990_v24 = vld [vmem:[%s2619_s1 + $0x70] sm:$0xff]   ;;  %v1994_v29 = vld [vmem:[%s2619_s1 + $0x78] sm:$0xff]   ;;  %v22_v34 = vld [vmem:[%s2618_s0] sm:$0xff] }
   0xa   :  { %1783 = vmatprep.subr.bf16.mxu1 %v1975_v9  ;;  %v1991_v25 = vld [vmem:[%s2619_s1 + $0xf0] sm:$0xff]   ;;  %v1995_v30 = vld [vmem:[%s2619_s1 + $0xf8] sm:$0xff]   ;;  %v1999_v35 = vld [vmem:[%s2619_s1 + $0x140] sm:$0xff]   ;;  %v289_v39 = vcombine.high %v22_v34, %v22_v34  ;;  %v296_v42 = vrot.slane %v22_v34, %v2267_v41 }
   0xb   :  { %v1992_v26 = vld [vmem:[%s2619_s1 + $0x30] sm:$0xff]   ;;  %v1996_v31 = vld [vmem:[%s2619_s1 + $0x38] sm:$0xff]   ;;  %v2000_v38 = vld [vmem:[%s2619_s1 + $0x1c0] sm:$0xff]  }
   0xc   :  { %1762 = vmatpush3.bf16.msra.mxu0 %v1976_v10  ;;  %v1993_v27 = vld [vmem:[%s2619_s1 + $0xb0] sm:$0xff]   ;;  %v1997_v32 = vld [vmem:[%s2619_s1 + $0xb8] sm:$0xff]   ;;  %v2271_v43 = vrot.slane %v289_v39, %v2267_v41  ;;  %v304_v44 = vcombine.high %v296_v42, %v296_v42  ;;  %v312_v45 = vrot.slane %v296_v42, %v2267_v41  ;;  %v2001_v47 = vld [vmem:[%s2619_s1 + $0x100] sm:$0xff]  }
   0xd   :  { %1784 = vmatpush3.bf16.msra.mxu1 %v1977_v11  ;;  %1763 = vmatprep.subr.bf16.mxu0 %v1978_v12  ;;  %v2002_v49 = vld [vmem:[%s2619_s1 + $0x180] sm:$0xff]   ;;  %v2003_v52 = vld [vmem:[%s2619_s1 + $0x148] sm:$0xff]   ;;  %v2007_v58 = vld [vmem:[%s2619_s1 + $0x150] sm:$0xff]  }
   0xe   :  { %1785 = vmatprep.subr.bf16.mxu1 %v1979_v13  ;;  %v305_v46 = vcombine.high %v2271_v43, %v2271_v43  ;;  %v326_v48 = vrot.slane %v304_v44, %v2267_v41  ;;  %v334_v51 = vcombine.high %v312_v45, %v312_v45  ;;  %v2004_v54 = vld [vmem:[%s2619_s1 + $0x1c8] sm:$0xff]   ;;  %v2008_v59 = vld [vmem:[%s2619_s1 + $0x1d0] sm:$0xff]   ;;  %v2011_v62 = vld [vmem:[%s2619_s1 + $0x158] sm:$0xff]  }
   0xf   :  { %v2005_v55 = vld [vmem:[%s2619_s1 + $0x108] sm:$0xff]   ;;  %v2009_v60 = vld [vmem:[%s2619_s1 + $0x110] sm:$0xff]   ;;  %v2012_v63 = vld [vmem:[%s2619_s1 + $0x1d8] sm:$0xff]  }
  0x10   :  { %1764 = vmatpush3.bf16.msra.mxu0 %v1980_v14  ;;  %v333_v50 = vrot.slane %v305_v46, %v2267_v41  ;;  %1203 = vmatprep.mubr.bf16.mxu0 %v326_v48  ;;  %v336_v53 = vcombine.high %v326_v48, %v326_v48  ;;  %v2006_v57 = vld [vmem:[%s2619_s1 + $0x188] sm:$0xff]   ;;  %v2010_v61 = vld [vmem:[%s2619_s1 + $0x190] sm:$0xff]   ;;  %v2013_v0 = vld [vmem:[%s2619_s1 + $0x118] sm:$0xff]  }
  0x11   :  { %1786 = vmatpush3.bf16.msra.mxu1 %v1981_v15  ;;  %1765 = vmatprep.subr.bf16.mxu0 %v1982_v16  ;;  %v2014_v1 = vld [vmem:[%s2619_s1 + $0x198] sm:$0xff]   ;;  %v2015_v2 = vld [vmem:[%s2619_s1 + $0x160] sm:$0xff]   ;;  %v2019_v6 = vld [vmem:[%s2619_s1 + $0x168] sm:$0xff]  }
  0x12   :  { %1787 = vmatprep.subr.bf16.mxu1 %v1983_v17  ;;  %v337_v56 = vcombine.high %v333_v50, %v333_v50  ;;  %1243 = vmatprep.mubr.bf16.mxu1 %v336_v53  ;;  %v2016_v3 = vld [vmem:[%s2619_s1 + $0x1e0] sm:$0xff]   ;;  %v2020_v7 = vld [vmem:[%s2619_s1 + $0x1e8] sm:$0xff]   ;;  %v2023_v10 = vld [vmem:[%s2619_s1 + $0x170] sm:$0xff]  }
  0x13   :  { %v2017_v4 = vld [vmem:[%s2619_s1 + $0x120] sm:$0xff]   ;;  %v2021_v8 = vld [vmem:[%s2619_s1 + $0x128] sm:$0xff]   ;;  %v2024_v11 = vld [vmem:[%s2619_s1 + $0x1f0] sm:$0xff]  }
  0x14   :  { %1766 = vmatpush3.bf16.msra.mxu0 %v1984_v18  ;;  %v2018_v5 = vld [vmem:[%s2619_s1 + $0x1a0] sm:$0xff]   ;;  %v2022_v9 = vld [vmem:[%s2619_s1 + $0x1a8] sm:$0xff]   ;;  %v2025_v12 = vld [vmem:[%s2619_s1 + $0x130] sm:$0xff]   ;;  %v319_v18 = vrot.slane %v2271_v43, %v2267_v41 }
  0x15   :  { %1788 = vmatpush3.bf16.msra.mxu1 %v1985_v19  ;;  %1767 = vmatprep.subr.bf16.mxu0 %v1986_v20  ;;  %v2026_v13 = vld [vmem:[%s2619_s1 + $0x1b0] sm:$0xff]   ;;  %v2027_v14 = vld [vmem:[%s2619_s1 + $0x178] sm:$0xff]   ;;  %v2031_v19 = vld [vmem:[%s2619_s1 + $0x240] sm:$0xff]  }
  0x16   :  { %1789 = vmatprep.subr.bf16.mxu1 %v1987_v21  ;;  %v2028_v15 = vld [vmem:[%s2619_s1 + $0x1f8] sm:$0xff]   ;;  %v2032_v20 = vld [vmem:[%s2619_s1 + $0x2c0] sm:$0xff]   ;;  %v2039_v28 = vld [vmem:[%s2619_s1 + $0x250] sm:$0xff]  }
  0x17   :  { %v2029_v16 = vld [vmem:[%s2619_s1 + $0x138] sm:$0xff]   ;;  %v2033_v21 = vld [vmem:[%s2619_s1 + $0x200] sm:$0xff]   ;;  %v2051_v40 = vld [vmem:[%s2619_s1 + $0x268] sm:$0xff]  }
  0x18   :  { %1768 = vmatpush3.bf16.msra.mxu0 %v1988_v22  ;;  %v2030_v17 = vld [vmem:[%s2619_s1 + $0x1b8] sm:$0xff]   ;;  %v2034_v22 = vld [vmem:[%s2619_s1 + $0x280] sm:$0xff]   ;;  %v2052_v42 = vld [vmem:[%s2619_s1 + $0x2e8] sm:$0xff]  }
  0x19   :  { %1790 = vmatpush3.bf16.msra.mxu1 %v1989_v23  ;;  %1769 = vmatprep.subr.bf16.mxu0 %v1990_v24  ;;  %v335_v23 = vcombine.high %v319_v18, %v319_v18  ;;  %v2035_v24 = vld [vmem:[%s2619_s1 + $0x248] sm:$0xff]   ;;  %v2044_v33 = vld [vmem:[%s2619_s1 + $0x2d8] sm:$0xff]   ;;  %v2047_v36 = vld [vmem:[%s2619_s1 + $0x260] sm:$0xff]  }
  0x1a   :  { %1791 = vmatprep.subr.bf16.mxu1 %v1991_v25  ;;  %v2036_v25 = vld [vmem:[%s2619_s1 + $0x2c8] sm:$0xff]   ;;  %v2045_v34 = vld [vmem:[%s2619_s1 + $0x218] sm:$0xff]   ;;  %v2048_v37 = vld [vmem:[%s2619_s1 + $0x2e0] sm:$0xff]  }
  0x1b   :  { %v2050_v39 = vld [vmem:[%s2619_s1 + $0x2a0] sm:$0xff]   ;;  %v2053_v43 = vld [vmem:[%s2619_s1 + $0x228] sm:$0xff]  }
  0x1c   :  { %1770 = vmatpush3.bf16.msra.mxu0 %v1992_v26  ;;  %v2037_v26 = vld [vmem:[%s2619_s1 + $0x208] sm:$0xff]  }
  0x1d   :  { %1792 = vmatpush3.bf16.msra.mxu1 %v1993_v27  ;;  %1771 = vmatprep.subr.bf16.mxu0 %v1994_v29  ;;  %v2038_v27 = vld [vmem:[%s2619_s1 + $0x288] sm:$0xff]   ;;  %v2040_v29 = vld [vmem:[%s2619_s1 + $0x2d0] sm:$0xff]  }
  0x1e   :  { %1793 = vmatprep.subr.bf16.mxu1 %v1995_v30  ;;  %v2041_v30 = vld [vmem:[%s2619_s1 + $0x210] sm:$0xff]   ;;  %v2054_v44 = vld [vmem:[%s2619_s1 + $0x2a8] sm:$0xff]  }
  0x1f   :  { %v23_v46 = vld [vmem:[%s2618_s0 + $0x8] sm:$0xff] }
  0x20   :  { %1772 = vmatpush3.bf16.msra.mxu0 %v1996_v31  ;;  %v2042_v31 = vld [vmem:[%s2619_s1 + $0x290] sm:$0xff]   ;;  %v345_v48 = vrot.slane %v23_v46, %v2267_v41 }
  0x21   :  { %1794 = vmatpush3.bf16.msra.mxu1 %v1997_v32  ;;  %1801 = vmatprep.subr.bf16.mxu0 %v1999_v35  ;;  %v2043_v32 = vld [vmem:[%s2619_s1 + $0x258] sm:$0xff]  }
  0x22   :  { %1823 = vmatprep.subr.bf16.mxu1 %v2000_v38  ;;  %v2046_v35 = vld [vmem:[%s2619_s1 + $0x298] sm:$0xff]   ;;  %v2049_v38 = vld [vmem:[%s2619_s1 + $0x220] sm:$0xff]  }
  0x23   :  { %1204 = vmatmul.mubr.bf16.vlgmr.msra.gmra.mrb[0].mxu0 %v312_v45  ;;  %v2055_v45 = vld [vmem:[%s2619_s1 + $0x270] sm:$0xff]  }
  0x24   :  { %1802 = vmatpush3.bf16.msra.mxu0 %v2001_v47  ;;  %1244 = vmatmul.mubr.bf16.vlgmr.msra.gmra.mrb[0].mxu1 %v334_v51  ;;  %v2056_v47 = vld [vmem:[%s2619_s1 + $0x2f0] sm:$0xff]  }
  0x25   :  { %1803 = vmatprep.subr.bf16.mxu0 %v2003_v52  ;;  %1824 = vmatpush3.bf16.msra.mxu1 %v2002_v49  ;;  %v338_v49 = vcombine.high %v23_v46, %v23_v46  ;;  %v2058_v51 = vld [vmem:[%s2619_s1 + $0x2b0] sm:$0xff]   ;;  %v353_v52 = vcombine.high %v345_v48, %v345_v48 }
  0x26   :  { %1283 = vmatprep.mubr.bf16.mxu0 %v333_v50  ;;  %1825 = vmatprep.subr.bf16.mxu1 %v2004_v54  ;;  %v2057_v50 = vld [vmem:[%s2619_s1 + $0x230] sm:$0xff]   ;;  %v2059_v54 = vld [vmem:[%s2619_s1 + $0x278] sm:$0xff]  }
  0x27   :  { %1323 = vmatprep.mubr.bf16.mxu1 %v337_v56  ;;  %v2459_v53 = vrot.slane %v338_v49, %v2267_v41  ;;  %v375_v56 = vrot.slane %v353_v52, %v2267_v41 }
  0x28   :  { %1804 = vmatpush3.bf16.msra.mxu0 %v2005_v55  ;;  %v2060_v55 = vld [vmem:[%s2619_s1 + $0x2f8] sm:$0xff]  }
  0x29   :  { %1805 = vmatprep.subr.bf16.mxu0 %v2007_v58  ;;  %1826 = vmatpush3.bf16.msra.mxu1 %v2006_v57  ;;  %v354_v57 = vcombine.high %v2459_v53, %v2459_v53  ;;  %v2061_v58 = vld [vmem:[%s2619_s1 + $0x238] sm:$0xff]  }
  0x2a   :  { %1827 = vmatprep.subr.bf16.mxu1 %v2008_v59  ;;  %v2062_v59 = vld [vmem:[%s2619_s1 + $0x2b8] sm:$0xff]  }
  0x2c   :  { %1806 = vmatpush3.bf16.msra.mxu0 %v2009_v60  ;;  %v385_v60 = vcombine.high %v375_v56, %v375_v56 }
  0x2d   :  { %1807 = vmatprep.subr.bf16.mxu0 %v2011_v62  ;;  %1828 = vmatpush3.bf16.msra.mxu1 %v2010_v61  ;;  %v361_v61 = vrot.slane %v345_v48, %v2267_v41  ;;  %v2063_v62 = vld [vmem:[%s2619_s1 + $0x340] sm:$0xff]  }
  0x2e   :  { %1829 = vmatprep.subr.bf16.mxu1 %v2012_v63  ;;  %v2064_v63 = vld [vmem:[%s2619_s1 + $0x3c0] sm:$0xff]  }
  0x30   :  { %1808 = vmatpush3.bf16.msra.mxu0 %v2013_v0  ;;  %v382_v0 = vrot.slane %v354_v57, %v2267_v41 }
  0x31   :  { %1809 = vmatprep.subr.bf16.mxu0 %v2015_v2  ;;  %1830 = vmatpush3.bf16.msra.mxu1 %v2014_v1  ;;  %v2065_v1 = vld [vmem:[%s2619_s1 + $0x300] sm:$0xff]  }
  0x32   :  { %1831 = vmatprep.subr.bf16.mxu1 %v2016_v3  ;;  %v2066_v2 = vld [vmem:[%s2619_s1 + $0x380] sm:$0xff]   ;;  %v383_v3 = vcombine.high %v361_v61, %v361_v61 }
  0x34   :  { %1810 = vmatpush3.bf16.msra.mxu0 %v2017_v4  ;;  %v2067_v4 = vld [vmem:[%s2619_s1 + $0x348] sm:$0xff]  }
  0x35   :  { %1811 = vmatprep.subr.bf16.mxu0 %v2019_v6  ;;  %1832 = vmatpush3.bf16.msra.mxu1 %v2018_v5  ;;  %v2068_v5 = vld [vmem:[%s2619_s1 + $0x3c8] sm:$0xff]   ;;  %v386_v6 = vcombine.high %v382_v0, %v382_v0 }
  0x36   :  { %1833 = vmatprep.subr.bf16.mxu1 %v2020_v7  ;;  %v2069_v7 = vld [vmem:[%s2619_s1 + $0x308] sm:$0xff]  }
  0x38   :  { %1812 = vmatpush3.bf16.msra.mxu0 %v2021_v8  ;;  %v2070_v8 = vld [vmem:[%s2619_s1 + $0x388] sm:$0xff]  }
  0x39   :  { %1813 = vmatprep.subr.bf16.mxu0 %v2023_v10  ;;  %1834 = vmatpush3.bf16.msra.mxu1 %v2022_v9  ;;  %v2071_v9 = vld [vmem:[%s2619_s1 + $0x350] sm:$0xff]  }
  0x3a   :  { %1835 = vmatprep.subr.bf16.mxu1 %v2024_v11  ;;  %v2072_v10 = vld [vmem:[%s2619_s1 + $0x3d0] sm:$0xff]  }
  0x3b   :  { %v2073_v11 = vld [vmem:[%s2619_s1 + $0x310] sm:$0xff]  }
  0x3c   :  { %1814 = vmatpush3.bf16.msra.mxu0 %v2025_v12  ;;  %v2074_v12 = vld [vmem:[%s2619_s1 + $0x390] sm:$0xff]  }
  0x3d   :  { %1815 = vmatprep.subr.bf16.mxu0 %v2027_v14  ;;  %1836 = vmatpush3.bf16.msra.mxu1 %v2026_v13  ;;  %v2075_v13 = vld [vmem:[%s2619_s1 + $0x358] sm:$0xff]  }
  0x3e   :  { %1837 = vmatprep.subr.bf16.mxu1 %v2028_v15  ;;  %v2076_v14 = vld [vmem:[%s2619_s1 + $0x3d8] sm:$0xff]  }
  0x3f   :  { %v2077_v15 = vld [vmem:[%s2619_s1 + $0x318] sm:$0xff]  }
  0x40   :  { %1816 = vmatpush3.bf16.msra.mxu0 %v2029_v16  ;;  %v2078_v16 = vld [vmem:[%s2619_s1 + $0x398] sm:$0xff]  }
  0x41   :  { %1845 = vmatprep.subr.bf16.mxu0 %v2031_v19  ;;  %1838 = vmatpush3.bf16.msra.mxu1 %v2030_v17  ;;  %v2079_v17 = vld [vmem:[%s2619_s1 + $0x360] sm:$0xff]  }
  0x42   :  { %1867 = vmatprep.subr.bf16.mxu1 %v2032_v20  ;;  %v2081_v19 = vld [vmem:[%s2619_s1 + $0x320] sm:$0xff]  }
  0x43   :  { %1284 = vmatmul.mubr.bf16.vlgmr.msra.gmra.mrb[4].mxu0 %v319_v18  ;;  %v2080_v18 = vld [vmem:[%s2619_s1 + $0x3e0] sm:$0xff]  }
  0x44   :  { %1846 = vmatpush3.bf16.msra.mxu0 %v2033_v21  ;;  %1324 = vmatmul.mubr.bf16.vlgmr.msra.gmra.mrb[4].mxu1 %v335_v23  ;;  %v2082_v20 = vld [vmem:[%s2619_s1 + $0x3a0] sm:$0xff]   ;;  %v2083_v21 = vld [vmem:[%s2619_s1 + $0x368] sm:$0xff]  }
  0x45   :  { %1847 = vmatprep.subr.bf16.mxu0 %v2035_v24  ;;  %1868 = vmatpush3.bf16.msra.mxu1 %v2034_v22  ;;  %v2084_v22 = vld [vmem:[%s2619_s1 + $0x3e8] sm:$0xff]  }
  0x46   :  { %1869 = vmatprep.subr.bf16.mxu1 %v2036_v25  ;;  %1363 = vmatprep.mubr.bf16.mxu0 %v375_v56  ;;  %v2085_v23 = vld [vmem:[%s2619_s1 + $0x328] sm:$0xff]   ;;  %v2087_v25 = vld [vmem:[%s2619_s1 + $0x370] sm:$0xff]  }
  0x47   :  { %1403 = vmatprep.mubr.bf16.mxu1 %v385_v60  ;;  %v2086_v24 = vld [vmem:[%s2619_s1 + $0x3a8] sm:$0xff]  }
  0x48   :  { %1848 = vmatpush3.bf16.msra.mxu0 %v2037_v26  ;;  %v2088_v26 = vld [vmem:[%s2619_s1 + $0x3f0] sm:$0xff]  }
  0x49   :  { %1849 = vmatprep.subr.bf16.mxu0 %v2039_v28  ;;  %1870 = vmatpush3.bf16.msra.mxu1 %v2038_v27  ;;  %v2089_v27 = vld [vmem:[%s2619_s1 + $0x330] sm:$0xff]  }
  0x4a   :  { %1871 = vmatprep.subr.bf16.mxu1 %v2040_v29  ;;  %v2090_v28 = vld [vmem:[%s2619_s1 + $0x3b0] sm:$0xff]   ;;  %v2091_v29 = vld [vmem:[%s2619_s1 + $0x378] sm:$0xff]  }
  0x4c   :  { %1850 = vmatpush3.bf16.msra.mxu0 %v2041_v30  ;;  %v2092_v30 = vld [vmem:[%s2619_s1 + $0x3f8] sm:$0xff]  }
  0x4d   :  { %1851 = vmatprep.subr.bf16.mxu0 %v2043_v32  ;;  %1872 = vmatpush3.bf16.msra.mxu1 %v2042_v31 }
  0x4e   :  { %1873 = vmatprep.subr.bf16.mxu1 %v2044_v33 }
  0x50   :  { %1852 = vmatpush3.bf16.msra.mxu0 %v2045_v34 }
  0x51   :  { %1853 = vmatprep.subr.bf16.mxu0 %v2047_v36  ;;  %1874 = vmatpush3.bf16.msra.mxu1 %v2046_v35 }
  0x52   :  { %1875 = vmatprep.subr.bf16.mxu1 %v2048_v37 }
  0x54   :  { %1854 = vmatpush3.bf16.msra.mxu0 %v2049_v38 }
  0x55   :  { %1855 = vmatprep.subr.bf16.mxu0 %v2051_v40  ;;  %1876 = vmatpush3.bf16.msra.mxu1 %v2050_v39 }
  0x56   :  { %1877 = vmatprep.subr.bf16.mxu1 %v2052_v42 }
  0x58   :  { %1856 = vmatpush3.bf16.msra.mxu0 %v2053_v43 }
  0x59   :  { %1857 = vmatprep.subr.bf16.mxu0 %v2055_v45  ;;  %1878 = vmatpush3.bf16.msra.mxu1 %v2054_v44 }
  0x5a   :  { %1879 = vmatprep.subr.bf16.mxu1 %v2056_v47 }
  0x5c   :  { %1858 = vmatpush3.bf16.msra.mxu0 %v2057_v50 }
  0x5d   :  { %1859 = vmatprep.subr.bf16.mxu0 %v2059_v54  ;;  %1880 = vmatpush3.bf16.msra.mxu1 %v2058_v51 }
  0x5e   :  { %1881 = vmatprep.subr.bf16.mxu1 %v2060_v55 }
  0x60   :  { %1860 = vmatpush3.bf16.msra.mxu0 %v2061_v58 }
  0x61   :  { %1889 = vmatprep.subr.bf16.mxu0 %v2063_v62  ;;  %1882 = vmatpush3.bf16.msra.mxu1 %v2062_v59 }
  0x62   :  { %1911 = vmatprep.subr.bf16.mxu1 %v2064_v63 }
  0x63   :  { %1364 = vmatmul.mubr.bf16.vlgmr.msra.gmra.mrb[8].mxu0 %v361_v61 }
  0x64   :  { %1890 = vmatpush3.bf16.msra.mxu0 %v2065_v1  ;;  %1443 = vmatprep.mubr.bf16.mxu0 %v382_v0 }
  0x65   :  { %1404 = vmatmul.mubr.bf16.vlgmr.msra.gmra.mrb[8].mxu1 %v383_v3  ;;  %1891 = vmatprep.subr.bf16.mxu0 %v2067_v4 }
  0x66   :  { %1912 = vmatpush3.bf16.msra.mxu1 %v2066_v2  ;;  %1483 = vmatprep.mubr.bf16.mxu1 %v386_v6 }
  0x67   :  { %1913 = vmatprep.subr.bf16.mxu1 %v2068_v5 }
  0x68   :  { %1892 = vmatpush3.bf16.msra.mxu0 %v2069_v7 }
  0x69   :  { %1893 = vmatprep.subr.bf16.mxu0 %v2071_v9 }
  0x6a   :  { %1914 = vmatpush3.bf16.msra.mxu1 %v2070_v8 }
  0x6b   :  { %1915 = vmatprep.subr.bf16.mxu1 %v2072_v10 }
  0x6c   :  { %1894 = vmatpush3.bf16.msra.mxu0 %v2073_v11 }
  0x6d   :  { %1895 = vmatprep.subr.bf16.mxu0 %v2075_v13 }
  0x6e   :  { %1916 = vmatpush3.bf16.msra.mxu1 %v2074_v12 }
  0x6f   :  { %1917 = vmatprep.subr.bf16.mxu1 %v2076_v14 }
  0x70   :  { %1896 = vmatpush3.bf16.msra.mxu0 %v2077_v15 }
  0x71   :  { %1897 = vmatprep.subr.bf16.mxu0 %v2079_v17 }
  0x72   :  { %1918 = vmatpush3.bf16.msra.mxu1 %v2078_v16 }
  0x73   :  { %1919 = vmatprep.subr.bf16.mxu1 %v2080_v18 }
  0x74   :  { %1898 = vmatpush3.bf16.msra.mxu0 %v2081_v19 }
  0x75   :  { %1899 = vmatprep.subr.bf16.mxu0 %v2083_v21 }
  0x76   :  { %1920 = vmatpush3.bf16.msra.mxu1 %v2082_v20 }
  0x77   :  { %1921 = vmatprep.subr.bf16.mxu1 %v2084_v22 }
  0x78   :  { %1900 = vmatpush3.bf16.msra.mxu0 %v2085_v23 }
  0x79   :  { %1901 = vmatprep.subr.bf16.mxu0 %v2087_v25 }
  0x7a   :  { %1922 = vmatpush3.bf16.msra.mxu1 %v2086_v24 }
  0x7b   :  { %1923 = vmatprep.subr.bf16.mxu1 %v2088_v26 }
  0x7c   :  { %10 = vsyncpa [#allocation3], 0  ;;  %1902 = vmatpush3.bf16.msra.mxu0 %v2089_v27  ;;  %v2093_v31 = vld [vmem:[%s2619_s1 + $0x338] sm:$0xff]   ;;  %v368_v32 = vrot.slane %v2459_v53, %v2267_v41  ;;  %v2096_v35 = vld [vmem:[%s2621_s3] sm:$0xff]   ;;  %v2129_v36 = vmov 0.0   ;;  %vm2130_vm0 = vmmov 0  }
  0x7d   :  { %1903 = vmatprep.subr.bf16.mxu0 %v2091_v29  ;;  %v2094_v33 = vld [vmem:[%s2619_s1 + $0x3b8] sm:$0xff]   ;;  %v2097_v41 = vld [vmem:[%s2621_s3 + $0x8] sm:$0xff]   ;;  %v2098_v37 = vld [vmem:[%s2621_s3 + $0x10] sm:$0xff]   ;;  %s2131_s16 = smov [#allocation2]  }
  0x7e   :  { %1924 = vmatpush3.bf16.msra.mxu1 %v2090_v28  ;;  %v384_v34 = vcombine.high %v368_v32, %v368_v32  ;;  %v2099_v38 = vld [vmem:[%s2621_s3 + $0x18] sm:$0xff]   ;;  %v2100_v39 = vld [vmem:[%s2621_s3 + $0x20] sm:$0xff]   ;;  %v2101_v40 = vld [vmem:[%s2621_s3 + $0x28] sm:$0xff]   ;;  %s1611_s17 = sshll.u32 %s2131_s16, 4  ;;  %s1612_s17 = int_to_ptr.vmem [resolvable:$true] %s1611_s17 }
  0x7f   :  { %1925 = vmatprep.subr.bf16.mxu1 %v2092_v30  ;;  %v2102_v42 = vld [vmem:[%s2621_s3 + $0x30] sm:$0xff]   ;;  %v2103_v43 = vld [vmem:[%s2621_s3 + $0x38] sm:$0xff]   ;;  %v1619_v45 = vld [vmem:[%s2620_s2] ss:$0 sm:$0xff]  ;;  %s2104_s18 = scalar_lea.vmem %s1612_s17, 32  ;;  %p2109_p1 = scmp.lt.s32.totalorder %s1612_s17, %s1612_s17 }
  0x80   :  { %1904 = vmatpush3.bf16.msra.mxu0 %v2093_v31  ;;  %v1748_v31 = vld [vmem:[%s2622_s4] ss:$0 sm:$0xff]  ;;  %p2105_p0 = scmp.ne.s32.totalorder %s1612_s17, %s2104_s18  ;;  %p2110_p2 = scmp.lt.s32.totalorder %s2104_s18, %s2104_s18 }
  0x81   :  { %1942 = vmatprep.subr.bf16.mxu0 %v2129_v36 }
  0x82   :  { %1926 = vmatpush3.bf16.msra.mxu1 %v2094_v33  ;;  %p2111_p3 = por %p2110_p2, %p2109_p1 }
  0x83   :  { %1444 = vmatmul.mubr.bf16.vlgmr.msra.gmra.mrb[12].mxu0 %v368_v32 }
  0x84   :  { %1943 = vmatpush3.bf16.msra.mxu0 %v2096_v35  ;;  %1958 = vmatprep.mubr.msk.bf16.mxu0 %vm2130_vm0, %v2129_v36  ;;  %p2112_p4 = pnand %p2111_p3, %p2105_p0 }
  0x85   :  { %1484 = vmatmul.mubr.bf16.vlgmr.msra.gmra.mrb[12].mxu1 %v384_v34  ;;  %1944 = vmatprep.subr.bf16.mxu0 %v2129_v36 }
  0x88   :  { %1945 = vmatpush3.bf16.msra.mxu0 %v2097_v41 }
  0x89   :  { %1946 = vmatprep.subr.bf16.mxu0 %v2129_v36 }
  0x8c   :  { %1947 = vmatpush3.bf16.msra.mxu0 %v2098_v37 }
  0x8d   :  { %1948 = vmatprep.subr.bf16.mxu0 %v2129_v36 }
  0x90   :  { %1949 = vmatpush3.bf16.msra.mxu0 %v2099_v38 }
  0x91   :  { %1950 = vmatprep.subr.bf16.mxu0 %v2129_v36 }
  0x94   :  { %1951 = vmatpush3.bf16.msra.mxu0 %v2100_v39 }
  0x95   :  { %1952 = vmatprep.subr.bf16.mxu0 %v2129_v36 }
  0x98   :  { %1953 = vmatpush3.bf16.msra.mxu0 %v2101_v40 }
  0x99   :  { %1954 = vmatprep.subr.bf16.mxu0 %v2129_v36 }
  0x9c   :  { %1955 = vmatpush3.bf16.msra.mxu0 %v2102_v42 }
  0x9d   :  { %1956 = vmatprep.subr.bf16.mxu0 %v2129_v36 }
  0xa0   :  { %1957 = vmatpush3.bf16.msra.mxu0 %v2103_v43 }
  0xf6   :  { %v1773_v44 = vpop.f32.mrb[0].mxu0 }
  0xf7   :  { %v1774_v46 = vpop.f32.mrb[1].mxu0  ;;  %v1795_v47 = vpop.f32.mrb[0].mxu1 }
  0xf8   :  { %v1775_v48 = vadd.f32 %v1774_v46, %v1773_v44  ;;  %v1776_v49 = vpop.f32.mrb[2].mxu0  ;;  %v1796_v50 = vpop.f32.mrb[1].mxu1 }
  0xf9   :  { %v1777_v51 = vpop.f32.mrb[3].mxu0  ;;  %v1797_v53 = vadd.f32 %v1796_v50, %v1795_v47  ;;  %v1798_v54 = vpop.f32.mrb[2].mxu1 }
  0xfa   :  { %v1206_v52 = vadd.f32 %v1775_v48, %v1619_v45  ;;  %v1799_v55 = vpop.f32.mrb[3].mxu1 }
  0xfc   :  { %v1246_v56 = vadd.f32 %v1797_v53, %v1206_v52 }
 0x116   :  { %v1817_v57 = vpop.f32.mrb[4].mxu0 }
 0x117   :  { %v1818_v58 = vpop.f32.mrb[5].mxu0  ;;  %v1839_v59 = vpop.f32.mrb[4].mxu1 }
 0x118   :  { %v1819_v60 = vadd.f32 %v1818_v58, %v1817_v57  ;;  %v1820_v61 = vpop.f32.mrb[6].mxu0  ;;  %v1840_v62 = vpop.f32.mrb[5].mxu1 }
 0x119   :  { %v1821_v63 = vpop.f32.mrb[7].mxu0  ;;  %v1841_v1 = vadd.f32 %v1840_v62, %v1839_v59  ;;  %v1842_v2 = vpop.f32.mrb[6].mxu1 }
 0x11a   :  { %v1286_v0 = vadd.f32 %v1819_v60, %v1246_v56  ;;  %v1843_v3 = vpop.f32.mrb[7].mxu1 }
 0x11c   :  { %v1326_v4 = vadd.f32 %v1841_v1, %v1286_v0 }
 0x136   :  { %v1861_v5 = vpop.f32.mrb[8].mxu0 }
 0x137   :  { %v1862_v6 = vpop.f32.mrb[9].mxu0 }
 0x138   :  { %v1883_v7 = vpop.f32.mrb[8].mxu1  ;;  %v1863_v8 = vadd.f32 %v1862_v6, %v1861_v5  ;;  %v1864_v9 = vpop.f32.mrb[10].mxu0 }
 0x139   :  { %v1884_v10 = vpop.f32.mrb[9].mxu1  ;;  %v1865_v11 = vpop.f32.mrb[11].mxu0 }
 0x13a   :  { %v1366_v12 = vadd.f32 %v1863_v8, %v1326_v4  ;;  %v1885_v13 = vadd.f32 %v1884_v10, %v1883_v7  ;;  %v1886_v14 = vpop.f32.mrb[10].mxu1 }
 0x13b   :  { %v1887_v15 = vpop.f32.mrb[11].mxu1 }
 0x13c   :  { %v1406_v16 = vadd.f32 %v1885_v13, %v1366_v12 }
 0x156   :  { %v1905_v17 = vpop.f32.mrb[12].mxu0 }
 0x157   :  { %v1906_v18 = vpop.f32.mrb[13].mxu0 }
 0x158   :  { %v1927_v19 = vpop.f32.mrb[12].mxu1  ;;  %v1907_v20 = vadd.f32 %v1906_v18, %v1905_v17  ;;  %v1908_v21 = vpop.f32.mrb[14].mxu0 }
 0x159   :  { %v1928_v22 = vpop.f32.mrb[13].mxu1  ;;  %v1909_v23 = vpop.f32.mrb[15].mxu0 }
 0x15a   :  { %v1446_v24 = vadd.f32 %v1907_v20, %v1406_v16  ;;  %v1929_v25 = vadd.f32 %v1928_v22, %v1927_v19  ;;  %v1930_v26 = vpop.f32.mrb[14].mxu1 }
 0x15b   :  { %v1931_v27 = vpop.f32.mrb[15].mxu1 }
 0x15c   :  { %v1486_v28 = vadd.f32 %v1929_v25, %v1446_v24 }
 0x15e   :  { %v1491_v29 = vmax.f32 %v1486_v28, 0.0 }
 0x160   :  { %v1492_v30 = vpack.c.bf16 %v1491_v29, %v1491_v29 }
 0x162   :  { %1959 = vmatmul.mubr.bf16.vlgmr.msra.gmra.mrb[16].mxu0 %v1492_v30 }
 0x235   :  { %v1598_v32 = vpop.f32.mrb[16].mxu0 }
 0x236   :  { %v1599_v33 = vadd.f32 %v1748_v31, %v1598_v32  ;;  %v1960_v34 = vpop.f32.mrb[17].mxu0 }
 0x237   :  { %v1601_v35 = vpop.f32.mrb[18].mxu0 }
 0x238   :  { %1604 = vst [vmem:[#allocation2] sm:$0x3] %v1599_v33  ;;  %v1961_v36 = vpop.f32.mrb[19].mxu0 }
 0x239   :  { %2115 = shalt.err (!%p2112_p4)
}
 0x23a   :  { %s2116_s4 = scalar_lea.hbm %s2623_s5, 32 }
 0x23b   :  { %p2117_p5 = scmp.ne.s32.totalorder %s2623_s5, %s2116_s4  ;;  %p2120_p6 = scmp.lt.u32.totalorder %s2116_s4, %s2623_s5 }
 0x23d   :  { %p2122_p7 = pnand %p2120_p6, %p2117_p5 }
 0x23f   :  { %2125 = shalt.err (!%p2122_p7)
}
 0x240   :  { %1614 = dma.vmem_to_hbm [thread:$0]  %s1612_s17, 32, %s2623_s5, [#allocation3]  }
 0x241   :  { %2126 = dma.done.wait [#allocation3], 32  }
 0x242   :  { %2127 = vsyncadd [#allocation3], 4294967264 }
 0x243   :  { %1618 = vsyncpa [#allocation3], 1 }

</bundles_post_ra>
